<compile_context>
chip_gen: v5e
topology: v5e:2x2
jax: 0.10.0
libtpu: 0.0.40
codegen_flags: <defaults>
</compile_context>

<pallas_src>
import numpy as np

import jax
import jax.numpy as jnp
from jax.experimental import pallas as pl
from jax.experimental.pallas import tpu as pltpu

NUM_CLASSES = 47
PAD_CLASSES = 128  # lane-dense output width (padded lanes masked in-kernel)


# ----------------------------------------------------------------------------
# Fused Pallas kernel (one image per grid step; weights VMEM-resident)
# ----------------------------------------------------------------------------
def _lenet_fused_kernel(x_ref,
                        t1_ref, b1c_ref, p1r_ref, p1c_ref,
                        t2_ref, b2c_ref, p2r_ref, p2c_ref,
                        t3_ref, b3c_ref,
                        w1_ref, b1_ref, w2_ref, b2_ref,
                        o_ref):
    f32 = jnp.float32
    bf16 = jnp.bfloat16

    def conv_rows(act, t_ref, bias_row, kh, ho):
        """act: (H, W*Cin) f32 slab; t_ref: (KH, W*Cin, Wo*Cout); bias: (1, Wo*Cout).

        Valid conv, stride 1, fused bias + ReLU, as KH Toeplitz matmuls.
        """
        acc = bias_row                                    # (1, Wo*Cout) f32
        for ky in range(kh):
            acc = acc + jnp.dot(act[ky:ky + ho, :].astype(bf16), t_ref[ky],
                                preferred_element_type=f32)
        return jnp.maximum(acc, 0.0)                      # (Ho, Wo*Cout) f32

    def maxpool2x2(act, pr_ref, pc_ref):
        """act: (H, W*C) f32 -> (H//2, (W//2)*C) via exact 0/1 selection matmuls."""
        a = act.astype(bf16)
        r = jnp.maximum(jnp.dot(pr_ref[0], a, preferred_element_type=f32),
                        jnp.dot(pr_ref[1], a, preferred_element_type=f32))
        r = r.astype(bf16)
        return jnp.maximum(jnp.dot(r, pc_ref[0], preferred_element_type=f32),
                           jnp.dot(r, pc_ref[1], preferred_element_type=f32))

    # ---- conv1 (1->20, 5x5) + ReLU + 2x2 pool -------------------------------
    x = x_ref[0]                                          # (28, 28) f32
    a1 = conv_rows(x, t1_ref, b1c_ref[...], kh=5, ho=24)  # (24, 24*20)
    p1 = maxpool2x2(a1, p1r_ref, p1c_ref)                 # (12, 12*20)
    # dropout1: identity in eval mode

    # ---- conv2 (20->50, 3x3) + ReLU + 2x2 pool ------------------------------
    a2 = conv_rows(p1, t2_ref, b2c_ref[...], kh=3, ho=10)  # (10, 10*50)
    p2 = maxpool2x2(a2, p2r_ref, p2c_ref)                  # (5, 5*50)

    # ---- conv3 (50->64, 3x3) + ReLU -----------------------------------------
    a3 = conv_rows(p2, t3_ref, b3c_ref[...], kh=3, ho=3)   # (3, 3*64)
    # dropout1: identity in eval mode

    # ---- fc1 (576 -> 128) + ReLU (flatten folded into the packed weight) ----
    h = b1_ref[...]                                        # (1, 128) f32
    for r in range(3):
        h = h + jnp.dot(a3[r:r + 1, :].astype(bf16), w1_ref[r],
                        preferred_element_type=f32)
    h = jnp.maximum(h, 0.0)
    # dropout2: identity in eval mode

    # ---- fc2 (128 -> 47, padded to 128 lanes) + masked log_softmax ----------
    logits = jnp.dot(h.astype(bf16), w2_ref[...],
                     preferred_element_type=f32) + b2_ref[...]   # (1, 128) f32
    lane = jax.lax.broadcasted_iota(jnp.int32, logits.shape, 1)
    valid = lane < NUM_CLASSES
    lm = jnp.where(valid, logits, -1e30)
    m = jnp.max(lm, axis=-1, keepdims=True)
    lse = m + jnp.log(jnp.sum(jnp.exp(lm - m), axis=-1, keepdims=True))
    o_ref[0] = jnp.where(valid, logits - lse, 0.0).astype(o_ref.dtype)


# ----------------------------------------------------------------------------
# Host-side weight packing (numpy, done once, outside jit)
# ----------------------------------------------------------------------------
def _toeplitz_conv(w, w_in):
    """Torch conv weight (Cout, Cin, KH, KW) -> (KH, W_in*Cin, Wo*Cout) so that
    conv_out[ho, wo*Cout+co] = sum_ky (A[ky+ho, :] @ T[ky]) for a (H, W_in*Cin)
    activation slab A laid out w-major / c-minor along lanes."""
    w = np.asarray(w, np.float32)
    cout, cin, kh, kw = w.shape
    wo = w_in - kw + 1
    t = np.zeros((kh, w_in * cin, wo * cout), np.float32)
    for ky in range(kh):
        for kx in range(kw):
            blk = w[:, :, ky, kx].T                        # (Cin, Cout)
            for o in range(wo):
                r0 = (o + kx) * cin
                t[ky, r0:r0 + cin, o * cout:(o + 1) * cout] = blk
    return t


def _pool_row_select(h):
    r = np.zeros((2, h // 2, h), np.float32)
    for p in range(2):
        for i in range(h // 2):
            r[p, i, 2 * i + p] = 1.0
    return r


def _pool_col_select(w, c):
    s = np.zeros((2, w * c, (w // 2) * c), np.float32)
    eye = np.eye(c, dtype=np.float32)
    for p in range(2):
        for j in range(w // 2):
            s[p, (2 * j + p) * c:(2 * j + p) * c + c, j * c:(j + 1) * c] = eye
    return s


def pack_params(params):
    """Repack torch-layout weights into the lane-dense layouts the kernel uses."""
    bf16, f32 = jnp.bfloat16, jnp.float32
    p = {k: np.asarray(v, np.float32) for k, v in params.items()}

    packed = {
        # conv1: 28 -> 24, Cin=1, Cout=20
        "t1": jnp.asarray(_toeplitz_conv(p["conv1_w"], 28), bf16),      # (5, 28, 480)
        "b1c": jnp.asarray(np.tile(p["conv1_b"], 24)[None, :], f32),    # (1, 480)
        "p1r": jnp.asarray(_pool_row_select(24), bf16),                 # (2, 12, 24)
        "p1c": jnp.asarray(_pool_col_select(24, 20), bf16),             # (2, 480, 240)
        # conv2: 12 -> 10, Cin=20, Cout=50
        "t2": jnp.asarray(_toeplitz_conv(p["conv2_w"], 12), bf16),      # (3, 240, 500)
        "b2c": jnp.asarray(np.tile(p["conv2_b"], 10)[None, :], f32),    # (1, 500)
        "p2r": jnp.asarray(_pool_row_select(10), bf16),                 # (2, 5, 10)
        "p2c": jnp.asarray(_pool_col_select(10, 50), bf16),             # (2, 500, 250)
        # conv3: 5 -> 3, Cin=50, Cout=64
        "t3": jnp.asarray(_toeplitz_conv(p["conv3_w"], 5), bf16),       # (3, 250, 192)
        "b3c": jnp.asarray(np.tile(p["conv3_b"], 3)[None, :], f32),     # (1, 192)
    }
    # fc1: torch flattens (c, h, w); our slab layout is (h, w*c) -> permute cols.
    w1 = p["linear1_w"].reshape(128, 64, 3, 3)              # (out, c, h, w)
    w1 = np.transpose(w1, (2, 3, 1, 0)).reshape(3, 3 * 64, 128)  # (h, w*c, out)
    packed["w1"] = jnp.asarray(w1, bf16)
    packed["b1"] = jnp.asarray(p["linear1_b"][None, :], f32)            # (1, 128)
    # fc2: pad classes 47 -> 128 lanes (padded lanes masked in-kernel).
    w2 = np.zeros((128, PAD_CLASSES), np.float32)
    w2[:, :NUM_CLASSES] = p["linear2_w"].T
    b2 = np.zeros((1, PAD_CLASSES), np.float32)
    b2[0, :NUM_CLASSES] = p["linear2_b"]
    packed["w2"] = jnp.asarray(w2, bf16)
    packed["b2"] = jnp.asarray(b2, f32)
    return packed


_WEIGHT_ORDER = ("t1", "b1c", "p1r", "p1c",
                 "t2", "b2c", "p2r", "p2c",
                 "t3", "b3c",
                 "w1", "b1", "w2", "b2")


def _resident_spec(arr):
    nd = arr.ndim
    return pl.BlockSpec(arr.shape, lambda b, _nd=nd: (0,) * _nd)


# ----------------------------------------------------------------------------
# Forward wrapper (single pallas_call, grid over batch)
# ----------------------------------------------------------------------------
def lenet_forward(packed, x_nchw):
    """Fused LeNet forward (eval mode).  x_nchw: (N, 1, 28, 28) -> (N, 47) log-probs."""
    n = x_nchw.shape[0]
    x = x_nchw.reshape(n, 28, 28).astype(jnp.float32)
    weights = [packed[k] for k in _WEIGHT_ORDER]

    flops = 2 * (24 * 28 * 480 * 5 + 2 * 12 * 24 * 480 + 2 * 12 * 480 * 240
                 + 10 * 240 * 500 * 3 + 2 * 5 * 10 * 500 + 2 * 5 * 500 * 250
                 + 3 * 250 * 192 * 3 + 3 * 192 * 128 + 128 * 128) * n
    bytes_accessed = (x.size * 4
                      + sum(w.size * w.dtype.itemsize for w in weights)
                      + n * PAD_CLASSES * 4)

    out = pl.pallas_call(
        _lenet_fused_kernel,
        out_shape=jax.ShapeDtypeStruct((n, 1, PAD_CLASSES), jnp.float32),
        grid=(n,),
        in_specs=[pl.BlockSpec((1, 28, 28), lambda b: (b, 0, 0))]
                 + [_resident_spec(w) for w in weights],
        out_specs=pl.BlockSpec((1, 1, PAD_CLASSES), lambda b: (b, 0, 0)),
        compiler_params=pltpu.CompilerParams(
            dimension_semantics=("parallel",),
            vmem_limit_bytes=32 * 1024 * 1024),
        cost_estimate=pl.CostEstimate(flops=flops, transcendentals=129 * n,
                                      bytes_accessed=bytes_accessed),
    )(x, *weights)
    return out[:, 0, :NUM_CLASSES]


# ----------------------------------------------------------------------------
# Pure-JAX reference (for correctness check) and parameter init
# ----------------------------------------------------------------------------
def lenet_reference(params, x_nchw):
    x = x_nchw.astype(jnp.float32)

    def conv(z, w, b):
        y = jax.lax.conv_general_dilated(
            z, w, window_strides=(1, 1), padding="VALID",
            dimension_numbers=("NCHW", "OIHW", "NCHW"))
        return jax.nn.relu(y + b[None, :, None, None])

    def pool(z):
        return jax.lax.reduce_window(z, -jnp.inf, jax.lax.max,
                                     (1, 1, 2, 2), (1, 1, 2, 2), "VALID")

    out = conv(x, params["conv1_w"], params["conv1_b"])
    out = pool(out)
    out = conv(out, params["conv2_w"], params["conv2_b"])
    out = pool(out)
    out = conv(out, params["conv3_w"], params["conv3_b"])
    flat = out.reshape(out.shape[0], 64 * 3 * 3)
    h1 = jax.nn.relu(flat @ params["linear1_w"].T + params["linear1_b"])
    logits = h1 @ params["linear2_w"].T + params["linear2_b"]
    return jax.nn.log_softmax(logits, axis=1)


def init_params(key):
    ks = jax.random.split(key, 10)
    norm = lambda k, shp, s: (jax.random.normal(k, shp, jnp.float32) * s)
    return {
        "conv1_w": norm(ks[0], (20, 1, 5, 5), 0.1),
        "conv1_b": norm(ks[1], (20,), 0.1),
        "conv2_w": norm(ks[2], (50, 20, 3, 3), 0.05),
        "conv2_b": norm(ks[3], (50,), 0.05),
        "conv3_w": norm(ks[4], (64, 50, 3, 3), 0.05),
        "conv3_b": norm(ks[5], (64,), 0.05),
        "linear1_w": norm(ks[6], (128, 576), 0.05),  # torch Linear: (out, in)
        "linear1_b": norm(ks[7], (128,), 0.05),
        "linear2_w": norm(ks[8], (47, 128), 0.05),
        "linear2_b": norm(ks[9], (47,), 0.05),
    }


# ----------------------------------------------------------------------------
if __name__ == "__main__":
    key = jax.random.PRNGKey(0)
    k_params, k_x = jax.random.split(key)
    params = init_params(k_params)
    # EMNIST-style input: batch=2, 1 channel, 28x28 (required by the 3*3*64 view).
    x = jax.random.normal(k_x, (2, 1, 28, 28), jnp.float32)

    packed = pack_params(params)
    out = jax.jit(lenet_forward)(packed, x)
    out = jax.block_until_ready(out)

    assert out.shape == (2, NUM_CLASSES), out.shape
    # log_softmax rows should sum to ~1 after exp
    row_sums = jnp.exp(out).sum(axis=1)
    assert jnp.allclose(row_sums, 1.0, atol=1e-3), row_sums

    # Numerical check vs. pure-JAX reference (bf16 MXU operands => loose tol).
    ref = lenet_reference(params, x)
    max_err = jnp.max(jnp.abs(out - ref))
    assert jnp.allclose(out, ref, atol=3e-2, rtol=3e-2), f"max abs err={max_err}"

    print("KERNEL_OK")
</pallas_src>

<mosaic_0001>
module attributes {stable_mosaic.version = 11 : i64} {
  func.func @_lenet_fused_kernel(%arg0: i32, %arg1: memref<1x28x28xf32, #tpu.memory_space<vmem>>, %arg2: memref<5x28x480xbf16, #tpu.memory_space<vmem>>, %arg3: memref<1x480xf32, #tpu.memory_space<vmem>>, %arg4: memref<2x12x24xbf16, #tpu.memory_space<vmem>>, %arg5: memref<2x480x240xbf16, #tpu.memory_space<vmem>>, %arg6: memref<3x240x500xbf16, #tpu.memory_space<vmem>>, %arg7: memref<1x500xf32, #tpu.memory_space<vmem>>, %arg8: memref<2x5x10xbf16, #tpu.memory_space<vmem>>, %arg9: memref<2x500x250xbf16, #tpu.memory_space<vmem>>, %arg10: memref<3x250x192xbf16, #tpu.memory_space<vmem>>, %arg11: memref<1x192xf32, #tpu.memory_space<vmem>>, %arg12: memref<3x192x128xbf16, #tpu.memory_space<vmem>>, %arg13: memref<1x128xf32, #tpu.memory_space<vmem>>, %arg14: memref<128x128xbf16, #tpu.memory_space<vmem>>, %arg15: memref<1x128xf32, #tpu.memory_space<vmem>>, %arg16: memref<1x1x128xf32, #tpu.memory_space<vmem>>) attributes {dimension_semantics = [#tpu.dimension_semantics<parallel>], iteration_bounds = array<i64: 2>, scalar_prefetch = 0 : i64, scratch_operands = 0 : i64, tpu.core_type = #tpu.core_type<tc>, window_params = [{transform_indices = @transform_0, window_bounds = array<i64: 1, 28, 28>}, {pipeline_mode = #tpu.pipeline_mode<synchronous>, transform_indices = @transform_1, window_bounds = array<i64: 5, 28, 480>}, {pipeline_mode = #tpu.pipeline_mode<synchronous>, transform_indices = @transform_2, window_bounds = array<i64: 1, 480>}, {pipeline_mode = #tpu.pipeline_mode<synchronous>, transform_indices = @transform_3, window_bounds = array<i64: 2, 12, 24>}, {pipeline_mode = #tpu.pipeline_mode<synchronous>, transform_indices = @transform_4, window_bounds = array<i64: 2, 480, 240>}, {pipeline_mode = #tpu.pipeline_mode<synchronous>, transform_indices = @transform_5, window_bounds = array<i64: 3, 240, 500>}, {pipeline_mode = #tpu.pipeline_mode<synchronous>, transform_indices = @transform_6, window_bounds = array<i64: 1, 500>}, {pipeline_mode = #tpu.pipeline_mode<synchronous>, transform_indices = @transform_7, window_bounds = array<i64: 2, 5, 10>}, {pipeline_mode = #tpu.pipeline_mode<synchronous>, transform_indices = @transform_8, window_bounds = array<i64: 2, 500, 250>}, {pipeline_mode = #tpu.pipeline_mode<synchronous>, transform_indices = @transform_9, window_bounds = array<i64: 3, 250, 192>}, {pipeline_mode = #tpu.pipeline_mode<synchronous>, transform_indices = @transform_10, window_bounds = array<i64: 1, 192>}, {pipeline_mode = #tpu.pipeline_mode<synchronous>, transform_indices = @transform_11, window_bounds = array<i64: 3, 192, 128>}, {pipeline_mode = #tpu.pipeline_mode<synchronous>, transform_indices = @transform_12, window_bounds = array<i64: 1, 128>}, {pipeline_mode = #tpu.pipeline_mode<synchronous>, transform_indices = @transform_13, window_bounds = array<i64: 128, 128>}, {pipeline_mode = #tpu.pipeline_mode<synchronous>, transform_indices = @transform_14, window_bounds = array<i64: 1, 128>}, {transform_indices = @transform_15, window_bounds = array<i64: 1, 1, 128>}]} {
    %c0 = arith.constant 0 : index
    %c0_0 = arith.constant 0 : index
    %c0_1 = arith.constant 0 : index
    %0 = vector.load %arg1[%c0, %c0_0, %c0_1] : memref<1x28x28xf32, #tpu.memory_space<vmem>>, vector<1x28x28xf32>
    %1 = vector.shape_cast %0 : vector<1x28x28xf32> to vector<28x28xf32>
    %c0_2 = arith.constant 0 : index
    %c0_3 = arith.constant 0 : index
    %2 = vector.load %arg3[%c0_2, %c0_3] : memref<1x480xf32, #tpu.memory_space<vmem>>, vector<1x480xf32>
    %3 = vector.extract_strided_slice %1 {offsets = [0, 0], sizes = [24, 28], strides = [1, 1]} : vector<28x28xf32> to vector<24x28xf32>
    %4 = arith.truncf %3 : vector<24x28xf32> to vector<24x28xbf16>
    %c0_4 = arith.constant 0 : index
    %c0_5 = arith.constant 0 : index
    %c0_6 = arith.constant 0 : index
    %5 = vector.load %arg2[%c0_4, %c0_5, %c0_6] : memref<5x28x480xbf16, #tpu.memory_space<vmem>>, vector<1x28x480xbf16>
    %6 = vector.shape_cast %5 : vector<1x28x480xbf16> to vector<28x480xbf16>
    %cst = arith.constant dense<0.000000e+00> : vector<24x480xf32>
    %7 = tpu.matmul %4, %6, %cst {dimension_numbers = #tpu.dot_dimension_numbers<[1], [0], [0], [1], [0, 0, 1, 1], [], []>} : vector<24x28xbf16>, vector<28x480xbf16>, vector<24x480xf32> -> vector<24x480xf32>
    %8 = vector.broadcast %2 : vector<1x480xf32> to vector<24x480xf32>
    %9 = arith.addf %8, %7 : vector<24x480xf32>
    %10 = vector.extract_strided_slice %1 {offsets = [1, 0], sizes = [24, 28], strides = [1, 1]} : vector<28x28xf32> to vector<24x28xf32>
    %11 = arith.truncf %10 : vector<24x28xf32> to vector<24x28xbf16>
    %c1 = arith.constant 1 : index
    %c0_7 = arith.constant 0 : index
    %c0_8 = arith.constant 0 : index
    %12 = vector.load %arg2[%c1, %c0_7, %c0_8] : memref<5x28x480xbf16, #tpu.memory_space<vmem>>, vector<1x28x480xbf16>
    %13 = vector.shape_cast %12 : vector<1x28x480xbf16> to vector<28x480xbf16>
    %cst_9 = arith.constant dense<0.000000e+00> : vector<24x480xf32>
    %14 = tpu.matmul %11, %13, %cst_9 {dimension_numbers = #tpu.dot_dimension_numbers<[1], [0], [0], [1], [0, 0, 1, 1], [], []>} : vector<24x28xbf16>, vector<28x480xbf16>, vector<24x480xf32> -> vector<24x480xf32>
    %15 = arith.addf %9, %14 : vector<24x480xf32>
    %16 = vector.extract_strided_slice %1 {offsets = [2, 0], sizes = [24, 28], strides = [1, 1]} : vector<28x28xf32> to vector<24x28xf32>
    %17 = arith.truncf %16 : vector<24x28xf32> to vector<24x28xbf16>
    %c2 = arith.constant 2 : index
    %c0_10 = arith.constant 0 : index
    %c0_11 = arith.constant 0 : index
    %18 = vector.load %arg2[%c2, %c0_10, %c0_11] : memref<5x28x480xbf16, #tpu.memory_space<vmem>>, vector<1x28x480xbf16>
    %19 = vector.shape_cast %18 : vector<1x28x480xbf16> to vector<28x480xbf16>
    %cst_12 = arith.constant dense<0.000000e+00> : vector<24x480xf32>
    %20 = tpu.matmul %17, %19, %cst_12 {dimension_numbers = #tpu.dot_dimension_numbers<[1], [0], [0], [1], [0, 0, 1, 1], [], []>} : vector<24x28xbf16>, vector<28x480xbf16>, vector<24x480xf32> -> vector<24x480xf32>
    %21 = arith.addf %15, %20 : vector<24x480xf32>
    %22 = vector.extract_strided_slice %1 {offsets = [3, 0], sizes = [24, 28], strides = [1, 1]} : vector<28x28xf32> to vector<24x28xf32>
    %23 = arith.truncf %22 : vector<24x28xf32> to vector<24x28xbf16>
    %c3 = arith.constant 3 : index
    %c0_13 = arith.constant 0 : index
    %c0_14 = arith.constant 0 : index
    %24 = vector.load %arg2[%c3, %c0_13, %c0_14] : memref<5x28x480xbf16, #tpu.memory_space<vmem>>, vector<1x28x480xbf16>
    %25 = vector.shape_cast %24 : vector<1x28x480xbf16> to vector<28x480xbf16>
    %cst_15 = arith.constant dense<0.000000e+00> : vector<24x480xf32>
    %26 = tpu.matmul %23, %25, %cst_15 {dimension_numbers = #tpu.dot_dimension_numbers<[1], [0], [0], [1], [0, 0, 1, 1], [], []>} : vector<24x28xbf16>, vector<28x480xbf16>, vector<24x480xf32> -> vector<24x480xf32>
    %27 = arith.addf %21, %26 : vector<24x480xf32>
    %28 = vector.extract_strided_slice %1 {offsets = [4, 0], sizes = [24, 28], strides = [1, 1]} : vector<28x28xf32> to vector<24x28xf32>
    %29 = arith.truncf %28 : vector<24x28xf32> to vector<24x28xbf16>
    %c4 = arith.constant 4 : index
    %c0_16 = arith.constant 0 : index
    %c0_17 = arith.constant 0 : index
    %30 = vector.load %arg2[%c4, %c0_16, %c0_17] : memref<5x28x480xbf16, #tpu.memory_space<vmem>>, vector<1x28x480xbf16>
    %31 = vector.shape_cast %30 : vector<1x28x480xbf16> to vector<28x480xbf16>
    %cst_18 = arith.constant dense<0.000000e+00> : vector<24x480xf32>
    %32 = tpu.matmul %29, %31, %cst_18 {dimension_numbers = #tpu.dot_dimension_numbers<[1], [0], [0], [1], [0, 0, 1, 1], [], []>} : vector<24x28xbf16>, vector<28x480xbf16>, vector<24x480xf32> -> vector<24x480xf32>
    %33 = arith.addf %27, %32 : vector<24x480xf32>
    %cst_19 = arith.constant 0.000000e+00 : f32
    %34 = vector.broadcast %cst_19 : f32 to vector<24x480xf32>
    %35 = arith.maximumf %33, %34 : vector<24x480xf32>
    %36 = arith.truncf %35 : vector<24x480xf32> to vector<24x480xbf16>
    %c0_20 = arith.constant 0 : index
    %c0_21 = arith.constant 0 : index
    %c0_22 = arith.constant 0 : index
    %37 = vector.load %arg4[%c0_20, %c0_21, %c0_22] : memref<2x12x24xbf16, #tpu.memory_space<vmem>>, vector<1x12x24xbf16>
    %38 = vector.shape_cast %37 : vector<1x12x24xbf16> to vector<12x24xbf16>
    %cst_23 = arith.constant dense<0.000000e+00> : vector<12x480xf32>
    %39 = tpu.matmul %38, %36, %cst_23 {dimension_numbers = #tpu.dot_dimension_numbers<[1], [0], [0], [1], [0, 0, 1, 1], [], []>} : vector<12x24xbf16>, vector<24x480xbf16>, vector<12x480xf32> -> vector<12x480xf32>
    %c1_24 = arith.constant 1 : index
    %c0_25 = arith.constant 0 : index
    %c0_26 = arith.constant 0 : index
    %40 = vector.load %arg4[%c1_24, %c0_25, %c0_26] : memref<2x12x24xbf16, #tpu.memory_space<vmem>>, vector<1x12x24xbf16>
    %41 = vector.shape_cast %40 : vector<1x12x24xbf16> to vector<12x24xbf16>
    %cst_27 = arith.constant dense<0.000000e+00> : vector<12x480xf32>
    %42 = tpu.matmul %41, %36, %cst_27 {dimension_numbers = #tpu.dot_dimension_numbers<[1], [0], [0], [1], [0, 0, 1, 1], [], []>} : vector<12x24xbf16>, vector<24x480xbf16>, vector<12x480xf32> -> vector<12x480xf32>
    %43 = arith.maximumf %39, %42 : vector<12x480xf32>
    %44 = arith.truncf %43 : vector<12x480xf32> to vector<12x480xbf16>
    %c0_28 = arith.constant 0 : index
    %c0_29 = arith.constant 0 : index
    %c0_30 = arith.constant 0 : index
    %45 = vector.load %arg5[%c0_28, %c0_29, %c0_30] : memref<2x480x240xbf16, #tpu.memory_space<vmem>>, vector<1x480x240xbf16>
    %46 = vector.shape_cast %45 : vector<1x480x240xbf16> to vector<480x240xbf16>
    %cst_31 = arith.constant dense<0.000000e+00> : vector<12x240xf32>
    %47 = tpu.matmul %44, %46, %cst_31 {dimension_numbers = #tpu.dot_dimension_numbers<[1], [0], [0], [1], [0, 0, 1, 1], [], []>} : vector<12x480xbf16>, vector<480x240xbf16>, vector<12x240xf32> -> vector<12x240xf32>
    %c1_32 = arith.constant 1 : index
    %c0_33 = arith.constant 0 : index
    %c0_34 = arith.constant 0 : index
    %48 = vector.load %arg5[%c1_32, %c0_33, %c0_34] : memref<2x480x240xbf16, #tpu.memory_space<vmem>>, vector<1x480x240xbf16>
    %49 = vector.shape_cast %48 : vector<1x480x240xbf16> to vector<480x240xbf16>
    %cst_35 = arith.constant dense<0.000000e+00> : vector<12x240xf32>
    %50 = tpu.matmul %44, %49, %cst_35 {dimension_numbers = #tpu.dot_dimension_numbers<[1], [0], [0], [1], [0, 0, 1, 1], [], []>} : vector<12x480xbf16>, vector<480x240xbf16>, vector<12x240xf32> -> vector<12x240xf32>
    %51 = arith.maximumf %47, %50 : vector<12x240xf32>
    %c0_36 = arith.constant 0 : index
    %c0_37 = arith.constant 0 : index
    %52 = vector.load %arg7[%c0_36, %c0_37] : memref<1x500xf32, #tpu.memory_space<vmem>>, vector<1x500xf32>
    %53 = vector.extract_strided_slice %51 {offsets = [0, 0], sizes = [10, 240], strides = [1, 1]} : vector<12x240xf32> to vector<10x240xf32>
    %54 = arith.truncf %53 : vector<10x240xf32> to vector<10x240xbf16>
    %c0_38 = arith.constant 0 : index
    %c0_39 = arith.constant 0 : index
    %c0_40 = arith.constant 0 : index
    %55 = vector.load %arg6[%c0_38, %c0_39, %c0_40] : memref<3x240x500xbf16, #tpu.memory_space<vmem>>, vector<1x240x500xbf16>
    %56 = vector.shape_cast %55 : vector<1x240x500xbf16> to vector<240x500xbf16>
    %cst_41 = arith.constant dense<0.000000e+00> : vector<10x500xf32>
    %57 = tpu.matmul %54, %56, %cst_41 {dimension_numbers = #tpu.dot_dimension_numbers<[1], [0], [0], [1], [0, 0, 1, 1], [], []>} : vector<10x240xbf16>, vector<240x500xbf16>, vector<10x500xf32> -> vector<10x500xf32>
    %58 = vector.broadcast %52 : vector<1x500xf32> to vector<10x500xf32>
    %59 = arith.addf %58, %57 : vector<10x500xf32>
    %60 = vector.extract_strided_slice %51 {offsets = [1, 0], sizes = [10, 240], strides = [1, 1]} : vector<12x240xf32> to vector<10x240xf32>
    %61 = arith.truncf %60 : vector<10x240xf32> to vector<10x240xbf16>
    %c1_42 = arith.constant 1 : index
    %c0_43 = arith.constant 0 : index
    %c0_44 = arith.constant 0 : index
    %62 = vector.load %arg6[%c1_42, %c0_43, %c0_44] : memref<3x240x500xbf16, #tpu.memory_space<vmem>>, vector<1x240x500xbf16>
    %63 = vector.shape_cast %62 : vector<1x240x500xbf16> to vector<240x500xbf16>
    %cst_45 = arith.constant dense<0.000000e+00> : vector<10x500xf32>
    %64 = tpu.matmul %61, %63, %cst_45 {dimension_numbers = #tpu.dot_dimension_numbers<[1], [0], [0], [1], [0, 0, 1, 1], [], []>} : vector<10x240xbf16>, vector<240x500xbf16>, vector<10x500xf32> -> vector<10x500xf32>
    %65 = arith.addf %59, %64 : vector<10x500xf32>
    %66 = vector.extract_strided_slice %51 {offsets = [2, 0], sizes = [10, 240], strides = [1, 1]} : vector<12x240xf32> to vector<10x240xf32>
    %67 = arith.truncf %66 : vector<10x240xf32> to vector<10x240xbf16>
    %c2_46 = arith.constant 2 : index
    %c0_47 = arith.constant 0 : index
    %c0_48 = arith.constant 0 : index
    %68 = vector.load %arg6[%c2_46, %c0_47, %c0_48] : memref<3x240x500xbf16, #tpu.memory_space<vmem>>, vector<1x240x500xbf16>
    %69 = vector.shape_cast %68 : vector<1x240x500xbf16> to vector<240x500xbf16>
    %cst_49 = arith.constant dense<0.000000e+00> : vector<10x500xf32>
    %70 = tpu.matmul %67, %69, %cst_49 {dimension_numbers = #tpu.dot_dimension_numbers<[1], [0], [0], [1], [0, 0, 1, 1], [], []>} : vector<10x240xbf16>, vector<240x500xbf16>, vector<10x500xf32> -> vector<10x500xf32>
    %71 = arith.addf %65, %70 : vector<10x500xf32>
    %cst_50 = arith.constant 0.000000e+00 : f32
    %72 = vector.broadcast %cst_50 : f32 to vector<10x500xf32>
    %73 = arith.maximumf %71, %72 : vector<10x500xf32>
    %74 = arith.truncf %73 : vector<10x500xf32> to vector<10x500xbf16>
    %c0_51 = arith.constant 0 : index
    %c0_52 = arith.constant 0 : index
    %c0_53 = arith.constant 0 : index
    %75 = vector.load %arg8[%c0_51, %c0_52, %c0_53] : memref<2x5x10xbf16, #tpu.memory_space<vmem>>, vector<1x5x10xbf16>
    %76 = vector.shape_cast %75 : vector<1x5x10xbf16> to vector<5x10xbf16>
    %cst_54 = arith.constant dense<0.000000e+00> : vector<5x500xf32>
    %77 = tpu.matmul %76, %74, %cst_54 {dimension_numbers = #tpu.dot_dimension_numbers<[1], [0], [0], [1], [0, 0, 1, 1], [], []>} : vector<5x10xbf16>, vector<10x500xbf16>, vector<5x500xf32> -> vector<5x500xf32>
    %c1_55 = arith.constant 1 : index
    %c0_56 = arith.constant 0 : index
    %c0_57 = arith.constant 0 : index
    %78 = vector.load %arg8[%c1_55, %c0_56, %c0_57] : memref<2x5x10xbf16, #tpu.memory_space<vmem>>, vector<1x5x10xbf16>
    %79 = vector.shape_cast %78 : vector<1x5x10xbf16> to vector<5x10xbf16>
    %cst_58 = arith.constant dense<0.000000e+00> : vector<5x500xf32>
    %80 = tpu.matmul %79, %74, %cst_58 {dimension_numbers = #tpu.dot_dimension_numbers<[1], [0], [0], [1], [0, 0, 1, 1], [], []>} : vector<5x10xbf16>, vector<10x500xbf16>, vector<5x500xf32> -> vector<5x500xf32>
    %81 = arith.maximumf %77, %80 : vector<5x500xf32>
    %82 = arith.truncf %81 : vector<5x500xf32> to vector<5x500xbf16>
    %c0_59 = arith.constant 0 : index
    %c0_60 = arith.constant 0 : index
    %c0_61 = arith.constant 0 : index
    %83 = vector.load %arg9[%c0_59, %c0_60, %c0_61] : memref<2x500x250xbf16, #tpu.memory_space<vmem>>, vector<1x500x250xbf16>
    %84 = vector.shape_cast %83 : vector<1x500x250xbf16> to vector<500x250xbf16>
    %cst_62 = arith.constant dense<0.000000e+00> : vector<5x250xf32>
    %85 = tpu.matmul %82, %84, %cst_62 {dimension_numbers = #tpu.dot_dimension_numbers<[1], [0], [0], [1], [0, 0, 1, 1], [], []>} : vector<5x500xbf16>, vector<500x250xbf16>, vector<5x250xf32> -> vector<5x250xf32>
    %c1_63 = arith.constant 1 : index
    %c0_64 = arith.constant 0 : index
    %c0_65 = arith.constant 0 : index
    %86 = vector.load %arg9[%c1_63, %c0_64, %c0_65] : memref<2x500x250xbf16, #tpu.memory_space<vmem>>, vector<1x500x250xbf16>
    %87 = vector.shape_cast %86 : vector<1x500x250xbf16> to vector<500x250xbf16>
    %cst_66 = arith.constant dense<0.000000e+00> : vector<5x250xf32>
    %88 = tpu.matmul %82, %87, %cst_66 {dimension_numbers = #tpu.dot_dimension_numbers<[1], [0], [0], [1], [0, 0, 1, 1], [], []>} : vector<5x500xbf16>, vector<500x250xbf16>, vector<5x250xf32> -> vector<5x250xf32>
    %89 = arith.maximumf %85, %88 : vector<5x250xf32>
    %c0_67 = arith.constant 0 : index
    %c0_68 = arith.constant 0 : index
    %90 = vector.load %arg11[%c0_67, %c0_68] : memref<1x192xf32, #tpu.memory_space<vmem>>, vector<1x192xf32>
    %91 = vector.extract_strided_slice %89 {offsets = [0, 0], sizes = [3, 250], strides = [1, 1]} : vector<5x250xf32> to vector<3x250xf32>
    %92 = arith.truncf %91 : vector<3x250xf32> to vector<3x250xbf16>
    %c0_69 = arith.constant 0 : index
    %c0_70 = arith.constant 0 : index
    %c0_71 = arith.constant 0 : index
    %93 = vector.load %arg10[%c0_69, %c0_70, %c0_71] : memref<3x250x192xbf16, #tpu.memory_space<vmem>>, vector<1x250x192xbf16>
    %94 = vector.shape_cast %93 : vector<1x250x192xbf16> to vector<250x192xbf16>
    %cst_72 = arith.constant dense<0.000000e+00> : vector<3x192xf32>
    %95 = tpu.matmul %92, %94, %cst_72 {dimension_numbers = #tpu.dot_dimension_numbers<[1], [0], [0], [1], [0, 0, 1, 1], [], []>} : vector<3x250xbf16>, vector<250x192xbf16>, vector<3x192xf32> -> vector<3x192xf32>
    %96 = vector.broadcast %90 : vector<1x192xf32> to vector<3x192xf32>
    %97 = arith.addf %96, %95 : vector<3x192xf32>
    %98 = vector.extract_strided_slice %89 {offsets = [1, 0], sizes = [3, 250], strides = [1, 1]} : vector<5x250xf32> to vector<3x250xf32>
    %99 = arith.truncf %98 : vector<3x250xf32> to vector<3x250xbf16>
    %c1_73 = arith.constant 1 : index
    %c0_74 = arith.constant 0 : index
    %c0_75 = arith.constant 0 : index
    %100 = vector.load %arg10[%c1_73, %c0_74, %c0_75] : memref<3x250x192xbf16, #tpu.memory_space<vmem>>, vector<1x250x192xbf16>
    %101 = vector.shape_cast %100 : vector<1x250x192xbf16> to vector<250x192xbf16>
    %cst_76 = arith.constant dense<0.000000e+00> : vector<3x192xf32>
    %102 = tpu.matmul %99, %101, %cst_76 {dimension_numbers = #tpu.dot_dimension_numbers<[1], [0], [0], [1], [0, 0, 1, 1], [], []>} : vector<3x250xbf16>, vector<250x192xbf16>, vector<3x192xf32> -> vector<3x192xf32>
    %103 = arith.addf %97, %102 : vector<3x192xf32>
    %104 = vector.extract_strided_slice %89 {offsets = [2, 0], sizes = [3, 250], strides = [1, 1]} : vector<5x250xf32> to vector<3x250xf32>
    %105 = arith.truncf %104 : vector<3x250xf32> to vector<3x250xbf16>
    %c2_77 = arith.constant 2 : index
    %c0_78 = arith.constant 0 : index
    %c0_79 = arith.constant 0 : index
    %106 = vector.load %arg10[%c2_77, %c0_78, %c0_79] : memref<3x250x192xbf16, #tpu.memory_space<vmem>>, vector<1x250x192xbf16>
    %107 = vector.shape_cast %106 : vector<1x250x192xbf16> to vector<250x192xbf16>
    %cst_80 = arith.constant dense<0.000000e+00> : vector<3x192xf32>
    %108 = tpu.matmul %105, %107, %cst_80 {dimension_numbers = #tpu.dot_dimension_numbers<[1], [0], [0], [1], [0, 0, 1, 1], [], []>} : vector<3x250xbf16>, vector<250x192xbf16>, vector<3x192xf32> -> vector<3x192xf32>
    %109 = arith.addf %103, %108 : vector<3x192xf32>
    %cst_81 = arith.constant 0.000000e+00 : f32
    %110 = vector.broadcast %cst_81 : f32 to vector<3x192xf32>
    %111 = arith.maximumf %109, %110 : vector<3x192xf32>
    %c0_82 = arith.constant 0 : index
    %c0_83 = arith.constant 0 : index
    %112 = vector.load %arg13[%c0_82, %c0_83] : memref<1x128xf32, #tpu.memory_space<vmem>>, vector<1x128xf32>
    %113 = vector.extract_strided_slice %111 {offsets = [0, 0], sizes = [1, 192], strides = [1, 1]} : vector<3x192xf32> to vector<1x192xf32>
    %114 = arith.truncf %113 : vector<1x192xf32> to vector<1x192xbf16>
    %c0_84 = arith.constant 0 : index
    %c0_85 = arith.constant 0 : index
    %c0_86 = arith.constant 0 : index
    %115 = vector.load %arg12[%c0_84, %c0_85, %c0_86] : memref<3x192x128xbf16, #tpu.memory_space<vmem>>, vector<1x192x128xbf16>
    %116 = vector.shape_cast %115 : vector<1x192x128xbf16> to vector<192x128xbf16>
    %cst_87 = arith.constant dense<0.000000e+00> : vector<1x128xf32>
    %117 = tpu.matmul %114, %116, %cst_87 {dimension_numbers = #tpu.dot_dimension_numbers<[1], [0], [0], [1], [0, 0, 1, 1], [], []>} : vector<1x192xbf16>, vector<192x128xbf16>, vector<1x128xf32> -> vector<1x128xf32>
    %118 = arith.addf %112, %117 : vector<1x128xf32>
    %119 = vector.extract_strided_slice %111 {offsets = [1, 0], sizes = [1, 192], strides = [1, 1]} : vector<3x192xf32> to vector<1x192xf32>
    %120 = arith.truncf %119 : vector<1x192xf32> to vector<1x192xbf16>
    %c1_88 = arith.constant 1 : index
    %c0_89 = arith.constant 0 : index
    %c0_90 = arith.constant 0 : index
    %121 = vector.load %arg12[%c1_88, %c0_89, %c0_90] : memref<3x192x128xbf16, #tpu.memory_space<vmem>>, vector<1x192x128xbf16>
    %122 = vector.shape_cast %121 : vector<1x192x128xbf16> to vector<192x128xbf16>
    %cst_91 = arith.constant dense<0.000000e+00> : vector<1x128xf32>
    %123 = tpu.matmul %120, %122, %cst_91 {dimension_numbers = #tpu.dot_dimension_numbers<[1], [0], [0], [1], [0, 0, 1, 1], [], []>} : vector<1x192xbf16>, vector<192x128xbf16>, vector<1x128xf32> -> vector<1x128xf32>
    %124 = arith.addf %118, %123 : vector<1x128xf32>
    %125 = vector.extract_strided_slice %111 {offsets = [2, 0], sizes = [1, 192], strides = [1, 1]} : vector<3x192xf32> to vector<1x192xf32>
    %126 = arith.truncf %125 : vector<1x192xf32> to vector<1x192xbf16>
    %c2_92 = arith.constant 2 : index
    %c0_93 = arith.constant 0 : index
    %c0_94 = arith.constant 0 : index
    %127 = vector.load %arg12[%c2_92, %c0_93, %c0_94] : memref<3x192x128xbf16, #tpu.memory_space<vmem>>, vector<1x192x128xbf16>
    %128 = vector.shape_cast %127 : vector<1x192x128xbf16> to vector<192x128xbf16>
    %cst_95 = arith.constant dense<0.000000e+00> : vector<1x128xf32>
    %129 = tpu.matmul %126, %128, %cst_95 {dimension_numbers = #tpu.dot_dimension_numbers<[1], [0], [0], [1], [0, 0, 1, 1], [], []>} : vector<1x192xbf16>, vector<192x128xbf16>, vector<1x128xf32> -> vector<1x128xf32>
    %130 = arith.addf %124, %129 : vector<1x128xf32>
    %cst_96 = arith.constant 0.000000e+00 : f32
    %131 = vector.broadcast %cst_96 : f32 to vector<1x128xf32>
    %132 = arith.maximumf %130, %131 : vector<1x128xf32>
    %133 = arith.truncf %132 : vector<1x128xf32> to vector<1x128xbf16>
    %c0_97 = arith.constant 0 : index
    %c0_98 = arith.constant 0 : index
    %134 = vector.load %arg14[%c0_97, %c0_98] : memref<128x128xbf16, #tpu.memory_space<vmem>>, vector<128x128xbf16>
    %cst_99 = arith.constant dense<0.000000e+00> : vector<1x128xf32>
    %135 = tpu.matmul %133, %134, %cst_99 {dimension_numbers = #tpu.dot_dimension_numbers<[1], [0], [0], [1], [0, 0, 1, 1], [], []>} : vector<1x128xbf16>, vector<128x128xbf16>, vector<1x128xf32> -> vector<1x128xf32>
    %c0_100 = arith.constant 0 : index
    %c0_101 = arith.constant 0 : index
    %136 = vector.load %arg15[%c0_100, %c0_101] : memref<1x128xf32, #tpu.memory_space<vmem>>, vector<1x128xf32>
    %137 = arith.addf %135, %136 : vector<1x128xf32>
    %138 = tpu.iota {dimensions = array<i32: 1>} : vector<1x128xi32>
    %c47_i32 = arith.constant 47 : i32
    %139 = vector.broadcast %c47_i32 : i32 to vector<1x128xi32>
    %140 = arith.cmpi slt, %138, %139 : vector<1x128xi32>
    %cst_102 = arith.constant -1.000000e+30 : f32
    %141 = vector.broadcast %cst_102 : f32 to vector<1x128xf32>
    %142 = arith.select %140, %137, %141 : vector<1x128xi1>, vector<1x128xf32>
    %cst_103 = arith.constant dense<0xFF800000> : vector<1xf32>
    %143 = vector.multi_reduction <maximumf>, %142, %cst_103 [1] : vector<1x128xf32> to vector<1xf32>
    %144 = vector.shape_cast %143 : vector<1xf32> to vector<1x1xf32>
    %145 = vector.broadcast %144 : vector<1x1xf32> to vector<1x128xf32>
    %146 = arith.subf %142, %145 : vector<1x128xf32>
    %147 = math.exp %146 : vector<1x128xf32>
    %cst_104 = arith.constant dense<0.000000e+00> : vector<1xf32>
    %148 = vector.multi_reduction <add>, %147, %cst_104 [1] : vector<1x128xf32> to vector<1xf32>
    %149 = vector.shape_cast %148 : vector<1xf32> to vector<1x1xf32>
    %150 = math.log %149 : vector<1x1xf32>
    %151 = arith.addf %144, %150 : vector<1x1xf32>
    %152 = vector.broadcast %151 : vector<1x1xf32> to vector<1x128xf32>
    %153 = arith.subf %137, %152 : vector<1x128xf32>
    %cst_105 = arith.constant 0.000000e+00 : f32
    %154 = vector.broadcast %cst_105 : f32 to vector<1x128xf32>
    %155 = arith.select %140, %153, %154 : vector<1x128xi1>, vector<1x128xf32>
    %c0_106 = arith.constant 0 : index
    %c0_107 = arith.constant 0 : index
    %c0_108 = arith.constant 0 : index
    %156 = vector.load %arg16[%c0_106, %c0_107, %c0_108] : memref<1x1x128xf32, #tpu.memory_space<vmem>>, vector<1x1x128xf32>
    %157 = vector.shape_cast %156 : vector<1x1x128xf32> to vector<1x128xf32>
    %158 = vector.shape_cast %155 : vector<1x128xf32> to vector<1x1x128xf32>
    tpu.vector_store %arg16[%c0_106, %c0_107, %c0_108], %158 {strides = array<i32>} : memref<1x1x128xf32, #tpu.memory_space<vmem>>, vector<1x1x128xf32>,
    return
  }
  func.func @transform_0(%arg0: i32) -> (i32, i32, i32) {
    %c0_i32 = arith.constant 0 : i32
    %c0_i32_0 = arith.constant 0 : i32
    %c0_i32_1 = arith.constant 0 : i32
    return %arg0, %c0_i32, %c0_i32_0 : i32, i32, i32
  }
  func.func @transform_1(%arg0: i32) -> (i32, i32, i32) {
    %c0_i32 = arith.constant 0 : i32
    %c0_i32_0 = arith.constant 0 : i32
    %c0_i32_1 = arith.constant 0 : i32
    %c0_i32_2 = arith.constant 0 : i32
    return %c0_i32, %c0_i32_0, %c0_i32_1 : i32, i32, i32
  }
  func.func @transform_2(%arg0: i32) -> (i32, i32) {
    %c0_i32 = arith.constant 0 : i32
    %c0_i32_0 = arith.constant 0 : i32
    %c0_i32_1 = arith.constant 0 : i32
    return %c0_i32, %c0_i32_0 : i32, i32
  }
  func.func @transform_3(%arg0: i32) -> (i32, i32, i32) {
    %c0_i32 = arith.constant 0 : i32
    %c0_i32_0 = arith.constant 0 : i32
    %c0_i32_1 = arith.constant 0 : i32
    %c0_i32_2 = arith.constant 0 : i32
    return %c0_i32, %c0_i32_0, %c0_i32_1 : i32, i32, i32
  }
  func.func @transform_4(%arg0: i32) -> (i32, i32, i32) {
    %c0_i32 = arith.constant 0 : i32
    %c0_i32_0 = arith.constant 0 : i32
    %c0_i32_1 = arith.constant 0 : i32
    %c0_i32_2 = arith.constant 0 : i32
    return %c0_i32, %c0_i32_0, %c0_i32_1 : i32, i32, i32
  }
  func.func @transform_5(%arg0: i32) -> (i32, i32, i32) {
    %c0_i32 = arith.constant 0 : i32
    %c0_i32_0 = arith.constant 0 : i32
    %c0_i32_1 = arith.constant 0 : i32
    %c0_i32_2 = arith.constant 0 : i32
    return %c0_i32, %c0_i32_0, %c0_i32_1 : i32, i32, i32
  }
  func.func @transform_6(%arg0: i32) -> (i32, i32) {
    %c0_i32 = arith.constant 0 : i32
    %c0_i32_0 = arith.constant 0 : i32
    %c0_i32_1 = arith.constant 0 : i32
    return %c0_i32, %c0_i32_0 : i32, i32
  }
  func.func @transform_7(%arg0: i32) -> (i32, i32, i32) {
    %c0_i32 = arith.constant 0 : i32
    %c0_i32_0 = arith.constant 0 : i32
    %c0_i32_1 = arith.constant 0 : i32
    %c0_i32_2 = arith.constant 0 : i32
    return %c0_i32, %c0_i32_0, %c0_i32_1 : i32, i32, i32
  }
  func.func @transform_8(%arg0: i32) -> (i32, i32, i32) {
    %c0_i32 = arith.constant 0 : i32
    %c0_i32_0 = arith.constant 0 : i32
    %c0_i32_1 = arith.constant 0 : i32
    %c0_i32_2 = arith.constant 0 : i32
    return %c0_i32, %c0_i32_0, %c0_i32_1 : i32, i32, i32
  }
  func.func @transform_9(%arg0: i32) -> (i32, i32, i32) {
    %c0_i32 = arith.constant 0 : i32
    %c0_i32_0 = arith.constant 0 : i32
    %c0_i32_1 = arith.constant 0 : i32
    %c0_i32_2 = arith.constant 0 : i32
    return %c0_i32, %c0_i32_0, %c0_i32_1 : i32, i32, i32
  }
  func.func @transform_10(%arg0: i32) -> (i32, i32) {
    %c0_i32 = arith.constant 0 : i32
    %c0_i32_0 = arith.constant 0 : i32
    %c0_i32_1 = arith.constant 0 : i32
    return %c0_i32, %c0_i32_0 : i32, i32
  }
  func.func @transform_11(%arg0: i32) -> (i32, i32, i32) {
    %c0_i32 = arith.constant 0 : i32
    %c0_i32_0 = arith.constant 0 : i32
    %c0_i32_1 = arith.constant 0 : i32
    %c0_i32_2 = arith.constant 0 : i32
    return %c0_i32, %c0_i32_0, %c0_i32_1 : i32, i32, i32
  }
  func.func @transform_12(%arg0: i32) -> (i32, i32) {
    %c0_i32 = arith.constant 0 : i32
    %c0_i32_0 = arith.constant 0 : i32
    %c0_i32_1 = arith.constant 0 : i32
    return %c0_i32, %c0_i32_0 : i32, i32
  }
  func.func @transform_13(%arg0: i32) -> (i32, i32) {
    %c0_i32 = arith.constant 0 : i32
    %c0_i32_0 = arith.constant 0 : i32
    %c0_i32_1 = arith.constant 0 : i32
    return %c0_i32, %c0_i32_0 : i32, i32
  }
  func.func @transform_14(%arg0: i32) -> (i32, i32) {
    %c0_i32 = arith.constant 0 : i32
    %c0_i32_0 = arith.constant 0 : i32
    %c0_i32_1 = arith.constant 0 : i32
    return %c0_i32, %c0_i32_0 : i32, i32
  }
  func.func @transform_15(%arg0: i32) -> (i32, i32, i32) {
    %c0_i32 = arith.constant 0 : i32
    %c0_i32_0 = arith.constant 0 : i32
    %c0_i32_1 = arith.constant 0 : i32
    return %arg0, %c0_i32, %c0_i32_0 : i32, i32, i32
  }
}

</mosaic_0001>

<bundles_post_ra>
// kernel: lenet_forward.1
= control target key start
LH: loop header
LB: loop body
LE: loop exit
PB: predicated region body
PF: predicated region fallthrough
CT: control target
= control target key end

     0   :  { %s13979_s0 = inlined_call_operand.vmem [shape: f32[2,28,28], index: 0, kind: input, shape index: {}]   ;;  %s13980_s1 = inlined_call_operand.hbm [shape: bf16[5,28,480], index: 1, kind: input, shape index: {}]   ;;  %s13981_s2 = inlined_call_operand.vmem [shape: f32[1,480], index: 2, kind: input, shape index: {}]   ;;  %s13982_s3 = inlined_call_operand.vmem [shape: bf16[2,12,24], index: 3, kind: input, shape index: {}]   ;;  %s13983_s4 = inlined_call_operand.vmem [shape: bf16[2,480,240], index: 4, kind: input, shape index: {}]   ;;  %s13984_s5 = inlined_call_operand.vmem [shape: bf16[3,240,500], index: 5, kind: input, shape index: {}]   ;;  %s13985_s6 = inlined_call_operand.vmem [shape: f32[1,500], index: 6, kind: input, shape index: {}]   ;;  %s13986_s7 = inlined_call_operand.vmem [shape: bf16[2,5,10], index: 7, kind: input, shape index: {}]   ;;  %s13987_s8 = inlined_call_operand.vmem [shape: bf16[2,500,250], index: 8, kind: input, shape index: {}]   ;;  %s13988_s9 = inlined_call_operand.vmem [shape: bf16[3,250,192], index: 9, kind: input, shape index: {}]   ;;  %s13989_s10 = inlined_call_operand.vmem [shape: f32[1,192], index: 10, kind: input, shape index: {}]   ;;  %s13990_s11 = inlined_call_operand.hbm [shape: bf16[3,192,128], index: 11, kind: input, shape index: {}]   ;;  %s13991_s12 = inlined_call_operand.vmem [shape: f32[1,128], index: 12, kind: input, shape index: {}]   ;;  %s13992_s13 = inlined_call_operand.vmem [shape: bf16[128,128], index: 13, kind: input, shape index: {}]   ;;  %s13993_s14 = inlined_call_operand.vmem [shape: f32[1,128], index: 14, kind: input, shape index: {}]   ;;  %s13994_s15 = inlined_call_operand.hbm [shape: f32[2,1,128], index: 15, kind: output, shape index: {}]  }
   0x1   :  { %14001 = sst [smem:[#allocation17_spill]] %s13980_s1 }
   0x2   :  { %20 = vsyncpa [#allocation3], 0 }
   0x3   :  { %21 = vsyncpa [#allocation6], 0 }
   0x4   :  { %22 = vsyncpa [#allocation4], 0 }
   0x5   :  { %24 = vsyncpa [#allocation4 + $0x1], 0  ;;  %s10161_s18 = smov 0   ;;  %s10163_s19 = smov 0  }
   0x6   :  { %s10165_s20 = smov 0   ;;  %s10167_s21 = smov 0  }
   0x7 LB: > { %14002 = sst [smem:[#allocation11_spill]] %s10061_s18  ;;  %s10182_s22 = sadd.s32 4294967295, %s10073_s21   ;;  %s10073_s21 = sphi %s10167_s21, %s14015_s21   ;;  %s10069_s20 = sphi %s10165_s20, %s14017_s20   ;;  %s10065_s19 = sphi %s10163_s19, %s14019_s19   ;;  %s10061_s18 = sphi %s10161_s18, %s14018_s18  }
   0x8   : > { %14003 = sst [smem:[#allocation12_spill]] %s10069_s20  ;;  %s6435_s23 = sadd.s32 4294967294, %s10073_s21  }
   0x9   : > { %14004 = sst [smem:[#allocation13_spill]] %s10073_s21  ;;  %s10186_s24 = sadd.s32 1, %s10073_s21  }
   0xa   : > { %14005 = sst [smem:[#allocation14_spill]] %s10186_s24  ;;  %s357_s25 = sadd.s32 1, %s10069_s20 }
   0xb   : > { %s354_s26 = ssub.s32 %s10073_s21, %s10186_s24  ;;  %p367_p0 = scmp.ne.s32.totalorder %s10069_s20, %s10065_s19 }
   0xc   : > { %p355_p1 = scmp.eq.s32.totalorder %s354_s26, 0  ;;  %p368_p2 = scmp.eq.s32.totalorder %s10182_s22, 1 }
   0xd   : > { %p373_p3 = scmp.ne.s32.totalorder %s10065_s19, %s10061_s18  ;;  %p374_p4 = scmp.eq.s32.totalorder %s6435_s23, 1 }
   0xe   : > { %s10197_s27 = scalar_select %p355_p1, %s10069_s20, %s357_s25  }
   0xf   : > { %p10199_p5 = por %p368_p2, %p367_p0  ;;  %p10203_p6 = por %p374_p4, %p373_p3 }
  0x10   : > { %14006 = sst [smem:[#allocation15_spill]] %s10197_s27  ;;  %p6436_p7 = scmp.ge.s32.totalorder %s10073_s21, 1 }
  0x11   : > { %s14008_s29 = scalar_select %p10203_p6, 1, 0 }
  0x12   : > { %p381_p8 = scmp.lt.s32.totalorder %s10073_s21, 3  ;;  %p9896_p9 = scmp.eq.s32.totalorder %s10182_s22, 0 }
  0x13   : > { %14009 = sst [smem:[#allocation16_spill]] %s14008_s29  ;;  %s10075_s25 = smov [#allocation2]  }
  0x14   : > { %p10210_p10 = pnand %p6436_p7, %p381_p8  ;;  %s14011_s1 = sld [smem:[#allocation17_spill]] }
  0x15   : > { %s394_s26 = sshll.u32 %s10075_s25, 4  ;;  %s433_s24 = sshll.u32 %s13990_s11, 4  ;;  %s395_s26 = int_to_ptr.vmem [resolvable:$true] %s394_s26  ;;  %s434_s24 = int_to_ptr.hbm [resolvable:$true] %s433_s24 }
  0x16   : > { %p9885_p11 = pneg %p10210_p10  ;;  %s10076_s29 = smov 256  }
  0x17   : > { %s10077_s18 = smov 16   ;;  %s10078_s21 = smov [#allocation5]  }
  0x18   : > { %p9886_p12 = pnand %p9896_p9, %p9885_p11  ;;  %s435_s16 = sshll.u32 %s10078_s21, 4  ;;  %s436_s16 = int_to_ptr.vmem [resolvable:$true] %s435_s16 }
  0x19   : > { %s10079_s17 = smov 64   ;;  %468 = sbr.rel (%p10210_p10) target bundleno = 2070 (0x816), region = 80 }
  0x1a   : > { %s392_s23 = sshll.u32 %s14011_s1, 4  ;;  %s10080_s1 = smov 4   ;;  %s393_s23 = int_to_ptr.hbm [resolvable:$true] %s392_s23 }
  0x1b   : > { %9888 = dma.hbm_to_vmem [thread:$0]  (!%p9886_p12), %s393_s23, 5120, %s395_s26, [#allocation3], %s10076_s29, %s10076_s29, %s10077_s18  }
  0x1c   : > { %9891 = dma.hbm_to_vmem [thread:$0]  (!%p9886_p12), %s434_s24, 4608, %s436_s16, [#allocation6], %s10079_s17, %s10079_s17, %s10080_s1  }
  0x1e   : > { %10048 = dma.done.wait (%p9896_p9), [#allocation3], 5120  }
  0x1f   : > { %10050 = vsyncadd (%p9896_p9), [#allocation3], 4294962176 }
  0x20   : > { %10052 = dma.done.wait (%p9896_p9), [#allocation6], 4608  }
  0x21   : > { %10054 = vsyncadd (%p9896_p9), [#allocation6], 4294962688  ;;  %p521_p13 = scmp.lt.s32.totalorder %s10182_s22, 1  ;;  %vm585_vm0 = vcmask 1045504   ;;  %v6463_v0 = vld [vmem:[#allocation2 + $0x20] sm:$0xf]  ;;  %s6354_s16 = scalar_lea.hbm %s13994_s15, %s10182_s22 }
  0x22   : > { %v9273_v1 = vld [vmem:[#allocation2 + $0x2c] sm:$0x30]  ;;  %v9271_v2 = vld [vmem:[#allocation2 + $0x24] sm:$0xf]  ;;  %v6465_v4 = vld [vmem:[#allocation2 + $0x30] sm:$0x30] }
  0x23   : > { %s522_s18 = scalar_select %p521_p13, %s10182_s22, 1  ;;  %v6464_v3 = vor.u32 %v9273_v1, %v6463_v0  ;;  %v6471_v5 = vld [vmem:[#allocation2 + $0x28] sm:$0xf]  ;;  %v9274_v6 = vld [vmem:[#allocation2 + $0x34] sm:$0x30]  ;;  %v6468_v7 = vor.u32 %v9271_v2, %v6465_v4  ;;  %vm578_vm1 = vcmask 228352  }
  0x24   : > { %v6472_v8 = vor.u32 %v9274_v6, %v6471_v5  ;;  %v9272_v9 = vld [vmem:[#allocation2 + $0x2c] sm:$0xf]  ;;  %v6473_v10 = vld [vmem:[#allocation2 + $0x38] sm:$0x30]  ;;  %v6447_v11 = vld [vmem:[#allocation2] sm:$0xf] }
  0x25   : > { %s9266_s1 = sshll.u32 %s522_s18, 5  ;;  %v587_v12 = vsel %vm585_vm0, %v6464_v3, 0  ;;  %v6476_v13 = vor.u32 %v9272_v9, %v6473_v10  ;;  %v9269_v14 = vld [vmem:[#allocation2 + $0xc] sm:$0xf0]  ;;  %v9267_v15 = vld [vmem:[#allocation2 + $0x4] sm:$0xf] }
  0x26   : > { %s10239_s24 = scalar_lea.vmem %s13979_s0, %s9266_s1  ;;  %604 = vmatpush.bf16.msra.mxu0 %v587_v12  ;;  %v590_v17 = vsel %vm585_vm0, %v6468_v7, 0  ;;  %v593_v18 = vsel %vm585_vm0, %v6472_v8, 0  ;;  %v6448_v19 = vor.u32 %v9269_v14, %v6447_v11  ;;  %v6449_v20 = vld [vmem:[#allocation2 + $0x10] sm:$0xf0]  ;;  %v6455_v21 = vld [vmem:[#allocation2 + $0x8] sm:$0xf] }
  0x27   : > { %v527_v16 = vld [vmem:[%s10239_s24] sm:$0xff]  ;;  %622 = vmatpush.bf16.msra.mxu1 %v590_v17  ;;  %640 = vmatpush.bf16.msra.mxu2 %v593_v18  ;;  %v596_v22 = vsel %vm585_vm0, %v6476_v13, 0  ;;  %v6452_v23 = vor.u32 %v9267_v15, %v6449_v20  ;;  %v9270_v24 = vld [vmem:[#allocation2 + $0x14] sm:$0xf0]  ;;  %v9268_v25 = vld [vmem:[#allocation2 + $0xc] sm:$0xf] }
  0x28   : > { %v528_v26 = vld [vmem:[%s10239_s24 + $0x8] sm:$0xff]  ;;  %9873 = vmatpush.bf16.msra.mxu3 %v596_v22  ;;  %v6456_v27 = vor.u32 %v9270_v24, %v6455_v21  ;;  %v6457_v28 = vld [vmem:[#allocation2 + $0x18] sm:$0xf0]  ;;  %v529_v29 = vld [vmem:[%s10239_s24 + $0x10] sm:$0xff]  ;;  %vm701_vm2 = vsmask.f32 7424 }
  0x29   : > { %v6460_v30 = vor.u32 %v9268_v25, %v6457_v28  ;;  %v10248_v31 = vpack.c.bf16 %v528_v26, %v527_v16  ;;  %v9280_v32 = vld [vmem:[#allocation2 + $0x6c] sm:$0xf]  ;;  %v6513_v33 = vld [vmem:[#allocation2 + $0x78] sm:$0x30]  ;;  %v6503_v37 = vld [vmem:[#allocation2 + $0x60] sm:$0xf]  ;;  %v533_v38 = vpack.c.bf16 %v529_v29, %v529_v29 }
  0x2a   : > { %605 = vmatpush.bf16.msra.mxu0 %v6448_v19  ;;  %v6516_v34 = vor.u32 %v9280_v32, %v6513_v33  ;;  %v9276_v35 = vld [vmem:[#allocation2 + $0x4c] sm:$0xf]  ;;  %v6497_v36 = vld [vmem:[#allocation2 + $0x58] sm:$0xf0]  ;;  %v9281_v39 = vld [vmem:[#allocation2 + $0x6c] sm:$0x30] }
  0x2b   : > { %623 = vmatpush.bf16.msra.mxu1 %v6452_v23  ;;  %641 = vmatpush.bf16.msra.mxu2 %v6456_v27  ;;  %v6504_v41 = vor.u32 %v9281_v39, %v6503_v37  ;;  %v9279_v42 = vld [vmem:[#allocation2 + $0x64] sm:$0xf]  ;;  %v530_v43 = vld [vmem:[%s10239_s24 + $0x18] sm:$0xf]  ;;  %v6500_v44 = vor.u32 %v9276_v35, %v6497_v36  ;;  %v6505_v45 = vld [vmem:[#allocation2 + $0x70] sm:$0x30] }
  0x2c   : > { %9874 = vmatpush.bf16.msra.mxu3 %v6460_v30  ;;  %v768_v40 = vsel %vm585_vm0, %v6516_v34, 0  ;;  %v6487_v46 = vld [vmem:[#allocation2 + $0x40] sm:$0xf]  ;;  %v6508_v48 = vor.u32 %v9279_v42, %v6505_v45  ;;  %v9277_v49 = vld [vmem:[#allocation2 + $0x4c] sm:$0xf0]  ;;  %v10260_v55 = vpack.c.bf16 %v530_v43, %v529_v29  ;;  %v704_v56 = vshll.u32 %v10248_v31, 16 }
  0x2d   : > { %6477 = vmatmul.msk.bf16.vlgmr.msra.gmra.mxu0 %vm578_vm1, %v10248_v31  ;;  %v759_v47 = vsel %vm585_vm0, %v6504_v41, 0  ;;  %v9275_v50 = vld [vmem:[#allocation2 + $0x44] sm:$0xf]  ;;  %v6488_v51 = vor.u32 %v9277_v49, %v6487_v46  ;;  %v6489_v52 = vld [vmem:[#allocation2 + $0x50] sm:$0xf0]  ;;  %v702_v3 = vshrl.u32 %v10248_v31, 16 }
  0x2e   : > { %6479 = vmatmul.msk.bf16.vlgmr.msra.gmra.mxu1 %vm578_vm1, %v10248_v31  ;;  %6481 = vmatmul.msk.bf16.vlgmr.msra.gmra.mxu2 %vm578_vm1, %v10248_v31  ;;  %v6511_v53 = vld [vmem:[#allocation2 + $0x68] sm:$0xf]  ;;  %v9282_v54 = vld [vmem:[#allocation2 + $0x74] sm:$0x30]  ;;  %v762_v57 = vsel %vm585_vm0, %v6508_v48, 0  ;;  %v6492_v60 = vor.u32 %v9275_v50, %v6489_v52  ;;  %v706_v6 = vrot.slane %v704_v56, 1 }
  0x2f   : > { %658 = vmatpush.bf16.msrb.mxu2 %v596_v22  ;;  %6484 = vmatmul.msk.bf16.vlgmr.msra.gmra.mxu3 %vm578_vm1, %v533_v38  ;;  %v9288_v58 = vld [vmem:[#allocation2 + $0xac] sm:$0xf]  ;;  %v6553_v59 = vld [vmem:[#allocation2 + $0xb8] sm:$0x30]  ;;  %v6512_v61 = vor.u32 %v9282_v54, %v6511_v53  ;;  %v6495_v63 = vld [vmem:[#allocation2 + $0x48] sm:$0xf] }
  0x30   : > { %830 = vmatpush.bf16.msrb.mxu3 %v768_v40  ;;  %776 = vmatpush.bf16.msrb.mxu0 %v759_v47  ;;  %v6556_v62 = vor.u32 %v9288_v58, %v6553_v59  ;;  %v9278_v0 = vld [vmem:[#allocation2 + $0x54] sm:$0xf0]  ;;  %v9284_v1 = vld [vmem:[#allocation2 + $0x8c] sm:$0xf]  ;;  %v6537_v2 = vld [vmem:[#allocation2 + $0x98] sm:$0xf0]  ;;  %v707_v10 = vor.u32 %v706_v6, %v702_v3 }
  0x31   : > { %794 = vmatpush.bf16.msrb.mxu1 %v762_v57  ;;  %v765_v4 = vsel %vm585_vm0, %v6512_v61, 0  ;;  %v709_v7 = vshll.u32 %v10260_v55, 16  ;;  %v6496_v8 = vor.u32 %v9278_v0, %v6495_v63  ;;  %v6540_v9 = vor.u32 %v9284_v1, %v6537_v2  ;;  %v6543_v13 = vld [vmem:[#allocation2 + $0xa0] sm:$0xf]  ;;  %v9289_v14 = vld [vmem:[#allocation2 + $0xac] sm:$0x30] }
  0x32   : > { %v921_v5 = vsel %vm585_vm0, %v6556_v62, 0  ;;  %v9287_v15 = vld [vmem:[#allocation2 + $0xa4] sm:$0xf]  ;;  %v6544_v16 = vor.u32 %v9289_v14, %v6543_v13  ;;  %v6545_v17 = vld [vmem:[#allocation2 + $0xb0] sm:$0x30]  ;;  %v713_v27 = vshrl.u32 %v10260_v55, 16 }
  0x33   : > { %659 = vmatpush.bf16.msrb.mxu2 %v6460_v30  ;;  %v711_v11 = vrot.slane %v709_v7, 1  ;;  %v6527_v18 = vld [vmem:[#allocation2 + $0x80] sm:$0xf]  ;;  %v9285_v19 = vld [vmem:[#allocation2 + $0x8c] sm:$0xf0]  ;;  %v6548_v20 = vor.u32 %v9287_v15, %v6545_v17  ;;  %v866_v45 = vrot.slane %v10248_v31, 1 }
  0x34   : > { %831 = vmatpush.bf16.msrb.mxu3 %v6500_v44  ;;  %777 = vmatpush.bf16.msrb.mxu0 %v6488_v51  ;;  %v9283_v21 = vld [vmem:[#allocation2 + $0x84] sm:$0xf]  ;;  %v6529_v22 = vld [vmem:[#allocation2 + $0x90] sm:$0xf0]  ;;  %v912_v23 = vsel %vm585_vm0, %v6544_v16, 0  ;;  %v6528_v25 = vor.u32 %v9285_v19, %v6527_v18  ;;  %v10291_v44 = vrot.slane %v10260_v55, 1 }
  0x35   : > { %795 = vmatpush.bf16.msrb.mxu1 %v6492_v60  ;;  %v712_v12 = vsel %vm701_vm2, %v707_v10, %v711_v11  ;;  %v915_v24 = vsel %vm585_vm0, %v6548_v20, 0  ;;  %v6532_v26 = vor.u32 %v9283_v21, %v6529_v22  ;;  %v715_v28 = vor.u32 %v713_v27, %v711_v11  ;;  %v6551_v29 = vld [vmem:[#allocation2 + $0xa8] sm:$0xf]  ;;  %v9290_v30 = vld [vmem:[#allocation2 + $0xb4] sm:$0x30]  ;;  %s519_s23 = sand.u32 1, %s10065_s19  }
  0x36   : > { %v9296_v32 = vld [vmem:[#allocation2 + $0xec] sm:$0xf]  ;;  %v6552_v33 = vor.u32 %v9290_v30, %v6551_v29  ;;  %v6593_v34 = vld [vmem:[#allocation2 + $0xf8] sm:$0x30]  ;;  %v6535_v35 = vld [vmem:[#allocation2 + $0x88] sm:$0xf] }
  0x37   : > { %812 = vmatpush.bf16.msra.mxu2 %v765_v4  ;;  %v9286_v36 = vld [vmem:[#allocation2 + $0x94] sm:$0xf0]  ;;  %v6596_v37 = vor.u32 %v9296_v32, %v6593_v34  ;;  %v6577_v39 = vld [vmem:[#allocation2 + $0xd8] sm:$0xf0]  ;;  %vm865_vm3 = vcmask 1046528   ;;  %v1021_v15 = vrot.slane %v709_v7, 2 }
  0x38   : > { %983 = vmatpush.bf16.msra.mxu3 %v921_v5  ;;  %929 = vmatpush.bf16.msra.mxu0 %v912_v23  ;;  %v918_v40 = vsel %vm585_vm0, %v6552_v33, 0  ;;  %v6536_v42 = vor.u32 %v9286_v36, %v6535_v35  ;;  %v868_v46 = vsel %vm865_vm3, %v866_v45, %v10291_v44  ;;  %v6583_v47 = vld [vmem:[#allocation2 + $0xe0] sm:$0xf]  ;;  %v9297_v48 = vld [vmem:[#allocation2 + $0xec] sm:$0x30]  ;;  %v1020_v16 = vrot.slane %v713_v27, 1 }
  0x39   : > { %947 = vmatpush.bf16.msra.mxu1 %v915_v24  ;;  %v1076_v41 = vsel %vm585_vm0, %v6596_v37, 0  ;;  %v9295_v49 = vld [vmem:[#allocation2 + $0xe4] sm:$0xf]  ;;  %v6584_v50 = vor.u32 %v9297_v48, %v6583_v47  ;;  %v6585_v51 = vld [vmem:[#allocation2 + $0xf0] sm:$0x30]  ;;  %v1018_v17 = vrot.slane %v704_v56, 2 }
  0x3a   : > { %v6567_v52 = vld [vmem:[#allocation2 + $0xc0] sm:$0xf]  ;;  %v9293_v53 = vld [vmem:[#allocation2 + $0xcc] sm:$0xf0]  ;;  %v6588_v54 = vor.u32 %v9295_v49, %v6585_v51  ;;  %v9291_v57 = vld [vmem:[#allocation2 + $0xc4] sm:$0xf]  ;;  %v1022_v19 = vor.u32 %v1021_v15, %v1020_v16 }
  0x3b   : > { %813 = vmatpush.bf16.msra.mxu2 %v6496_v8  ;;  %v6569_v58 = vld [vmem:[#allocation2 + $0xd0] sm:$0xf0]  ;;  %v1067_v59 = vsel %vm585_vm0, %v6584_v50, 0  ;;  %v6568_v61 = vor.u32 %v9293_v53, %v6567_v52  ;;  %v6591_v63 = vld [vmem:[#allocation2 + $0xe8] sm:$0xf]  ;;  %vm1344_vm5 = vcmask 1043456  }
  0x3c   : > { %984 = vmatpush.bf16.msra.mxu3 %v6540_v9  ;;  %930 = vmatpush.bf16.msra.mxu0 %v6528_v25  ;;  %v1070_v60 = vsel %vm585_vm0, %v6588_v54, 0  ;;  %v6572_v62 = vor.u32 %v9291_v57, %v6569_v58  ;;  %v9298_v0 = vld [vmem:[#allocation2 + $0xf4] sm:$0x30]  ;;  %v9304_v1 = vld [vmem:[#allocation2 + $0x12c] sm:$0xf]  ;;  %vm1340_vm6 = vcmask 195584  }
  0x3d   : > { %6478 = vmatmul.msk.bf16.gmra.mxu0 %vm578_vm1, %v533_v38  ;;  %948 = vmatpush.bf16.msra.mxu1 %v6532_v26  ;;  %v6592_v2 = vor.u32 %v9298_v0, %v6591_v63  ;;  %v6633_v4 = vld [vmem:[#allocation2 + $0x138] sm:$0x30]  ;;  %v6575_v5 = vld [vmem:[#allocation2 + $0xc8] sm:$0xf]  ;;  %v9294_v6 = vld [vmem:[#allocation2 + $0xd4] sm:$0xf0] }
  0x3e   : > { %6480 = vmatmul.msk.bf16.gmra.mxu1 %vm578_vm1, %v533_v38  ;;  %6482 = vmatmul.msk.bf16.gmra.mxu2 %vm578_vm1, %v533_v38  ;;  %v9292_v38 = vld [vmem:[#allocation2 + $0xcc] sm:$0xf]  ;;  %v6636_v8 = vor.u32 %v9304_v1, %v6633_v4  ;;  %v6617_v10 = vld [vmem:[#allocation2 + $0x118] sm:$0xf0]  ;;  %v6576_v14 = vor.u32 %v9294_v6, %v6575_v5  ;;  %vm1016_vm4 = vsmask.f32 6400 }
  0x3f   : > { %6523 = vmatmul.msk.bf16.vlgmr.msrb.gmra.mxu3 %vm578_vm1, %v712_v12  ;;  %v6580_v43 = vor.u32 %v9292_v38, %v6577_v39  ;;  %v9300_v9 = vld [vmem:[#allocation2 + $0x10c] sm:$0xf]  ;;  %v1073_v11 = vsel %vm585_vm0, %v6592_v2, 0  ;;  %v6623_v7 = vld [vmem:[#allocation2 + $0x120] sm:$0xf]  ;;  %v1173_v38 = vrot.slane %v10260_v55, 2 }
  0x40   : > { %1138 = vmatpush.bf16.msrb.mxu3 %v1076_v41  ;;  %v1227_v13 = vsel %vm585_vm0, %v6636_v8, 0  ;;  %v6620_v18 = vor.u32 %v9300_v9, %v6617_v10  ;;  %v9305_v56 = vld [vmem:[#allocation2 + $0x12c] sm:$0x30]  ;;  %v9303_v21 = vld [vmem:[#allocation2 + $0x124] sm:$0xf]  ;;  %v1172_v39 = vrot.slane %v10248_v31, 2 }
  0x41   : > { %v6624_v22 = vor.u32 %v9305_v56, %v6623_v7  ;;  %v6625_v23 = vld [vmem:[#allocation2 + $0x130] sm:$0x30]  ;;  %v6607_v27 = vld [vmem:[#allocation2 + $0x100] sm:$0xf]  ;;  %v9299_v29 = vld [vmem:[#allocation2 + $0x104] sm:$0xf] }
  0x42   : > { %v6628_v24 = vor.u32 %v9303_v21, %v6625_v23  ;;  %v6609_v32 = vld [vmem:[#allocation2 + $0x110] sm:$0xf0]  ;;  %v6631_v34 = vld [vmem:[#allocation2 + $0x128] sm:$0xf]  ;;  %v9306_v35 = vld [vmem:[#allocation2 + $0x134] sm:$0x30] }
  0x43   : > { %v1218_v25 = vsel %vm585_vm0, %v6624_v22, 0  ;;  %v6612_v33 = vor.u32 %v9299_v29, %v6609_v32  ;;  %v6632_v36 = vor.u32 %v9306_v35, %v6631_v34  ;;  %v9302_v41 = vld [vmem:[#allocation2 + $0x114] sm:$0xf0]  ;;  %v531_v53 = vld [vmem:[%s13981_s2] sm:$0xf]  ;;  %vm1852_vm7 = vcmask 785408  }
  0x44   : > { %1139 = vmatpush.bf16.msrb.mxu3 %v6580_v43  ;;  %v1221_v26 = vsel %vm585_vm0, %v6628_v24, 0  ;;  %v1174_v43 = vsel %vm585_vm0, %v1172_v39, %v1173_v38  ;;  %v10353_v58 = vperm.slane %v531_v53, 0  ;;  %v10361_v6 = vperm.slane %v531_v53, 3  ;;  %s520_s17 = scalar_lea.vmem [#allocation7], %s519_s23  ;;  %s6358_s1 = sshll.u32 %s6354_s16, 4  ;;  %s6359_s1 = int_to_ptr.hbm [resolvable:$true] %s6358_s1 }
  0x45   : > { %v1224_v37 = vsel %vm585_vm0, %v6632_v36, 0  ;;  %v10374_v56 = vperm.slane %v531_v53, 2  ;;  %vm2808_vm8 = vcmask 916480   ;;  %vm3945_vm9 = vcmask 1044480   ;;  %s6356_s18 = sshll.u32 %s520_s17, 4  ;;  %s6346_s20 = scalar_lea.sflag [#allocation4], %s519_s23  ;;  %s6357_s18 = int_to_ptr.vmem [resolvable:$true] %s6356_s18 }
  0x46   : > { %vm3941_vm10 = vcmask 80896   ;;  %vm4457_vm11 = vcmask 1041408   ;;  %vm4453_vm12 = vcmask 949248   ;;  %vm5252_vm13 = vcmask 998400   ;;  %s10017_s21 = sshra.s32 %s6359_s1, 4  ;;  %s10023_s29 = scalar_lea.hbm %s13994_s15, 2  ;;  %s10018_s21 = int_to_ptr.hbm [resolvable:$true] %s10017_s21 }
  0x47   : > { %vm5949_vm14 = vcmask 523264   ;;  %vm6329_vm0 = vcmask 1040384   ;;  %s10019_s24 = scalar_lea.hbm %s10018_s21, 1  ;;  %p10024_p3 = scmp.lt.s32.totalorder %s10018_s21, %s13994_s15 }
  0x48   : > { %p10020_p0 = scmp.ne.s32.totalorder %s10018_s21, %s10019_s24  ;;  %p10025_p4 = scmp.lt.s32.totalorder %s10023_s29, %s10019_s24 }
  0x4a   : > { %p10021_p1 = pnand %p10020_p0, %p10199_p5  ;;  %p10026_p7 = por %p10025_p4, %p10024_p3 }
  0x4c   : > { %p10022_p2 = pneg %p10021_p1 }
  0x4d   : > { %6517 = vmatmul.msk.bf16.vlgmr.msrb.gmra.mxu0 %vm578_vm1, %v712_v12 }
  0x4e   : > { %6483 = vmatmul.msk.bf16.vlgmr.msrb.gmra.mxu2 %vm578_vm1, %v10248_v31  ;;  %6519 = vmatmul.msk.bf16.vlgmr.msrb.gmra.mxu1 %vm578_vm1, %v712_v12  ;;  %p10027_p8 = pnand %p10026_p7, %p10022_p2 }
  0x4f   : > { %6524 = vmatmul.msk.bf16.gmra.mxu3 %vm578_vm1, %v715_v28  ;;  %965 = vmatpush.bf16.msrb.mxu2 %v918_v40  ;;  %v6615_v40 = vld [vmem:[#allocation2 + $0x108] sm:$0xf] }
  0x50   : > { %1084 = vmatpush.bf16.msrb.mxu0 %v1067_v59  ;;  %1102 = vmatpush.bf16.msrb.mxu1 %v1070_v60  ;;  %v10355_v60 = vperm.slane %v531_v53, 1 }
  0x53   : > { %966 = vmatpush.bf16.msrb.mxu2 %v6536_v42  ;;  %v6616_v42 = vor.u32 %v9302_v41, %v6615_v40 }
  0x54   : > { %1085 = vmatpush.bf16.msrb.mxu0 %v6568_v61  ;;  %1103 = vmatpush.bf16.msrb.mxu1 %v6572_v62 }
  0x5d   : > { %6518 = vmatmul.msk.bf16.gmra.mxu0 %vm578_vm1, %v715_v28 }
  0x5e   : > { %6520 = vmatmul.msk.bf16.gmra.mxu1 %vm578_vm1, %v715_v28  ;;  %6521 = vmatmul.msk.bf16.vlgmr.msra.gmra.mxu2 %vm578_vm1, %v712_v12  ;;  %v1017_v12 = vrot.slane %v702_v3, 1 }
  0x5f   : > { %6563 = vmatmul.msk.bf16.vlgmr.msra.gmra.mxu3 %vm578_vm1, %v868_v46  ;;  %1120 = vmatpush.bf16.msra.mxu2 %v1073_v11 }
  0x60   : > { %1289 = vmatpush.bf16.msra.mxu3 %v1227_v13  ;;  %v1019_v20 = vor.u32 %v1018_v17, %v1017_v12 }
  0x62   : > { %v1023_v3 = vsel %vm1016_vm4, %v1019_v20, %v1022_v19 }
  0x63   : > { %1121 = vmatpush.bf16.msra.mxu2 %v6576_v14 }
  0x64   : > { %1290 = vmatpush.bf16.msra.mxu3 %v6620_v18 }
  0x6d   : > { %6557 = vmatmul.msk.bf16.vlgmr.msra.gmra.mxu0 %vm578_vm1, %v868_v46 }
  0x6e   : > { %6522 = vmatmul.msk.bf16.gmra.mxu2 %vm578_vm1, %v715_v28  ;;  %6559 = vmatmul.msk.bf16.vlgmr.msra.gmra.mxu1 %vm578_vm1, %v868_v46  ;;  %v9301_v28 = vld [vmem:[#allocation2 + $0x10c] sm:$0xf0] }
  0x6f   : > { %6564 = vmatmul.msk.bf16.gmra.mxu3 %vm578_vm1, %v10291_v44  ;;  %1235 = vmatpush.bf16.msra.mxu0 %v1218_v25  ;;  %v6608_v30 = vor.u32 %v9301_v28, %v6607_v27 }
  0x70   : > { %1253 = vmatpush.bf16.msra.mxu1 %v1221_v26 }
  0x73   : > { %1236 = vmatpush.bf16.msra.mxu0 %v6608_v30 }
  0x74   : > { %1254 = vmatpush.bf16.msra.mxu1 %v6612_v33 }
  0x7d   : > { %6558 = vmatmul.msk.bf16.gmra.mxu0 %vm578_vm1, %v10291_v44 }
  0x7e   : > { %6560 = vmatmul.msk.bf16.gmra.mxu1 %vm578_vm1, %v10291_v44  ;;  %6561 = vmatmul.msk.bf16.vlgmr.msrb.gmra.mxu2 %vm578_vm1, %v868_v46 }
  0x7f   : > { %6603 = vmatmul.msk.bf16.vlgmr.msrb.gmra.mxu3 %vm578_vm1, %v1023_v3  ;;  %1271 = vmatpush.bf16.msrb.mxu2 %v1224_v37 }
  0x83   : > { %1272 = vmatpush.bf16.msrb.mxu2 %v6616_v42 }
  0x8d   : > { %6597 = vmatmul.msk.bf16.vlgmr.msrb.gmra.mxu0 %vm578_vm1, %v1023_v3 }
  0x8e   : > { %6562 = vmatmul.msk.bf16.gmra.mxu2 %vm578_vm1, %v10291_v44  ;;  %6599 = vmatmul.msk.bf16.vlgmr.msrb.gmra.mxu1 %vm578_vm1, %v1023_v3 }
  0x8f   : > { %6604 = vmatmul.msk.bf16.gmra.mxu3 %vm578_vm1, %v1022_v19 }
  0x9d   : > { %6598 = vmatmul.msk.bf16.gmra.mxu0 %vm578_vm1, %v1022_v19 }
  0x9e   : > { %6600 = vmatmul.msk.bf16.gmra.mxu1 %vm578_vm1, %v1022_v19  ;;  %6601 = vmatmul.msk.bf16.vlgmr.msra.gmra.mxu2 %vm578_vm1, %v1023_v3 }
  0x9f   : > { %6643 = vmatmul.msk.bf16.vlgmr.msra.gmra.mxu3 %vm578_vm1, %v1174_v43 }
  0xaa   : > { %v607_v44 = vpop.f32.mrf.mxu0 }
  0xab   : > { %v625_v45 = vpop.f32.mrf.mxu1  ;;  %v679_v61 = vadd.f32 %v10353_v58, %v607_v44 }
  0xac   : > { %v680_v62 = vadd.f32 %v10355_v60, %v625_v45 }
  0xad   : > { %6637 = vmatmul.msk.bf16.vlgmr.msra.gmra.mxu0 %vm578_vm1, %v1174_v43 }
  0xae   : > { %6602 = vmatmul.msk.bf16.gmra.mxu2 %vm578_vm1, %v1022_v19  ;;  %6639 = vmatmul.msk.bf16.vlgmr.msra.gmra.mxu1 %vm578_vm1, %v1174_v43 }
  0xaf   : > { %6644 = vmatmul.msk.bf16.gmra.mxu3 %vm578_vm1, %v1173_v38 }
  0xb1   : > { %v643_v31 = vpop.f32.mrf.mxu2 }
  0xb2   : > { %v666_v55 = vpop.f32.mrf.mxu3  ;;  %v10341_v46 = vpop.f32.mrf.mxu0  ;;  %v681_v22 = vadd.f32 %v10374_v56, %v643_v31 }
  0xb3   : > { %v10343_v47 = vpop.f32.mrf.mxu1  ;;  %v690_v8 = vadd.f32 %v10361_v6, %v666_v55 }
  0xb9   : > { %v10345_v48 = vpop.f32.mrf.mxu2 }
  0xba   : > { %v668_v49 = vpop.f32.mrf.mxu3  ;;  %v612_v50 = vpop.f32.mrf.mxu0 }
  0xbb   : > { %v630_v51 = vpop.f32.mrf.mxu1  ;;  %v687_v16 = vadd.f32 %v10353_v58, %v612_v50 }
  0xbc   : > { %v688_v17 = vadd.f32 %v10355_v60, %v630_v51 }
  0xbd   : > { %6638 = vmatmul.msk.bf16.gmra.mxu0 %vm578_vm1, %v1173_v38 }
  0xbe   : > { %6640 = vmatmul.msk.bf16.gmra.mxu1 %vm578_vm1, %v1173_v38  ;;  %6641 = vmatmul.msk.bf16.vlgmr.msrb.gmra.mxu2 %vm578_vm1, %v1174_v43 }
  0xc1   : > { %v648_v52 = vpop.f32.mrf.mxu2 }
  0xc2   : > { %v833_v54 = vpop.f32.mrf.mxu3  ;;  %v614_v57 = vpop.f32.mrf.mxu0  ;;  %v689_v36 = vadd.f32 %v10374_v56, %v648_v52 }
  0xc3   : > { %v632_v59 = vpop.f32.mrf.mxu1 }
  0xc9   : > { %v650_v63 = vpop.f32.mrf.mxu2 }
  0xca   : > { %v10359_v0 = vpop.f32.mrf.mxu3  ;;  %v779_v1 = vpop.f32.mrf.mxu0 }
  0xcb   : > { %v842_v2 = vadd.f32 %v779_v1, %v679_v61  ;;  %v797_v4 = vpop.f32.mrf.mxu1 }
  0xcc   : > { %v843_v5 = vadd.f32 %v797_v4, %v680_v62 }
  0xce   : > { %6642 = vmatmul.msk.bf16.gmra.mxu2 %vm578_vm1, %v1173_v38 }
  0xd1   : > { %v661_v9 = vpop.f32.mrf.mxu2 }
  0xd2   : > { %v682_v10 = vadd.f32 %v10361_v6, %v661_v9  ;;  %v838_v11 = vpop.f32.mrf.mxu3  ;;  %v10366_v12 = vpop.f32.mrf.mxu0 }
  0xd3   : > { %v853_v13 = vadd.f32 %v838_v11, %v690_v8  ;;  %v10368_v14 = vpop.f32.mrf.mxu1 }
  0xd4   : > { %v845_v15 = vadd.f32 %v833_v54, %v682_v10 }
  0xd9   : > { %v663_v18 = vpop.f32.mrf.mxu2 }
  0xda   : > { %v840_v19 = vpop.f32.mrf.mxu3  ;;  %v784_v20 = vpop.f32.mrf.mxu0 }
  0xdb   : > { %v10372_v3 = vadd.f32 %v784_v20, %v687_v16  ;;  %v802_v7 = vpop.f32.mrf.mxu1  ;;  %v686_v16 = vadd.f32 %v10361_v6, %v663_v18 }
  0xdc   : > { %v10376_v21 = vadd.f32 %v802_v7, %v688_v17 }
  0xdd   : > { %v849_v7 = vadd.f32 %v10359_v0, %v686_v16 }
  0xe1   : > { %v815_v23 = vpop.f32.mrf.mxu2 }
  0xe2   : > { %v844_v24 = vadd.f32 %v815_v23, %v681_v22  ;;  %v986_v25 = vpop.f32.mrf.mxu3  ;;  %v786_v26 = vpop.f32.mrf.mxu0 }
  0xe3   : > { %v998_v27 = vadd.f32 %v986_v25, %v845_v15  ;;  %v804_v28 = vpop.f32.mrf.mxu1  ;;  %v683_v26 = vadd.f32 %v10353_v58, %v10341_v46 }
  0xe5   : > { %v846_v0 = vadd.f32 %v10366_v12, %v683_v26 }
  0xe9   : > { %v10379_v29 = vpop.f32.mrf.mxu2 }
  0xea   : > { %v988_v30 = vpop.f32.mrf.mxu3  ;;  %v932_v32 = vpop.f32.mrf.mxu0 }
  0xeb   : > { %v10381_v33 = vadd.f32 %v932_v32, %v842_v2  ;;  %v950_v34 = vpop.f32.mrf.mxu1  ;;  %v1002_v23 = vadd.f32 %v988_v30, %v849_v7 }
  0xec   : > { %v10383_v35 = vadd.f32 %v950_v34, %v843_v5 }
  0xf1   : > { %v820_v37 = vpop.f32.mrf.mxu2 }
  0xf2   : > { %v10386_v38 = vadd.f32 %v820_v37, %v689_v36  ;;  %v991_v39 = vpop.f32.mrf.mxu3  ;;  %v934_v40 = vpop.f32.mrf.mxu0  ;;  %v684_v36 = vadd.f32 %v10355_v60, %v10343_v47 }
  0xf3   : > { %v952_v41 = vpop.f32.mrf.mxu1  ;;  %v1006_v22 = vadd.f32 %v991_v39, %v853_v13  ;;  %v999_v58 = vadd.f32 %v934_v40, %v846_v0 }
  0xf4   : > { %v847_v30 = vadd.f32 %v10368_v14, %v684_v36  ;;  %v6647_v14 = vld [vmem:[%s13982_s3] sm:$0xf]  ;;  %v9308_v36 = vld [vmem:[%s13982_s3 + $0x8] sm:$0x30] }
  0xf9   : > { %v822_v42 = vpop.f32.mrf.mxu2 }
  0xfa   : > { %v993_v43 = vpop.f32.mrf.mxu3  ;;  %v937_v44 = vpop.f32.mrf.mxu0 }
  0xfb   : > { %v955_v45 = vpop.f32.mrf.mxu1  ;;  %v1003_v39 = vadd.f32 %v937_v44, %v10372_v3  ;;  %v9307_v3 = vld [vmem:[%s13982_s3] sm:$0x30] }
 0x101   : > { %v968_v31 = vpop.f32.mrf.mxu2 }
 0x102   : > { %v10388_v55 = vadd.f32 %v968_v31, %v844_v24  ;;  %v1141_v49 = vpop.f32.mrf.mxu3  ;;  %v939_v50 = vpop.f32.mrf.mxu0  ;;  %v1004_v31 = vadd.f32 %v955_v45, %v10376_v21 }
 0x103   : > { %v957_v51 = vpop.f32.mrf.mxu1  ;;  %v1153_v37 = vadd.f32 %v1141_v49, %v998_v27 }
 0x104   : > { %v1000_v51 = vadd.f32 %v952_v41, %v847_v30  ;;  %v9368_v30 = vld [vmem:[%s13983_s4 + $0x1d4] sm:$0xf0] }
 0x109   : > { %v10390_v53 = vpop.f32.mrf.mxu2 }
 0x10a   : > { %v1143_v54 = vpop.f32.mrf.mxu3  ;;  %v1087_v52 = vpop.f32.mrf.mxu0 }
 0x10b   : > { %v1105_v57 = vpop.f32.mrf.mxu1  ;;  %v1157_v28 = vadd.f32 %v1143_v54, %v1002_v23  ;;  %v1150_v45 = vadd.f32 %v1087_v52, %v10381_v33 }
 0x111   : > { %v10392_v59 = vpop.f32.mrf.mxu2 }
 0x112   : > { %v1146_v61 = vpop.f32.mrf.mxu3  ;;  %v1089_v62 = vpop.f32.mrf.mxu0 }
 0x113   : > { %v1107_v63 = vpop.f32.mrf.mxu1  ;;  %v1161_v24 = vadd.f32 %v1146_v61, %v1006_v22  ;;  %v1154_v49 = vadd.f32 %v1089_v62, %v999_v58 }
 0x114   : > { %v1155_v40 = vadd.f32 %v1107_v63, %v1000_v51  ;;  %v9340_v51 = vld [vmem:[%s13983_s4 + $0xf4] sm:$0xf0] }
 0x119   : > { %v975_v1 = vpop.f32.mrf.mxu2 }
 0x11a   : > { %v1148_v2 = vpop.f32.mrf.mxu3  ;;  %v1092_v4 = vpop.f32.mrf.mxu0 }
 0x11b   : > { %v1110_v5 = vpop.f32.mrf.mxu1  ;;  %v1158_v47 = vadd.f32 %v1092_v4, %v1003_v39  ;;  %v1151_v4 = vadd.f32 %v1105_v57, %v10383_v35 }
 0x11c   : > { %v1159_v54 = vadd.f32 %v1110_v5, %v1004_v31 }
 0x121   : > { %v10394_v8 = vpop.f32.mrf.mxu2 }
 0x122   : > { %v1292_v9 = vpop.f32.mrf.mxu3  ;;  %v1094_v10 = vpop.f32.mrf.mxu0  ;;  %v1152_v58 = vadd.f32 %v10394_v8, %v10388_v55  ;;  %v6705_v55 = vld [vmem:[%s13983_s4 + $0x50] sm:$0xf]  ;;  %v9320_v8 = vld [vmem:[%s13983_s4 + $0x54] sm:$0xf0] }
 0x123   : > { %v1112_v11 = vpop.f32.mrf.mxu1  ;;  %v1304_v13 = vadd.f32 %v1292_v9, %v1153_v37  ;;  %v10419_v10 = vor.u32 %v9307_v3, %v6647_v14  ;;  %v9338_v14 = vld [vmem:[%s13983_s4 + $0xe4] sm:$0xf0]  ;;  %v6881_v3 = vld [vmem:[%s13983_s4 + $0x1b0] sm:$0xf] }
 0x125   : > { %v1316_v61 = vmax.f32 %v1304_v13, 0.0  ;;  %v6721_v13 = vld [vmem:[%s13983_s4 + $0x70] sm:$0xf] }
 0x129   : > { %v10396_v15 = vpop.f32.mrf.mxu2 }
 0x12a   : > { %v1294_v17 = vpop.f32.mrf.mxu3  ;;  %v1238_v19 = vpop.f32.mrf.mxu0 }
 0x12b   : > { %v1256_v20 = vpop.f32.mrf.mxu1  ;;  %v1308_v42 = vadd.f32 %v1294_v17, %v1157_v28  ;;  %v1301_v11 = vadd.f32 %v1238_v19, %v1150_v45  ;;  %v6697_v45 = vld [vmem:[%s13983_s4 + $0x40] sm:$0xf] }
 0x12c   : > { %v1302_v17 = vadd.f32 %v1256_v20, %v1151_v4 }
 0x12d   : > { %v1320_v50 = vmax.f32 %v1308_v42, 0.0  ;;  %v1313_v52 = vmax.f32 %v1301_v11, 0.0  ;;  %v1005_v42 = vadd.f32 %v10392_v59, %v10386_v38  ;;  %v9322_v59 = vld [vmem:[%s13983_s4 + $0x64] sm:$0xf0] }
 0x12f   : > { %v1328_v2 = vpack.c.bf16 %v1320_v50, %v1316_v61 }
 0x131   : > { %v10400_v25 = vpop.f32.mrf.mxu2 }
 0x132   : > { %v1297_v32 = vpop.f32.mrf.mxu3  ;;  %v1240_v34 = vpop.f32.mrf.mxu0  ;;  %v1160_v0 = vadd.f32 %v10400_v25, %v1005_v42  ;;  %v6897_v25 = vld [vmem:[%s13983_s4 + $0x1d0] sm:$0xf]  ;;  %v6857_v42 = vld [vmem:[%s13983_s4 + $0x180] sm:$0xf] }
 0x133   : > { %v1312_v6 = vadd.f32 %v1297_v32, %v1161_v24  ;;  %v1258_v18 = vpop.f32.mrf.mxu1  ;;  %v1305_v1 = vadd.f32 %v1240_v34, %v1154_v49  ;;  %v1314_v24 = vmax.f32 %v1302_v17, 0.0  ;;  %v6657_v34 = vld [vmem:[%s13982_s3 + $0x8] sm:$0xf]  ;;  %v6873_v17 = vld [vmem:[%s13983_s4 + $0x1a0] sm:$0xf] }
 0x134   : > { %v1306_v5 = vadd.f32 %v1258_v18, %v1155_v40  ;;  %v10438_v37 = vor.u32 %v9308_v36, %v6657_v34  ;;  %v9364_v40 = vld [vmem:[%s13983_s4 + $0x1b4] sm:$0xf0]  ;;  %v9314_v34 = vld [vmem:[%s13983_s4 + $0x24] sm:$0xf0] }
 0x135   : > { %v1324_v43 = vmax.f32 %v1312_v6, 0.0  ;;  %v1317_v63 = vmax.f32 %v1305_v1, 0.0  ;;  %v685_v6 = vadd.f32 %v10374_v56, %v10345_v48  ;;  %v9324_v48 = vld [vmem:[%s13983_s4 + $0x74] sm:$0xf0]  ;;  %v6713_v56 = vld [vmem:[%s13983_s4 + $0x60] sm:$0xf]  ;;  %v6882_v4 = vor.u32 %v9364_v40, %v6881_v3 }
 0x136   : > { %v1318_v23 = vmax.f32 %v1306_v5, 0.0  ;;  %v6714_v50 = vor.u32 %v9322_v59, %v6713_v56  ;;  %v9318_v1 = vld [vmem:[%s13983_s4 + $0x44] sm:$0xf0]  ;;  %v6769_v5 = vld [vmem:[%s13983_s4 + $0xd0] sm:$0xf] }
 0x137   : > { %v1332_v46 = vpack.c.bf16 %v1324_v43, %v1324_v43  ;;  %v1325_v26 = vpack.c.bf16 %v1317_v63, %v1313_v52  ;;  %v848_v18 = vadd.f32 %v10379_v29, %v685_v6  ;;  %v6753_v6 = vld [vmem:[%s13983_s4 + $0xb0] sm:$0xf]  ;;  %v9326_v40 = vld [vmem:[%s13983_s4 + $0x84] sm:$0xf0] }
 0x138   : > { %v1326_v28 = vpack.c.bf16 %v1318_v23, %v1314_v24  ;;  %v6689_v23 = vld [vmem:[%s13983_s4 + $0x30] sm:$0xf] }
 0x139   : > { %v1130_v60 = vpop.f32.mrf.mxu2  ;;  %v1355_v27 = vsel %vm1344_vm5, %v1332_v46, 0  ;;  %v1001_v43 = vadd.f32 %v10390_v53, %v848_v18  ;;  %v6722_v53 = vor.u32 %v9324_v48, %v6721_v13  ;;  %v6898_v46 = vor.u32 %v9368_v30, %v6897_v25  ;;  %v6865_v24 = vld [vmem:[%s13983_s4 + $0x190] sm:$0xf]  ;;  %v9332_v18 = vld [vmem:[%s13983_s4 + $0xb4] sm:$0xf0] }
 0x13a   : > { %1405 = vmatpush.bf16.msrb.mxu3 %v1355_v27  ;;  %v1243_v12 = vpop.f32.mrf.mxu0  ;;  %v1299_v21 = vpop.f32.mrf.mxu3  ;;  %v9366_v60 = vld [vmem:[%s13983_s4 + $0x1c4] sm:$0xf0]  ;;  %v6673_v13 = vld [vmem:[%s13983_s4 + $0x10] sm:$0xf]  ;;  %v9312_v48 = vld [vmem:[%s13983_s4 + $0x14] sm:$0xf0] }
 0x13b   : > { %v1309_v41 = vadd.f32 %v1243_v12, %v1158_v47  ;;  %v1261_v44 = vpop.f32.mrf.mxu1  ;;  %v1156_v29 = vadd.f32 %v10396_v15, %v1001_v43  ;;  %v6785_v15 = vld [vmem:[%s13983_s4 + $0xf0] sm:$0xf]  ;;  %v6889_v47 = vld [vmem:[%s13983_s4 + $0x1c0] sm:$0xf]  ;;  %v9310_v30 = vld [vmem:[%s13983_s4 + $0x4] sm:$0xf0] }
 0x13c   : > { %v1310_v62 = vadd.f32 %v1261_v44, %v1159_v54  ;;  %v6786_v49 = vor.u32 %v9340_v51, %v6785_v15  ;;  %v6890_v54 = vor.u32 %v9366_v60, %v6889_v47  ;;  %v6777_v12 = vld [vmem:[%s13983_s4 + $0xe0] sm:$0xf]  ;;  %v6706_v44 = vor.u32 %v9320_v8, %v6705_v55  ;;  %v9321_v15 = vld [vmem:[%s13983_s4 + $0x64] sm:$0xf]  ;;  %v9339_v51 = vld [vmem:[%s13983_s4 + $0xf4] sm:$0xf] }
 0x13d   : > { %v1321_v9 = vmax.f32 %v1309_v41, 0.0  ;;  %v6665_v25 = vld [vmem:[%s13983_s4] sm:$0xf]  ;;  %v6787_v47 = vld [vmem:[%s13983_s4 + $0xf8] sm:$0xf0] }
 0x13e   : > { %v1322_v16 = vmax.f32 %v1310_v62, 0.0  ;;  %1406 = vmatpush.bf16.msrb.mxu3 %v1328_v2  ;;  %v6778_v62 = vor.u32 %v9338_v14, %v6777_v12  ;;  %v6737_v60 = vld [vmem:[%s13983_s4 + $0x90] sm:$0xf]  ;;  %v9328_v55 = vld [vmem:[%s13983_s4 + $0x94] sm:$0xf0] }
 0x13f   : > { %v1329_v7 = vpack.c.bf16 %v1321_v9, %v1321_v9  ;;  %v9336_v9 = vld [vmem:[%s13983_s4 + $0xd4] sm:$0xf0]  ;;  %v6738_v8 = vor.u32 %v9328_v55, %v6737_v60  ;;  %v6779_v14 = vld [vmem:[%s13983_s4 + $0xe8] sm:$0xf0]  ;;  %v9309_v60 = vld [vmem:[%s13983_s4 + $0x4] sm:$0xf] }
 0x140   : > { %v1330_v22 = vpack.c.bf16 %v1322_v16, %v1322_v16  ;;  %v9327_v55 = vld [vmem:[%s13983_s4 + $0x94] sm:$0xf] }
 0x141   : > { %6652 = vmatmul.msk.bf16.vlgmr.msrb.gmra.mxu3 %vm1340_vm6, %v10419_v10  ;;  %v1274_v33 = vpop.f32.mrf.mxu2  ;;  %v1346_v35 = vsel %vm1344_vm5, %v1329_v7, 0  ;;  %v9362_v7 = vld [vmem:[%s13983_s4 + $0x1a4] sm:$0xf0] }
 0x142   : > { %1472 = vmatpush.bf16.msra.mxu3 %v1355_v27  ;;  %1363 = vmatpush.bf16.msrb.mxu0 %v1346_v35  ;;  %v1349_v57 = vsel %vm1344_vm5, %v1330_v22, 0  ;;  %v1245_v19 = vpop.f32.mrf.mxu0  ;;  %v1303_v61 = vadd.f32 %v1274_v33, %v1152_v58  ;;  %v6698_v22 = vor.u32 %v9318_v1, %v6697_v45  ;;  %v6770_v33 = vor.u32 %v9336_v9, %v6769_v5  ;;  %v6715_v58 = vld [vmem:[%s13983_s4 + $0x68] sm:$0xf0]  ;;  %v9356_v45 = vld [vmem:[%s13983_s4 + $0x174] sm:$0xf0] }
 0x143   : > { %1377 = vmatpush.bf16.msrb.mxu1 %v1349_v57  ;;  %v1263_v20 = vpop.f32.mrf.mxu1  ;;  %v6874_v52 = vor.u32 %v9362_v7, %v6873_v17  ;;  %v9334_v19 = vld [vmem:[%s13983_s4 + $0xc4] sm:$0xf0]  ;;  %v9317_v1 = vld [vmem:[%s13983_s4 + $0x44] sm:$0xf]  ;;  %v9335_v5 = vld [vmem:[%s13983_s4 + $0xd4] sm:$0xf] }
 0x144   : > { %v1315_v11 = vmax.f32 %v1303_v61, 0.0  ;;  %v9360_v20 = vld [vmem:[%s13983_s4 + $0x194] sm:$0xf0]  ;;  %v9337_v61 = vld [vmem:[%s13983_s4 + $0xe4] sm:$0xf] }
 0x145   : > { %v6866_v36 = vor.u32 %v9360_v20, %v6865_v24  ;;  %v6782_v3 = vor.u32 %v9337_v61, %v6779_v14  ;;  %v6771_v9 = vld [vmem:[%s13983_s4 + $0xd8] sm:$0xf0]  ;;  %v6841_v7 = vld [vmem:[%s13983_s4 + $0x160] sm:$0xf]  ;;  %v9353_v24 = vld [vmem:[%s13983_s4 + $0x164] sm:$0xf] }
 0x146   : > { %1473 = vmatpush.bf16.msra.mxu3 %v1328_v2  ;;  %1364 = vmatpush.bf16.msrb.mxu0 %v1325_v26  ;;  %v6851_v17 = vld [vmem:[%s13983_s4 + $0x178] sm:$0xf0]  ;;  %v6843_v20 = vld [vmem:[%s13983_s4 + $0x168] sm:$0xf0] }
 0x147   : > { %1378 = vmatpush.bf16.msrb.mxu1 %v1326_v28  ;;  %v6819_v61 = vld [vmem:[%s13983_s4 + $0x138] sm:$0xf0] }
 0x149   : > { %v1276_v32 = vpop.f32.mrf.mxu2  ;;  %6649 = vmatmul.msk.bf16.vlgmr.msrb.gmra.mxu0 %vm1340_vm6, %v10419_v10 }
 0x14a   : > { %1430 = vmatpush.bf16.msra.mxu0 %v1346_v35  ;;  %6650 = vmatmul.msk.bf16.vlgmr.msrb.gmra.mxu1 %vm1340_vm6, %v10419_v10  ;;  %v1307_v31 = vadd.f32 %v1276_v32, %v1156_v29  ;;  %v9316_v35 = vld [vmem:[%s13983_s4 + $0x34] sm:$0xf0]  ;;  %v6674_v29 = vor.u32 %v9312_v48, %v6673_v13  ;;  %v6835_v13 = vld [vmem:[%s13983_s4 + $0x158] sm:$0xf0] }
 0x14b   : > { %1444 = vmatpush.bf16.msra.mxu1 %v1349_v57  ;;  %1900 = vmatpush.bf16.msrb.mxu3 %v6898_v46  ;;  %v6761_v57 = vld [vmem:[%s13983_s4 + $0xc0] sm:$0xf]  ;;  %v9330_v46 = vld [vmem:[%s13983_s4 + $0xa4] sm:$0xf0] }
 0x14c   : > { %v1319_v41 = vmax.f32 %v1307_v31, 0.0  ;;  %v6762_v32 = vor.u32 %v9334_v19, %v6761_v57  ;;  %v6763_v19 = vld [vmem:[%s13983_s4 + $0xc8] sm:$0xf0] }
 0x14e   : > { %1431 = vmatpush.bf16.msra.mxu0 %v1325_v26  ;;  %v1327_v63 = vpack.c.bf16 %v1319_v41, %v1315_v11  ;;  %v6690_v26 = vor.u32 %v9316_v35, %v6689_v23  ;;  %v6849_v41 = vld [vmem:[%s13983_s4 + $0x170] sm:$0xf]  ;;  %v9355_v11 = vld [vmem:[%s13983_s4 + $0x174] sm:$0xf]  ;;  %v6691_v35 = vld [vmem:[%s13983_s4 + $0x38] sm:$0xf0] }
 0x14f   : > { %1445 = vmatpush.bf16.msra.mxu1 %v1326_v28  ;;  %1901 = vmatpush.bf16.msrb.mxu3 %v6890_v54  ;;  %v6681_v28 = vld [vmem:[%s13983_s4 + $0x20] sm:$0xf]  ;;  %v6707_v54 = vld [vmem:[%s13983_s4 + $0x58] sm:$0xf0] }
 0x150   : > { %v6682_v43 = vor.u32 %v9314_v34, %v6681_v28  ;;  %v6846_v28 = vor.u32 %v9353_v24, %v6843_v20  ;;  %v9352_v34 = vld [vmem:[%s13983_s4 + $0x154] sm:$0xf0]  ;;  %v6899_v20 = vld [vmem:[%s13983_s4 + $0x1d8] sm:$0xf0] }
 0x151   : > { %6662 = vmatmul.msk.bf16.vlgmr.msra.gmra.mxu3 %vm1340_vm6, %v10438_v37  ;;  %v1279_v38 = vpop.f32.mrf.mxu2 }
 0x152   : > { %v1311_v39 = vadd.f32 %v1279_v38, %v1160_v0  ;;  %1856 = vmatpush.bf16.msrb.mxu0 %v6722_v53  ;;  %v6754_v0 = vor.u32 %v9332_v18, %v6753_v6  ;;  %v9323_v38 = vld [vmem:[%s13983_s4 + $0x74] sm:$0xf]  ;;  %v6723_v53 = vld [vmem:[%s13983_s4 + $0x78] sm:$0xf0]  ;;  %v9313_v6 = vld [vmem:[%s13983_s4 + $0x24] sm:$0xf] }
 0x153   : > { %1870 = vmatpush.bf16.msrb.mxu1 %v6786_v49  ;;  %1902 = vmatpush.bf16.msrb.mxu3 %v6882_v4  ;;  %v6726_v59 = vor.u32 %v9323_v38, %v6723_v53  ;;  %v9319_v49 = vld [vmem:[%s13983_s4 + $0x54] sm:$0xf]  ;;  %v6683_v18 = vld [vmem:[%s13983_s4 + $0x28] sm:$0xf0]  ;;  %v9350_v38 = vld [vmem:[%s13983_s4 + $0x144] sm:$0xf0] }
 0x154   : > { %v1323_v27 = vmax.f32 %v1311_v39, 0.0  ;;  %v6666_v39 = vor.u32 %v9310_v30, %v6665_v25  ;;  %v6710_v12 = vor.u32 %v9319_v49, %v6707_v54  ;;  %v6675_v25 = vld [vmem:[%s13983_s4 + $0x18] sm:$0xf0]  ;;  %v9329_v30 = vld [vmem:[%s13983_s4 + $0xa4] sm:$0xf] }
 0x155   : > { %v6739_v49 = vld [vmem:[%s13983_s4 + $0x98] sm:$0xf0]  ;;  %v9347_v54 = vld [vmem:[%s13983_s4 + $0x134] sm:$0xf] }
 0x156   : > { %v1331_v21 = vpack.c.bf16 %v1323_v27, %v1323_v27  ;;  %1857 = vmatpush.bf16.msrb.mxu0 %v6714_v50  ;;  %v6718_v50 = vor.u32 %v9321_v15, %v6715_v58  ;;  %v6790_v27 = vor.u32 %v9339_v51, %v6787_v47  ;;  %v6827_v15 = vld [vmem:[%s13983_s4 + $0x148] sm:$0xf0]  ;;  %v9348_v51 = vld [vmem:[%s13983_s4 + $0x134] sm:$0xf0]  ;;  %v6822_v14 = vor.u32 %v9347_v54, %v6819_v61 }
 0x157   : > { %1871 = vmatpush.bf16.msrb.mxu1 %v6778_v62  ;;  %1903 = vmatpush.bf16.msrb.mxu3 %v6874_v52  ;;  %v6699_v62 = vld [vmem:[%s13983_s4 + $0x48] sm:$0xf0]  ;;  %v9333_v52 = vld [vmem:[%s13983_s4 + $0xc4] sm:$0xf] }
 0x158   : > { %v1352_v2 = vsel %vm1344_vm5, %v1331_v21, 0  ;;  %v6729_v21 = vld [vmem:[%s13983_s4 + $0x80] sm:$0xf]  ;;  %v6702_v4 = vor.u32 %v9317_v1, %v6699_v62  ;;  %v6811_v62 = vld [vmem:[%s13983_s4 + $0x128] sm:$0xf0] }
 0x159   : > { %v1281_v16 = vpop.f32.mrf.mxu2  ;;  %1391 = vmatpush.bf16.msra.mxu2 %v1352_v2  ;;  %6659 = vmatmul.msk.bf16.vlgmr.msra.gmra.mxu0 %vm1340_vm6, %v10438_v37 }
 0x15a   : > { %6660 = vmatmul.msk.bf16.vlgmr.msra.gmra.mxu1 %vm1340_vm6, %v10438_v37  ;;  %1858 = vmatpush.bf16.msrb.mxu0 %v6706_v44  ;;  %v6730_v44 = vor.u32 %v9326_v40, %v6729_v21  ;;  %v6774_v16 = vor.u32 %v9335_v5, %v6771_v9  ;;  %v9346_v21 = vld [vmem:[%s13983_s4 + $0x124] sm:$0xf0]  ;;  %v6801_v5 = vld [vmem:[%s13983_s4 + $0x110] sm:$0xf]  ;;  %v9344_v9 = vld [vmem:[%s13983_s4 + $0x114] sm:$0xf0] }
 0x15b   : > { %1872 = vmatpush.bf16.msrb.mxu1 %v6770_v33  ;;  %1904 = vmatpush.bf16.msrb.mxu3 %v6866_v36  ;;  %v9315_v33 = vld [vmem:[%s13983_s4 + $0x34] sm:$0xf] }
 0x15c   : > { %v6694_v57 = vor.u32 %v9315_v33, %v6691_v35  ;;  %v9342_v33 = vld [vmem:[%s13983_s4 + $0x104] sm:$0xf0] }
 0x15d   : > { %1392 = vmatpush.bf16.msra.mxu2 %v1327_v63 }
 0x15e   : > { %1859 = vmatpush.bf16.msrb.mxu0 %v6698_v22  ;;  %v6854_v22 = vor.u32 %v9355_v11, %v6851_v17  ;;  %v9343_v17 = vld [vmem:[%s13983_s4 + $0x114] sm:$0xf] }
 0x15f   : > { %1873 = vmatpush.bf16.msrb.mxu1 %v6762_v32  ;;  %v6833_v32 = vld [vmem:[%s13983_s4 + $0x150] sm:$0xf] }
 0x160   : > { %6651 = vmatmul.msk.bf16.vlgmr.msra.gmra.mxu2 %vm1340_vm6, %v10419_v10  ;;  %v9358_v10 = vld [vmem:[%s13983_s4 + $0x184] sm:$0xf0]  ;;  %v6834_v36 = vor.u32 %v9352_v34, %v6833_v32  ;;  %v9365_v34 = vld [vmem:[%s13983_s4 + $0x1c4] sm:$0xf] }
 0x161   : > { %1458 = vmatpush.bf16.msrb.mxu2 %v1352_v2  ;;  %v6858_v56 = vor.u32 %v9358_v10, %v6857_v42  ;;  %v6850_v2 = vor.u32 %v9356_v45, %v6849_v41  ;;  %v9331_v42 = vld [vmem:[%s13983_s4 + $0xb4] sm:$0xf]  ;;  %v6686_v10 = vor.u32 %v9313_v6, %v6683_v18  ;;  %v9325_v41 = vld [vmem:[%s13983_s4 + $0x84] sm:$0xf] }
 0x162   : > { %1860 = vmatpush.bf16.msrb.mxu0 %v6690_v26  ;;  %v6766_v26 = vor.u32 %v9333_v52, %v6763_v19  ;;  %v9345_v45 = vld [vmem:[%s13983_s4 + $0x124] sm:$0xf]  ;;  %v9367_v19 = vld [vmem:[%s13983_s4 + $0x1d4] sm:$0xf] }
 0x163   : > { %1874 = vmatpush.bf16.msrb.mxu1 %v6754_v0  ;;  %1905 = vmatpush.bf16.msrb.mxu3 %v6858_v56  ;;  %v9351_v0 = vld [vmem:[%s13983_s4 + $0x154] sm:$0xf]  ;;  %v9341_v52 = vld [vmem:[%s13983_s4 + $0x104] sm:$0xf] }
 0x164   : > { %v6838_v56 = vor.u32 %v9351_v0, %v6835_v13 }
 0x165   : > { %1459 = vmatpush.bf16.msrb.mxu2 %v1327_v63  ;;  %v9354_v63 = vld [vmem:[%s13983_s4 + $0x164] sm:$0xf0] }
 0x166   : > { %1861 = vmatpush.bf16.msrb.mxu0 %v6682_v43  ;;  %v6842_v23 = vor.u32 %v9354_v63, %v6841_v7  ;;  %v6755_v43 = vld [vmem:[%s13983_s4 + $0xb8] sm:$0xf0] }
 0x167   : > { %1912 = vmatpush.bf16.msra.mxu3 %v6726_v59  ;;  %v6758_v48 = vor.u32 %v9331_v42, %v6755_v43  ;;  %v9311_v59 = vld [vmem:[%s13983_s4 + $0x14] sm:$0xf]  ;;  %v6803_v7 = vld [vmem:[%s13983_s4 + $0x118] sm:$0xf0] }
 0x168   : > { %v9363_v42 = vld [vmem:[%s13983_s4 + $0x1b4] sm:$0xf] }
 0x169   : > { %1884 = vmatpush.bf16.msra.mxu2 %v6850_v2 }
 0x16a   : > { %1862 = vmatpush.bf16.msrb.mxu0 %v6674_v29  ;;  %v6825_v29 = vld [vmem:[%s13983_s4 + $0x140] sm:$0xf] }
 0x16b   : > { %1913 = vmatpush.bf16.msra.mxu3 %v6718_v50  ;;  %v6826_v53 = vor.u32 %v9350_v38, %v6825_v29  ;;  %v6817_v50 = vld [vmem:[%s13983_s4 + $0x130] sm:$0xf] }
 0x16c   : > { %v6818_v47 = vor.u32 %v9348_v51, %v6817_v50  ;;  %v9416_v50 = vld [vmem:[%s13983_s4 + $0x354] sm:$0xf0]  ;;  %v7199_v51 = vld [vmem:[%s13983_s4 + $0x3b0] sm:$0xf] }
 0x16d   : > { %1885 = vmatpush.bf16.msra.mxu2 %v6842_v23  ;;  %v6793_v23 = vld [vmem:[%s13983_s4 + $0x100] sm:$0xf] }
 0x16e   : > { %1863 = vmatpush.bf16.msrb.mxu0 %v6666_v39  ;;  %v6747_v39 = vld [vmem:[%s13983_s4 + $0xa8] sm:$0xf0]  ;;  %v6794_v35 = vor.u32 %v9342_v33, %v6793_v23 }
 0x16f   : > { %1914 = vmatpush.bf16.msra.mxu3 %v6710_v12  ;;  %v6750_v58 = vor.u32 %v9329_v30, %v6747_v39  ;;  %v6742_v12 = vor.u32 %v9327_v55, %v6739_v49  ;;  %v7087_v30 = vld [vmem:[%s13983_s4 + $0x2d0] sm:$0xf]  ;;  %v9428_v55 = vld [vmem:[%s13983_s4 + $0x3b4] sm:$0xf0]  ;;  %v6859_v49 = vld [vmem:[%s13983_s4 + $0x188] sm:$0xf0] }
 0x170   : > { %6661 = vmatmul.msk.bf16.vlgmr.msrb.gmra.mxu2 %vm1340_vm6, %v10438_v37  ;;  %v6745_v37 = vld [vmem:[%s13983_s4 + $0xa0] sm:$0xf] }
 0x171   : > { %v6746_v31 = vor.u32 %v9330_v46, %v6745_v37  ;;  %1886 = vmatpush.bf16.msra.mxu2 %v6834_v36  ;;  %v6678_v37 = vor.u32 %v9311_v59, %v6675_v25  ;;  %v9349_v46 = vld [vmem:[%s13983_s4 + $0x144] sm:$0xf]  ;;  %v6891_v36 = vld [vmem:[%s13983_s4 + $0x1c8] sm:$0xf0]  ;;  %v6867_v59 = vld [vmem:[%s13983_s4 + $0x198] sm:$0xf0] }
 0x172   : > { %1926 = vmatpush.bf16.msra.mxu0 %v6790_v27  ;;  %v6667_v27 = vld [vmem:[%s13983_s4 + $0x8] sm:$0xf0]  ;;  %v6894_v18 = vor.u32 %v9365_v34, %v6891_v36  ;;  %v7175_v34 = vld [vmem:[%s13983_s4 + $0x380] sm:$0xf]  ;;  %v9422_v36 = vld [vmem:[%s13983_s4 + $0x384] sm:$0xf0] }
 0x173   : > { %1875 = vmatpush.bf16.msrb.mxu1 %v6746_v31  ;;  %1915 = vmatpush.bf16.msra.mxu3 %v6702_v4  ;;  %v6830_v31 = vor.u32 %v9349_v46, %v6827_v15  ;;  %v6814_v4 = vor.u32 %v9345_v45, %v6811_v62  ;;  %v7143_v45 = vld [vmem:[%s13983_s4 + $0x340] sm:$0xf]  ;;  %v7200_v62 = vor.u32 %v9428_v55, %v7199_v51 }
 0x175   : > { %1887 = vmatpush.bf16.msra.mxu2 %v6826_v53  ;;  %v9359_v53 = vld [vmem:[%s13983_s4 + $0x194] sm:$0xf] }
 0x176   : > { %1927 = vmatpush.bf16.msra.mxu0 %v6782_v3  ;;  %v6809_v3 = vld [vmem:[%s13983_s4 + $0x120] sm:$0xf]  ;;  %v6870_v39 = vor.u32 %v9359_v53, %v6867_v59  ;;  %v9390_v53 = vld [vmem:[%s13983_s4 + $0x284] sm:$0xf0] }
 0x177   : > { %1876 = vmatpush.bf16.msrb.mxu1 %v6738_v8  ;;  %1916 = vmatpush.bf16.msra.mxu3 %v6694_v57  ;;  %v6670_v8 = vor.u32 %v9309_v60, %v6667_v27  ;;  %v6810_v40 = vor.u32 %v9346_v21, %v6809_v3  ;;  %v6795_v57 = vld [vmem:[%s13983_s4 + $0x108] sm:$0xf0] }
 0x178   : > { %v6798_v24 = vor.u32 %v9341_v52, %v6795_v57  ;;  %v9424_v52 = vld [vmem:[%s13983_s4 + $0x394] sm:$0xf0]  ;;  %v7063_v57 = vld [vmem:[%s13983_s4 + $0x2a0] sm:$0xf] }
 0x179   : > { %1888 = vmatpush.bf16.msra.mxu2 %v6818_v47 }
 0x17a   : > { %1928 = vmatpush.bf16.msra.mxu0 %v6774_v16  ;;  %v6802_v16 = vor.u32 %v9344_v9, %v6801_v5  ;;  %v7191_v5 = vld [vmem:[%s13983_s4 + $0x3a0] sm:$0xf]  ;;  %v9426_v9 = vld [vmem:[%s13983_s4 + $0x3a4] sm:$0xf0] }
 0x17b   : > { %1877 = vmatpush.bf16.msrb.mxu1 %v6730_v44  ;;  %1917 = vmatpush.bf16.msra.mxu3 %v6686_v10  ;;  %v6731_v44 = vld [vmem:[%s13983_s4 + $0x88] sm:$0xf0]  ;;  %v6883_v10 = vld [vmem:[%s13983_s4 + $0x1b8] sm:$0xf0]  ;;  %v7192_v23 = vor.u32 %v9426_v9, %v7191_v5  ;;  %v9413_v9 = vld [vmem:[%s13983_s4 + $0x344] sm:$0xf] }
 0x17c   : > { %v6734_v1 = vor.u32 %v9325_v41, %v6731_v44  ;;  %v6886_v43 = vor.u32 %v9363_v42, %v6883_v10  ;;  %v9392_v42 = vld [vmem:[%s13983_s4 + $0x294] sm:$0xf0]  ;;  %v7025_v5 = vld [vmem:[%s13983_s4 + $0x258] sm:$0xf0] }
 0x17d   : > { %1889 = vmatpush.bf16.msra.mxu2 %v6810_v40 }
 0x17e   : > { %1929 = vmatpush.bf16.msra.mxu0 %v6766_v26 }
 0x17f   : > { %1940 = vmatpush.bf16.msra.mxu1 %v6854_v22  ;;  %1918 = vmatpush.bf16.msra.mxu3 %v6678_v37  ;;  %v6806_v22 = vor.u32 %v9343_v17, %v6803_v7  ;;  %v9400_v37 = vld [vmem:[%s13983_s4 + $0x2d4] sm:$0xf0] }
 0x180   : > { %v7088_v27 = vor.u32 %v9400_v37, %v7087_v30  ;;  %v9396_v17 = vld [vmem:[%s13983_s4 + $0x2b4] sm:$0xf0]  ;;  %v9406_v30 = vld [vmem:[%s13983_s4 + $0x304] sm:$0xf0] }
 0x181   : > { %1890 = vmatpush.bf16.msra.mxu2 %v6802_v16  ;;  %v7071_v16 = vld [vmem:[%s13983_s4 + $0x2b0] sm:$0xf] }
 0x182   : > { %1930 = vmatpush.bf16.msra.mxu0 %v6758_v48  ;;  %v9361_v48 = vld [vmem:[%s13983_s4 + $0x1a4] sm:$0xf]  ;;  %v7072_v33 = vor.u32 %v9396_v17, %v7071_v16 }
 0x183   : > { %1941 = vmatpush.bf16.msra.mxu1 %v6846_v28  ;;  %1919 = vmatpush.bf16.msra.mxu3 %v6670_v8  ;;  %v6902_v28 = vor.u32 %v9367_v19, %v6899_v20  ;;  %v9357_v8 = vld [vmem:[%s13983_s4 + $0x184] sm:$0xf]  ;;  %v9394_v19 = vld [vmem:[%s13983_s4 + $0x2a4] sm:$0xf0]  ;;  %v7127_v20 = vld [vmem:[%s13983_s4 + $0x320] sm:$0xf] }
 0x184   : > { %v6862_v21 = vor.u32 %v9357_v8, %v6859_v49  ;;  %v7031_v8 = vld [vmem:[%s13983_s4 + $0x260] sm:$0xf]  ;;  %v9386_v49 = vld [vmem:[%s13983_s4 + $0x264] sm:$0xf0] }
 0x185   : > { %1891 = vmatpush.bf16.msra.mxu2 %v6794_v35  ;;  %v7183_v35 = vld [vmem:[%s13983_s4 + $0x390] sm:$0xf] }
 0x186   : > { %1931 = vmatpush.bf16.msra.mxu0 %v6750_v58 }
 0x187   : > { %1942 = vmatpush.bf16.msra.mxu1 %v6838_v56  ;;  %v6875_v56 = vld [vmem:[%s13983_s4 + $0x1a8] sm:$0xf0] }
 0x188   : > { %v6878_v38 = vor.u32 %v9361_v48, %v6875_v56  ;;  %v7167_v56 = vld [vmem:[%s13983_s4 + $0x370] sm:$0xf] }
 0x189   : > { %1956 = vmatpush.bf16.msrb.mxu2 %v6902_v28  ;;  %v7184_v28 = vor.u32 %v9424_v52, %v7183_v35  ;;  %v7015_v52 = vld [vmem:[%s13983_s4 + $0x240] sm:$0xf] }
 0x18a   : > { %1932 = vmatpush.bf16.msra.mxu0 %v6742_v12  ;;  %v7079_v12 = vld [vmem:[%s13983_s4 + $0x2c0] sm:$0xf] }
 0x18b   : > { %1943 = vmatpush.bf16.msra.mxu1 %v6830_v31  ;;  %v7151_v31 = vld [vmem:[%s13983_s4 + $0x350] sm:$0xf] }
 0x18c   : > { %v7152_v40 = vor.u32 %v9416_v50, %v7151_v31  ;;  %v7039_v31 = vld [vmem:[%s13983_s4 + $0x270] sm:$0xf]  ;;  %v9388_v50 = vld [vmem:[%s13983_s4 + $0x274] sm:$0xf0] }
 0x18d   : > { %1957 = vmatpush.bf16.msrb.mxu2 %v6894_v18  ;;  %v7055_v18 = vld [vmem:[%s13983_s4 + $0x290] sm:$0xf]  ;;  %v7040_v55 = vor.u32 %v9388_v50, %v7039_v31  ;;  %v9407_v31 = vld [vmem:[%s13983_s4 + $0x314] sm:$0xf]  ;;  %v7121_v50 = vld [vmem:[%s13983_s4 + $0x318] sm:$0xf0] }
 0x18e   : > { %1933 = vmatpush.bf16.msra.mxu0 %v6734_v1  ;;  %v9414_v1 = vld [vmem:[%s13983_s4 + $0x344] sm:$0xf0]  ;;  %v7056_v48 = vor.u32 %v9392_v42, %v7055_v18  ;;  %v7007_v42 = vld [vmem:[%s13983_s4 + $0x230] sm:$0xf] }
 0x18f   : > { %1944 = vmatpush.bf16.msra.mxu1 %v6822_v14  ;;  %v9398_v14 = vld [vmem:[%s13983_s4 + $0x2c4] sm:$0xf0]  ;;  %v7144_v7 = vor.u32 %v9414_v1, %v7143_v45 }
 0x190   : > { %v9402_v45 = vld [vmem:[%s13983_s4 + $0x2e4] sm:$0xf0] }
 0x191   : > { %1958 = vmatpush.bf16.msrb.mxu2 %v6886_v43  ;;  %v7119_v43 = vld [vmem:[%s13983_s4 + $0x310] sm:$0xf] }
 0x193   : > { %1945 = vmatpush.bf16.msra.mxu1 %v6814_v4 }
 0x195   : > { %1959 = vmatpush.bf16.msrb.mxu2 %v6878_v38  ;;  %v7047_v38 = vld [vmem:[%s13983_s4 + $0x280] sm:$0xf] }
 0x197   : > { %1946 = vmatpush.bf16.msra.mxu1 %v6806_v22  ;;  %v9412_v22 = vld [vmem:[%s13983_s4 + $0x334] sm:$0xf0] }
 0x199   : > { %1960 = vmatpush.bf16.msrb.mxu2 %v6870_v39  ;;  %v7048_v39 = vor.u32 %v9390_v53, %v7047_v38  ;;  %v9423_v38 = vld [vmem:[%s13983_s4 + $0x394] sm:$0xf]  ;;  %v7185_v53 = vld [vmem:[%s13983_s4 + $0x398] sm:$0xf0] }
 0x19b   : > { %1947 = vmatpush.bf16.msra.mxu1 %v6798_v24 }
 0x19d   : > { %1961 = vmatpush.bf16.msrb.mxu2 %v6862_v21  ;;  %v7032_v21 = vor.u32 %v9386_v49, %v7031_v8  ;;  %v9376_v8 = vld [vmem:[%s13983_s4 + $0x214] sm:$0xf0]  ;;  %v7124_v49 = vor.u32 %v9407_v31, %v7121_v50  ;;  %v7049_v31 = vld [vmem:[%s13983_s4 + $0x288] sm:$0xf0] }
 0x1c4   : > { %v10758_v2 = vpop.f32.mrf.mxu3 }
 0x1c6   : > { %v10766_v11 = vpop.f32.mrf.mxu0 }
 0x1c7   : > { %v10774_v63 = vpop.f32.mrf.mxu1 }
 0x1cc   : > { %v1410_v26 = vpop.f32.mrf.mxu3 }
 0x1ce   : > { %v1368_v32 = vpop.f32.mrf.mxu0 }
 0x1cf   : > { %v1382_v6 = vpop.f32.mrf.mxu1 }
 0x1d4   : > { %v1475_v0 = vpop.f32.mrf.mxu3 }
 0x1d5   : > { %v1483_v25 = vmax.f32 %v10758_v2, %v1475_v0  ;;  %v7080_v2 = vor.u32 %v9398_v14, %v7079_v12  ;;  %v9408_v0 = vld [vmem:[%s13983_s4 + $0x314] sm:$0xf0]  ;;  %v9415_v12 = vld [vmem:[%s13983_s4 + $0x354] sm:$0xf]  ;;  %v7153_v14 = vld [vmem:[%s13983_s4 + $0x358] sm:$0xf0] }
 0x1d6   : > { %v1433_v13 = vpop.f32.mrf.mxu0  ;;  %v7120_v59 = vor.u32 %v9408_v0, %v7119_v43 }
 0x1d7   : > { %v1447_v29 = vpop.f32.mrf.mxu1  ;;  %v1480_v15 = vmax.f32 %v10766_v11, %v1433_v13  ;;  %v7176_v13 = vor.u32 %v9422_v36, %v7175_v34  ;;  %v9425_v34 = vld [vmem:[%s13983_s4 + $0x3a4] sm:$0xf]  ;;  %v7193_v36 = vld [vmem:[%s13983_s4 + $0x3a8] sm:$0xf0] }
 0x1d8   : > { %v1481_v60 = vmax.f32 %v10774_v63, %v1447_v29  ;;  %v7135_v63 = vld [vmem:[%s13983_s4 + $0x330] sm:$0xf]  ;;  %v9420_v29 = vld [vmem:[%s13983_s4 + $0x374] sm:$0xf0]  ;;  %v7196_v0 = vor.u32 %v9425_v34, %v7193_v36 }
 0x1d9   : > { %v7136_v24 = vor.u32 %v9412_v22, %v7135_v63  ;;  %v7168_v37 = vor.u32 %v9420_v29, %v7167_v56  ;;  %v9427_v63 = vld [vmem:[%s13983_s4 + $0x3b4] sm:$0xf]  ;;  %v7201_v22 = vld [vmem:[%s13983_s4 + $0x3b8] sm:$0xf0]  ;;  %v9409_v56 = vld [vmem:[%s13983_s4 + $0x324] sm:$0xf] }
 0x1da   : > { %v7129_v29 = vld [vmem:[%s13983_s4 + $0x328] sm:$0xf0] }
 0x1dc   : > { %v1477_v46 = vpop.f32.mrf.mxu3 }
 0x1dd   : > { %v1487_v58 = vmax.f32 %v1410_v26, %v1477_v46  ;;  %v9410_v26 = vld [vmem:[%s13983_s4 + $0x324] sm:$0xf0]  ;;  %v7159_v46 = vld [vmem:[%s13983_s4 + $0x360] sm:$0xf] }
 0x1de   : > { %v1435_v47 = vpop.f32.mrf.mxu0  ;;  %v7128_v10 = vor.u32 %v9410_v26, %v7127_v20  ;;  %v9381_v20 = vld [vmem:[%s13983_s4 + $0x244] sm:$0xf]  ;;  %v7017_v26 = vld [vmem:[%s13983_s4 + $0x248] sm:$0xf0] }
 0x1df   : > { %v10845_v54 = vpack.c.bf16 %v1487_v58, %v1483_v25  ;;  %v1484_v61 = vmax.f32 %v1368_v32, %v1435_v47  ;;  %v1449_v3 = vpop.f32.mrf.mxu1  ;;  %v7064_v32 = vor.u32 %v9394_v19, %v7063_v57  ;;  %v7111_v25 = vld [vmem:[%s13983_s4 + $0x300] sm:$0xf]  ;;  %v7103_v47 = vld [vmem:[%s13983_s4 + $0x2f0] sm:$0xf]  ;;  %v9382_v57 = vld [vmem:[%s13983_s4 + $0x244] sm:$0xf0]  ;;  %v7020_v18 = vor.u32 %v9381_v20, %v7017_v26 }
 0x1e0   : > { %v1485_v41 = vmax.f32 %v1382_v6, %v1449_v3  ;;  %v7112_v51 = vor.u32 %v9406_v30, %v7111_v25  ;;  %v7023_v3 = vld [vmem:[%s13983_s4 + $0x250] sm:$0xf]  ;;  %v6999_v30 = vld [vmem:[%s13983_s4 + $0x220] sm:$0xf]  ;;  %v9371_v20 = vld [vmem:[%s13983_s4 + $0x1f4] sm:$0xf] }
 0x1e1   : > { %v10853_v44 = vpack.c.bf16 %v1484_v61, %v1480_v15  ;;  %6903 = vmatmul.msk.bf16.vlgmr.msrb.gmra.mxu3 %vm1852_vm7, %v10845_v54  ;;  %v9418_v15 = vld [vmem:[%s13983_s4 + $0x364] sm:$0xf0]  ;;  %v6977_v26 = vld [vmem:[%s13983_s4 + $0x1f8] sm:$0xf0] }
 0x1e2   : > { %2343 = vmatpush.bf16.msrb.mxu3 %v7088_v27  ;;  %v10863_v4 = vpack.c.bf16 %v1485_v41, %v1481_v60  ;;  %v9404_v60 = vld [vmem:[%s13983_s4 + $0x2f4] sm:$0xf0]  ;;  %v7160_v27 = vor.u32 %v9418_v15, %v7159_v46  ;;  %v7095_v41 = vld [vmem:[%s13983_s4 + $0x2e0] sm:$0xf]  ;;  %v7188_v46 = vor.u32 %v9423_v38, %v7185_v53  ;;  %v9377_v15 = vld [vmem:[%s13983_s4 + $0x224] sm:$0xf]  ;;  %v6980_v36 = vor.u32 %v9371_v20, %v6977_v26 }
 0x1e3   : > { %v10871_v11 = vpop.f32.mrf.mxu2  ;;  %1864 = vmatmul.bf16.vlgmr.msrb.gmra.mxu0 %v10853_v44  ;;  %v7104_v61 = vor.u32 %v9404_v60, %v7103_v47  ;;  %v7177_v47 = vld [vmem:[%s13983_s4 + $0x388] sm:$0xf0]  ;;  %v9397_v38 = vld [vmem:[%s13983_s4 + $0x2c4] sm:$0xf]  ;;  %v7241_v20 = vld [vmem:[%s13984_s5 + $0x40] sm:$0xf] }
 0x1e4   : > { %2357 = vmatpush.bf16.msrb.mxu0 %v7152_v40  ;;  %1878 = vmatmul.bf16.vlgmr.msrb.gmra.mxu1 %v10863_v4  ;;  %v9384_v40 = vld [vmem:[%s13983_s4 + $0x254] sm:$0xf0]  ;;  %v7081_v53 = vld [vmem:[%s13983_s4 + $0x2c8] sm:$0xf0]  ;;  %v9439_v26 = vld [vmem:[%s13984_s5 + $0x4c] sm:$0xf0] }
 0x1e5   : > { %2373 = vmatpush.bf16.msrb.mxu1 %v7200_v62  ;;  %v7156_v62 = vor.u32 %v9415_v12, %v7153_v14  ;;  %v9375_v12 = vld [vmem:[%s13983_s4 + $0x214] sm:$0xf]  ;;  %v6993_v14 = vld [vmem:[%s13983_s4 + $0x218] sm:$0xf0] }
 0x1e6   : > { %2344 = vmatpush.bf16.msrb.mxu3 %v7080_v2  ;;  %v9383_v2 = vld [vmem:[%s13983_s4 + $0x254] sm:$0xf] }
 0x1e7   : > { %v7028_v35 = vor.u32 %v9383_v2, %v7025_v5  ;;  %v9374_v2 = vld [vmem:[%s13983_s4 + $0x204] sm:$0xf0] }
 0x1e8   : > { %2358 = vmatpush.bf16.msrb.mxu0 %v7144_v7  ;;  %v7145_v7 = vld [vmem:[%s13983_s4 + $0x348] sm:$0xf0] }
 0x1e9   : > { %2374 = vmatpush.bf16.msrb.mxu1 %v7192_v23  ;;  %v7024_v23 = vor.u32 %v9384_v40, %v7023_v3  ;;  %v7148_v19 = vor.u32 %v9413_v9, %v7145_v7  ;;  %v9405_v3 = vld [vmem:[%s13983_s4 + $0x304] sm:$0xf]  ;;  %v9419_v40 = vld [vmem:[%s13983_s4 + $0x374] sm:$0xf] }
 0x1ea   : > { %2345 = vmatpush.bf16.msrb.mxu3 %v7072_v33  ;;  %v9403_v7 = vld [vmem:[%s13983_s4 + $0x2f4] sm:$0xf] }
 0x1eb   : > { %v10911_v6 = vpop.f32.mrf.mxu2 }
 0x1ec   : > { %2359 = vmatpush.bf16.msrb.mxu0 %v7136_v24  ;;  %v7204_v24 = vor.u32 %v9427_v63, %v7201_v22  ;;  %v7105_v63 = vld [vmem:[%s13983_s4 + $0x2f8] sm:$0xf0]  ;;  %v9417_v22 = vld [vmem:[%s13983_s4 + $0x364] sm:$0xf] }
 0x1ed   : > { %2375 = vmatpush.bf16.msrb.mxu1 %v7184_v28  ;;  %v9411_v28 = vld [vmem:[%s13983_s4 + $0x334] sm:$0xf] }
 0x1ee   : > { %2346 = vmatpush.bf16.msrb.mxu3 %v7064_v32  ;;  %v7137_v32 = vld [vmem:[%s13983_s4 + $0x338] sm:$0xf0] }
 0x1ef   : > { %v7140_v43 = vor.u32 %v9411_v28, %v7137_v32  ;;  %v9401_v28 = vld [vmem:[%s13983_s4 + $0x2e4] sm:$0xf]  ;;  %v7097_v32 = vld [vmem:[%s13983_s4 + $0x2e8] sm:$0xf0] }
 0x1f0   : > { %2360 = vmatpush.bf16.msrb.mxu0 %v7128_v10  ;;  %v9380_v10 = vld [vmem:[%s13983_s4 + $0x234] sm:$0xf0] }
 0x1f1   : > { %1920 = vmatmul.bf16.vlgmr.msra.gmra.mxu3 %v10853_v44  ;;  %2376 = vmatpush.bf16.msrb.mxu1 %v7176_v13  ;;  %v9379_v13 = vld [vmem:[%s13983_s4 + $0x234] sm:$0xf] }
 0x1f2   : > { %2347 = vmatpush.bf16.msrb.mxu3 %v7056_v48  ;;  %v7009_v48 = vld [vmem:[%s13983_s4 + $0x238] sm:$0xf0] }
 0x1f3   : > { %v1461_v58 = vpop.f32.mrf.mxu2  ;;  %1934 = vmatmul.bf16.vlgmr.msra.gmra.mxu0 %v10863_v4  ;;  %v7012_v25 = vor.u32 %v9379_v13, %v7009_v48  ;;  %v7089_v13 = vld [vmem:[%s13983_s4 + $0x2d8] sm:$0xf0] }
 0x1f4   : > { %2361 = vmatpush.bf16.msrb.mxu0 %v7120_v59  ;;  %v1482_v16 = vmax.f32 %v10871_v11, %v1461_v58  ;;  %v7096_v11 = vor.u32 %v9402_v45, %v7095_v41  ;;  %v7008_v59 = vor.u32 %v9380_v10, %v7007_v42  ;;  %v7001_v58 = vld [vmem:[%s13983_s4 + $0x228] sm:$0xf0]  ;;  %v7169_v41 = vld [vmem:[%s13983_s4 + $0x378] sm:$0xf0]  ;;  %v7100_v42 = vor.u32 %v9401_v28, %v7097_v32  ;;  %v9369_v10 = vld [vmem:[%s13983_s4 + $0x1e4] sm:$0xf] }
 0x1f5   : > { %2377 = vmatpush.bf16.msrb.mxu1 %v7168_v37  ;;  %v9378_v37 = vld [vmem:[%s13983_s4 + $0x224] sm:$0xf0]  ;;  %v7172_v9 = vor.u32 %v9419_v40, %v7169_v41  ;;  %v7323_v40 = vld [vmem:[%s13984_s5 + $0xf0] sm:$0xf0]  ;;  %v9441_v28 = vld [vmem:[%s13984_s5 + $0x64] sm:$0xf]  ;;  %v7242_v32 = vor.u32 %v9439_v26, %v7241_v20 }
 0x1f6   : > { %2348 = vmatpush.bf16.msrb.mxu3 %v7048_v39  ;;  %v7132_v39 = vor.u32 %v9409_v56, %v7129_v29  ;;  %v7000_v60 = vor.u32 %v9378_v37, %v6999_v30  ;;  %v7065_v37 = vld [vmem:[%s13983_s4 + $0x2a8] sm:$0xf0]  ;;  %v9475_v20 = vld [vmem:[%s13984_s5 + $0x16c] sm:$0xf0]  ;;  %v9477_v26 = vld [vmem:[%s13984_s5 + $0x184] sm:$0xf] }
 0x1f8   : > { %2362 = vmatpush.bf16.msrb.mxu0 %v7112_v51  ;;  %v9421_v51 = vld [vmem:[%s13983_s4 + $0x384] sm:$0xf] }
 0x1f9   : > { %2378 = vmatpush.bf16.msrb.mxu1 %v7160_v27  ;;  %v7004_v27 = vor.u32 %v9377_v15, %v7001_v58  ;;  %v9389_v58 = vld [vmem:[%s13983_s4 + $0x284] sm:$0xf] }
 0x1fa   : > { %2349 = vmatpush.bf16.msrb.mxu3 %v7040_v55  ;;  %v6991_v55 = vld [vmem:[%s13983_s4 + $0x210] sm:$0xf]  ;;  %v7052_v50 = vor.u32 %v9389_v58, %v7049_v31  ;;  %v9454_v58 = vld [vmem:[%s13984_s5 + $0xcc] sm:$0xf]  ;;  %v7315_v31 = vld [vmem:[%s13984_s5 + $0xd8] sm:$0xf0] }
 0x1fb   : > { %v1463_v1 = vpop.f32.mrf.mxu2  ;;  %v6992_v45 = vor.u32 %v9376_v8, %v6991_v55  ;;  %v7033_v55 = vld [vmem:[%s13983_s4 + $0x268] sm:$0xf0] }
 0x1fc   : > { %v1486_v17 = vmax.f32 %v10911_v6, %v1463_v1  ;;  %2363 = vmatpush.bf16.msrb.mxu0 %v7104_v61  ;;  %v7016_v6 = vor.u32 %v9382_v57, %v7015_v52  ;;  %v7180_v61 = vor.u32 %v9421_v51, %v7177_v47  ;;  %v6996_v1 = vor.u32 %v9375_v12, %v6993_v14  ;;  %v6975_v52 = vld [vmem:[%s13983_s4 + $0x1f0] sm:$0xf]  ;;  %v9372_v57 = vld [vmem:[%s13983_s4 + $0x1f4] sm:$0xf0]  ;;  %v9387_v51 = vld [vmem:[%s13983_s4 + $0x274] sm:$0xf] }
 0x1fd   : > { %v6976_v34 = vor.u32 %v9372_v57, %v6975_v52  ;;  %v7041_v47 = vld [vmem:[%s13983_s4 + $0x278] sm:$0xf0]  ;;  %v7305_v14 = vld [vmem:[%s13984_s5 + $0xc0] sm:$0xf]  ;;  %v9445_v52 = vld [vmem:[%s13984_s5 + $0x84] sm:$0xf] }
 0x1fe   : > { %v11007_v33 = vpack.c.bf16 %v1486_v17, %v1482_v16  ;;  %2350 = vmatpush.bf16.msrb.mxu3 %v7032_v21  ;;  %v7113_v21 = vld [vmem:[%s13983_s4 + $0x308] sm:$0xf0]  ;;  %v9373_v16 = vld [vmem:[%s13983_s4 + $0x204] sm:$0xf] }
 0x1ff   : > { %v7116_v5 = vor.u32 %v9405_v3, %v7113_v21  ;;  %v6985_v17 = vld [vmem:[%s13983_s4 + $0x208] sm:$0xf0]  ;;  %v9455_v3 = vld [vmem:[%s13984_s5 + $0xcc] sm:$0xf0] }
 0x200   : > { %1892 = vmatmul.bf16.vlgmr.msra.gmra.mxu2 %v11007_v33  ;;  %1948 = vmatmul.bf16.vlgmr.msra.gmra.mxu1 %v11007_v33  ;;  %v7306_v21 = vor.u32 %v9455_v3, %v7305_v14  ;;  %v7435_v14 = vld [vmem:[%s13984_s5 + $0x1d0] sm:$0xf0]  ;;  %v9450_v3 = vld [vmem:[%s13984_s5 + $0xac] sm:$0xf] }
 0x201   : > { %2329 = vmatpush.bf16.msra.mxu2 %v7024_v23  ;;  %2351 = vmatmul.bf16.vlgmr.msrb.gmra.mxu3 %v10863_v4  ;;  %v7161_v23 = vld [vmem:[%s13983_s4 + $0x368] sm:$0xf0] }
 0x202   : > { %2413 = vmatpush.bf16.msra.mxu3 %v7156_v62  ;;  %2364 = vmatpush.bf16.msrb.mxu0 %v7096_v11  ;;  %v6983_v62 = vld [vmem:[%s13983_s4 + $0x200] sm:$0xf] }
 0x203   : > { %2385 = vmatpush.bf16.msra.mxu1 %v7028_v35  ;;  %v6984_v11 = vor.u32 %v9374_v2, %v6983_v62  ;;  %v6988_v35 = vor.u32 %v9373_v16, %v6985_v17  ;;  %v9453_v62 = vld [vmem:[%s13984_s5 + $0xc4] sm:$0xf]  ;;  %v7273_v16 = vld [vmem:[%s13984_s5 + $0x80] sm:$0xf]  ;;  %v9447_v17 = vld [vmem:[%s13984_s5 + $0x8c] sm:$0xf0] }
 0x205   : > { %2330 = vmatpush.bf16.msra.mxu2 %v7016_v6  ;;  %2365 = vmatmul.bf16.vlgmr.msrb.gmra.mxu0 %v11007_v33  ;;  %v6967_v6 = vld [vmem:[%s13983_s4 + $0x1e0] sm:$0xf] }
 0x206   : > { %2414 = vmatpush.bf16.msra.mxu3 %v7148_v19  ;;  %2429 = vmatpush.bf16.msra.mxu0 %v7204_v24  ;;  %v7108_v19 = vor.u32 %v9403_v7, %v7105_v63  ;;  %v7164_v24 = vor.u32 %v9417_v22, %v7161_v23  ;;  %v9449_v7 = vld [vmem:[%s13984_s5 + $0xa4] sm:$0xf]  ;;  %v7274_v63 = vor.u32 %v9447_v17, %v7273_v16  ;;  %v7291_v22 = vld [vmem:[%s13984_s5 + $0xb0] sm:$0xf0] }
 0x207   : > { %2386 = vmatpush.bf16.msra.mxu1 %v7020_v18  ;;  %v9370_v18 = vld [vmem:[%s13983_s4 + $0x1e4] sm:$0xf0]  ;;  %v7294_v23 = vor.u32 %v9449_v7, %v7291_v22  ;;  %v9481_v16 = vld [vmem:[%s13984_s5 + $0x1a4] sm:$0xf]  ;;  %v7419_v7 = vld [vmem:[%s13984_s5 + $0x1b0] sm:$0xf0] }
 0x208   : > { %v6968_v48 = vor.u32 %v9370_v18, %v6967_v6  ;;  %v7225_v6 = vld [vmem:[%s13984_s5 + $0x20] sm:$0xf]  ;;  %v9435_v18 = vld [vmem:[%s13984_s5 + $0x2c] sm:$0xf0]  ;;  %v7283_v22 = vld [vmem:[%s13984_s5 + $0x98] sm:$0xf0] }
 0x209   : > { %2331 = vmatpush.bf16.msra.mxu2 %v7008_v59  ;;  %v7084_v59 = vor.u32 %v9397_v38, %v7081_v53  ;;  %v7227_v38 = vld [vmem:[%s13984_s5 + $0x30] sm:$0xf0]  ;;  %v9458_v53 = vld [vmem:[%s13984_s5 + $0xec] sm:$0xf] }
 0x20a   : > { %2415 = vmatpush.bf16.msra.mxu3 %v7140_v43  ;;  %2430 = vmatpush.bf16.msra.mxu0 %v7196_v0  ;;  %v6969_v43 = vld [vmem:[%s13983_s4 + $0x1e8] sm:$0xf0]  ;;  %v9399_v0 = vld [vmem:[%s13983_s4 + $0x2d4] sm:$0xf] }
 0x20b   : > { %2387 = vmatpush.bf16.msra.mxu1 %v7012_v25  ;;  %v6972_v56 = vor.u32 %v9369_v10, %v6969_v43  ;;  %v7092_v29 = vor.u32 %v9399_v0, %v7089_v13  ;;  %v7073_v25 = vld [vmem:[%s13983_s4 + $0x2b8] sm:$0xf0]  ;;  %v7226_v10 = vor.u32 %v9435_v18, %v7225_v6  ;;  %v7243_v43 = vld [vmem:[%s13984_s5 + $0x50] sm:$0xf0]  ;;  %v7209_v13 = vld [vmem:[%s13984_s5] sm:$0xf] }
 0x20d   : > { %2332 = vmatpush.bf16.msra.mxu2 %v7000_v60  ;;  %v7044_v60 = vor.u32 %v9387_v51, %v7041_v47  ;;  %v7318_v51 = vor.u32 %v9454_v58, %v7315_v31  ;;  %v9486_v47 = vld [vmem:[%s13984_s5 + $0x1cc] sm:$0xf]  ;;  %v7353_v31 = vld [vmem:[%s13984_s5 + $0x120] sm:$0xf] }
 0x20e   : > { %2416 = vmatpush.bf16.msra.mxu3 %v7132_v39  ;;  %2431 = vmatpush.bf16.msra.mxu0 %v7188_v46  ;;  %v9391_v46 = vld [vmem:[%s13983_s4 + $0x294] sm:$0xf] }
 0x20f   : > { %2388 = vmatpush.bf16.msra.mxu1 %v7004_v27  ;;  %v9385_v27 = vld [vmem:[%s13983_s4 + $0x264] sm:$0xf] }
 0x210   : > { %6904 = vmatmul.msk.bf16.vlgmr.msrb.gmra.mxu2 %vm1852_vm7, %v10845_v54  ;;  %7205 = vmatmul.msk.bf16.vlgmr.msrb.gmra.mxu1 %vm1852_vm7, %v10845_v54  ;;  %v7036_v8 = vor.u32 %v9385_v27, %v7033_v55 }
 0x211   : > { %2333 = vmatpush.bf16.msra.mxu2 %v6992_v45  ;;  %v7289_v45 = vld [vmem:[%s13984_s5 + $0xa0] sm:$0xf] }
 0x212   : > { %2417 = vmatpush.bf16.msra.mxu3 %v7124_v49  ;;  %2432 = vmatpush.bf16.msra.mxu0 %v7180_v61  ;;  %v7321_v49 = vld [vmem:[%s13984_s5 + $0xe0] sm:$0xf]  ;;  %v9459_v61 = vld [vmem:[%s13984_s5 + $0xec] sm:$0xf0] }
 0x213   : > { %2389 = vmatpush.bf16.msra.mxu1 %v6996_v1  ;;  %v7322_v12 = vor.u32 %v9459_v61, %v7321_v49  ;;  %v9451_v1 = vld [vmem:[%s13984_s5 + $0xac] sm:$0xf0]  ;;  %v9485_v61 = vld [vmem:[%s13984_s5 + $0x1c4] sm:$0xf] }
 0x214   : > { %v7290_v2 = vor.u32 %v9451_v1, %v7289_v45  ;;  %v9483_v49 = vld [vmem:[%s13984_s5 + $0x1ac] sm:$0xf0]  ;;  %v7427_v45 = vld [vmem:[%s13984_s5 + $0x1b8] sm:$0xf0] }
 0x215   : > { %2334 = vmatpush.bf16.msra.mxu2 %v6984_v11  ;;  %v7257_v11 = vld [vmem:[%s13984_s5 + $0x60] sm:$0xf] }
 0x216   : > { %2418 = vmatpush.bf16.msra.mxu3 %v7116_v5  ;;  %2433 = vmatpush.bf16.msra.mxu0 %v7172_v9  ;;  %v7307_v5 = vld [vmem:[%s13984_s5 + $0xd0] sm:$0xf0] }
 0x217   : > { %2390 = vmatpush.bf16.msra.mxu1 %v6988_v35  ;;  %v7310_v9 = vor.u32 %v9453_v62, %v7307_v5  ;;  %v9443_v35 = vld [vmem:[%s13984_s5 + $0x6c] sm:$0xf0]  ;;  %v7401_v5 = vld [vmem:[%s13984_s5 + $0x180] sm:$0xf] }
 0x218   : > { %v7258_v57 = vor.u32 %v9443_v35, %v7257_v11  ;;  %v7422_v11 = vor.u32 %v9481_v16, %v7419_v7  ;;  %v9460_v16 = vld [vmem:[%s13984_s5 + $0xf4] sm:$0xf0] }
 0x219   : > { %2335 = vmatpush.bf16.msra.mxu2 %v6976_v34  ;;  %v7259_v34 = vld [vmem:[%s13984_s5 + $0x70] sm:$0xf0] }
 0x21a   : > { %2419 = vmatpush.bf16.msra.mxu3 %v7108_v19  ;;  %2434 = vmatpush.bf16.msra.mxu0 %v7164_v24  ;;  %v7275_v19 = vld [vmem:[%s13984_s5 + $0x90] sm:$0xf0] }
 0x21b   : > { %2391 = vmatpush.bf16.msra.mxu1 %v6980_v36  ;;  %v7278_v24 = vor.u32 %v9445_v52, %v7275_v19  ;;  %v7262_v36 = vor.u32 %v9441_v28, %v7259_v34  ;;  %v9478_v52 = vld [vmem:[%s13984_s5 + $0x18c] sm:$0xf] }
 0x21c   : > { %v9442_v34 = vld [vmem:[%s13984_s5 + $0x6c] sm:$0xf] }
 0x21d   : > { %7206 = vmatmul.msk.bf16.vlgmr.msra.gmra.mxu0 %vm1852_vm7, %v10845_v54  ;;  %2336 = vmatpush.bf16.msra.mxu2 %v6968_v48  ;;  %v9395_v54 = vld [vmem:[%s13983_s4 + $0x2b4] sm:$0xf]  ;;  %v9431_v48 = vld [vmem:[%s13984_s5 + $0xc] sm:$0xf0] }
 0x21e   : > { %2420 = vmatpush.bf16.msra.mxu3 %v7100_v42  ;;  %v7076_v30 = vor.u32 %v9395_v54, %v7073_v25  ;;  %2812 = vmatpush.bf16.msrb.mxu0 %v7322_v12  ;;  %v9437_v42 = vld [vmem:[%s13984_s5 + $0x44] sm:$0xf] }
 0x21f   : > { %2392 = vmatpush.bf16.msra.mxu1 %v6972_v56  ;;  %v7246_v0 = vor.u32 %v9437_v42, %v7243_v43  ;;  %v9433_v56 = vld [vmem:[%s13984_s5 + $0x24] sm:$0xf]  ;;  %v7395_v43 = vld [vmem:[%s13984_s5 + $0x178] sm:$0xf0] }
 0x220   : > { %2337 = vmatmul.bf16.vlgmr.msra.gmra.mxu2 %v10853_v44  ;;  %v7230_v25 = vor.u32 %v9433_v56, %v7227_v38  ;;  %v9471_v56 = vld [vmem:[%s13984_s5 + $0x14c] sm:$0xf0] }
 0x221   : > { %2421 = vmatmul.bf16.vlgmr.msra.gmra.mxu3 %v11007_v33  ;;  %2399 = vmatpush.bf16.msrb.mxu2 %v7092_v29  ;;  %v9393_v33 = vld [vmem:[%s13983_s4 + $0x2a4] sm:$0xf]  ;;  %v7210_v29 = vor.u32 %v9431_v48, %v7209_v13  ;;  %v7369_v48 = vld [vmem:[%s13984_s5 + $0x140] sm:$0xf] }
 0x222   : > { %2393 = vmatmul.bf16.vlgmr.msra.gmra.mxu1 %v10853_v44  ;;  %v7068_v39 = vor.u32 %v9393_v33, %v7065_v37  ;;  %v7057_v44 = vld [vmem:[%s13983_s4 + $0x298] sm:$0xf0]  ;;  %2813 = vmatpush.bf16.msrb.mxu0 %v7306_v21  ;;  %v7433_v37 = vld [vmem:[%s13984_s5 + $0x1c0] sm:$0xf]  ;;  %v7438_v21 = vor.u32 %v9485_v61, %v7435_v14  ;;  %v7370_v38 = vor.u32 %v9471_v56, %v7369_v48  ;;  %v9466_v14 = vld [vmem:[%s13984_s5 + $0x12c] sm:$0xf] }
 0x223   : > { %v7060_v15 = vor.u32 %v9391_v46, %v7057_v44  ;;  %v9429_v46 = vld [vmem:[%s13984_s5 + $0x4] sm:$0xf]  ;;  %v7297_v48 = vld [vmem:[%s13984_s5 + $0xa8] sm:$0xf]  ;;  %v9452_v56 = vld [vmem:[%s13984_s5 + $0xb4] sm:$0xf0] }
 0x224   : > { %2855 = vmatpush.bf16.msrb.mxu3 %v7438_v21 }
 0x225   : > { %2400 = vmatpush.bf16.msrb.mxu2 %v7084_v59  ;;  %v7331_v59 = vld [vmem:[%s13984_s5 + $0xf8] sm:$0xf0] }
 0x226   : > { %2814 = vmatpush.bf16.msrb.mxu0 %v7290_v2 }
 0x228   : > { %2856 = vmatpush.bf16.msrb.mxu3 %v7422_v11  ;;  %v9462_v11 = vld [vmem:[%s13984_s5 + $0x10c] sm:$0xf] }
 0x229   : > { %2401 = vmatpush.bf16.msrb.mxu2 %v7076_v30  ;;  %v7334_v30 = vor.u32 %v9458_v53, %v7331_v59  ;;  %v7387_v53 = vld [vmem:[%s13984_s5 + $0x170] sm:$0xf0]  ;;  %v9438_v59 = vld [vmem:[%s13984_s5 + $0x4c] sm:$0xf] }
 0x22a   : > { %2815 = vmatpush.bf16.msrb.mxu0 %v7274_v63  ;;  %v9446_v63 = vld [vmem:[%s13984_s5 + $0x8c] sm:$0xf] }
 0x22b   : > { %v7286_v35 = vor.u32 %v9446_v63, %v7283_v22  ;;  %v9430_v63 = vld [vmem:[%s13984_s5 + $0xc] sm:$0xf]  ;;  %v7219_v22 = vld [vmem:[%s13984_s5 + $0x18] sm:$0xf0] }
 0x22d   : > { %2402 = vmatpush.bf16.msrb.mxu2 %v7068_v39  ;;  %v9487_v39 = vld [vmem:[%s13984_s5 + $0x1cc] sm:$0xf0] }
 0x22e   : > { %2816 = vmatpush.bf16.msrb.mxu0 %v7258_v57  ;;  %v7434_v44 = vor.u32 %v9487_v39, %v7433_v37  ;;  %v7411_v57 = vld [vmem:[%s13984_s5 + $0x198] sm:$0xf0] }
 0x22f   : > { %v7414_v19 = vor.u32 %v9478_v52, %v7411_v57  ;;  %v7347_v52 = vld [vmem:[%s13984_s5 + $0x118] sm:$0xf0] }
 0x230   : > { %2827 = vmatpush.bf16.msrb.mxu1 %v7434_v44  ;;  %v7379_v44 = vld [vmem:[%s13984_s5 + $0x158] sm:$0xf0] }
 0x231   : > { %2403 = vmatpush.bf16.msrb.mxu2 %v7060_v15  ;;  %v7211_v15 = vld [vmem:[%s13984_s5 + $0x10] sm:$0xf0] }
 0x232   : > { %2817 = vmatpush.bf16.msrb.mxu0 %v7242_v32  ;;  %v7403_v32 = vld [vmem:[%s13984_s5 + $0x190] sm:$0xf0] }
 0x233   : > { %v7406_v18 = vor.u32 %v9477_v26, %v7403_v32  ;;  %v7313_v26 = vld [vmem:[%s13984_s5 + $0xc8] sm:$0xf] }
 0x235   : > { %2404 = vmatpush.bf16.msrb.mxu2 %v7052_v50  ;;  %v7214_v50 = vor.u32 %v9429_v46, %v7211_v15  ;;  %2857 = vmatpush.bf16.msrb.mxu3 %v7406_v18  ;;  %v9470_v46 = vld [vmem:[%s13984_s5 + $0x14c] sm:$0xf]  ;;  %v7441_v18 = vld [vmem:[%s13984_s5 + $0x1c8] sm:$0xf] }
 0x236   : > { %2818 = vmatpush.bf16.msrb.mxu0 %v7226_v10  ;;  %v9474_v10 = vld [vmem:[%s13984_s5 + $0x16c] sm:$0xf]  ;;  %v7382_v15 = vor.u32 %v9470_v46, %v7379_v44 }
 0x239   : > { %2405 = vmatpush.bf16.msrb.mxu2 %v7044_v60  ;;  %v7443_v60 = vld [vmem:[%s13984_s5 + $0x1d8] sm:$0xf0] }
 0x23a   : > { %2819 = vmatpush.bf16.msrb.mxu0 %v7210_v29  ;;  %v7446_v27 = vor.u32 %v9486_v47, %v7443_v60  ;;  %v9473_v29 = vld [vmem:[%s13984_s5 + $0x164] sm:$0xf]  ;;  %v7371_v60 = vld [vmem:[%s13984_s5 + $0x150] sm:$0xf0] }
 0x23b   : > { %v7390_v37 = vor.u32 %v9473_v29, %v7387_v53  ;;  %v7425_v29 = vld [vmem:[%s13984_s5 + $0x1a8] sm:$0xf]  ;;  %v9484_v53 = vld [vmem:[%s13984_s5 + $0x1b4] sm:$0xf0] }
 0x23d   : > { %2406 = vmatpush.bf16.msrb.mxu2 %v7036_v8  ;;  %v7417_v8 = vld [vmem:[%s13984_s5 + $0x1a0] sm:$0xf]  ;;  %2858 = vmatpush.bf16.msrb.mxu3 %v7390_v37  ;;  %v9448_v37 = vld [vmem:[%s13984_s5 + $0x94] sm:$0xf0] }
 0x23e   : > { %2896 = vmatpush.bf16.msra.mxu0 %v7334_v30  ;;  %v7418_v12 = vor.u32 %v9483_v49, %v7417_v8  ;;  %v7235_v8 = vld [vmem:[%s13984_s5 + $0x38] sm:$0xf0] }
 0x240   : > { %2407 = vmatmul.bf16.vlgmr.msrb.gmra.mxu2 %v10863_v4  ;;  %v9457_v4 = vld [vmem:[%s13984_s5 + $0xe4] sm:$0xf]  ;;  %2828 = vmatpush.bf16.msrb.mxu1 %v7418_v12 }
 0x241   : > { %v7326_v41 = vor.u32 %v9457_v4, %v7323_v40  ;;  %v7299_v4 = vld [vmem:[%s13984_s5 + $0xb8] sm:$0xf0] }
 0x242   : > { %2897 = vmatpush.bf16.msra.mxu0 %v7318_v51  ;;  %v7302_v40 = vor.u32 %v9450_v3, %v7299_v4  ;;  %v9469_v51 = vld [vmem:[%s13984_s5 + $0x144] sm:$0xf]  ;;  %v7363_v3 = vld [vmem:[%s13984_s5 + $0x138] sm:$0xf0] }
 0x243   : > { %2840 = vmatpush.bf16.msra.mxu2 %v7326_v41  ;;  %v9482_v41 = vld [vmem:[%s13984_s5 + $0x1ac] sm:$0xf]  ;;  %v7374_v61 = vor.u32 %v9469_v51, %v7371_v60  ;;  %v7366_v4 = vor.u32 %v9466_v14, %v7363_v3  ;;  %v9444_v60 = vld [vmem:[%s13984_s5 + $0x74] sm:$0xf0] }
 0x244   : > { %v7430_v1 = vor.u32 %v9482_v41, %v7427_v45  ;;  %v9463_v41 = vld [vmem:[%s13984_s5 + $0x10c] sm:$0xf0]  ;;  %v9465_v45 = vld [vmem:[%s13984_s5 + $0x124] sm:$0xf] }
 0x245   : > { %2859 = vmatpush.bf16.msrb.mxu3 %v7374_v61 }
 0x246   : > { %2898 = vmatpush.bf16.msra.mxu0 %v7302_v40  ;;  %v7337_v40 = vld [vmem:[%s13984_s5 + $0x100] sm:$0xf] }
 0x247   : > { %2841 = vmatpush.bf16.msra.mxu2 %v7310_v9  ;;  %v9479_v9 = vld [vmem:[%s13984_s5 + $0x18c] sm:$0xf0] }
 0x248   : > { %v7402_v17 = vor.u32 %v9479_v9, %v7401_v5  ;;  %v7355_v5 = vld [vmem:[%s13984_s5 + $0x130] sm:$0xf0]  ;;  %v7329_v9 = vld [vmem:[%s13984_s5 + $0xe8] sm:$0xf] }
 0x249   : > { %v7330_v7 = vor.u32 %v9460_v16, %v7329_v9 }
 0x24a   : > { %2829 = vmatpush.bf16.msrb.mxu1 %v7402_v17  ;;  %2899 = vmatpush.bf16.msra.mxu0 %v7286_v35  ;;  %v7358_v17 = vor.u32 %v9465_v45, %v7355_v5  ;;  %v7222_v35 = vor.u32 %v9430_v63, %v7219_v22 }
 0x24b   : > { %2842 = vmatpush.bf16.msra.mxu2 %v7294_v23 }
 0x24c   : > { %2860 = vmatpush.bf16.msrb.mxu3 %v7358_v17 }
 0x24f   : > { %2843 = vmatpush.bf16.msra.mxu2 %v7278_v24  ;;  %v7385_v24 = vld [vmem:[%s13984_s5 + $0x160] sm:$0xf] }
 0x250   : > { %v7386_v28 = vor.u32 %v9475_v20, %v7385_v24  ;;  %v9461_v24 = vld [vmem:[%s13984_s5 + $0x104] sm:$0xf]  ;;  %v7339_v20 = vld [vmem:[%s13984_s5 + $0x110] sm:$0xf0] }
 0x252   : > { %2830 = vmatpush.bf16.msrb.mxu1 %v7386_v28  ;;  %v9456_v28 = vld [vmem:[%s13984_s5 + $0xd4] sm:$0xf0] }
 0x253   : > { %2844 = vmatpush.bf16.msra.mxu2 %v7262_v36  ;;  %v7267_v36 = vld [vmem:[%s13984_s5 + $0x78] sm:$0xf0] }
 0x254   : > { %v7270_v42 = vor.u32 %v9442_v34, %v7267_v36  ;;  %v7342_v34 = vor.u32 %v9461_v24, %v7339_v20  ;;  %v7314_v36 = vor.u32 %v9456_v28, %v7313_v26  ;;  %v9517_v24 = vld [vmem:[%s13984_s5 + $0x2c4] sm:$0xf]  ;;  %v7627_v28 = vld [vmem:[%s13984_s5 + $0x2d0] sm:$0xf0] }
 0x256   : > { %2900 = vmatpush.bf16.msra.mxu0 %v7270_v42  ;;  %2831 = vmatpush.bf16.msrb.mxu1 %v7370_v38  ;;  %v9488_v42 = vld [vmem:[%s13984_s5 + $0x1d4] sm:$0xf0]  ;;  %v7298_v38 = vor.u32 %v9452_v56, %v7297_v48  ;;  %v7217_v48 = vld [vmem:[%s13984_s5 + $0x8] sm:$0xf] }
 0x257   : > { %2845 = vmatpush.bf16.msra.mxu2 %v7246_v0  ;;  %v7398_v0 = vor.u32 %v9474_v10, %v7395_v43  ;;  %v7442_v10 = vor.u32 %v9488_v42, %v7441_v18  ;;  %2861 = vmatpush.bf16.msrb.mxu3 %v7342_v34  ;;  %v9545_v34 = vld [vmem:[%s13984_s5 + $0x3a4] sm:$0xf]  ;;  %v9432_v56 = vld [vmem:[%s13984_s5 + $0x14] sm:$0xf0] }
 0x25b   : > { %2846 = vmatpush.bf16.msra.mxu2 %v7230_v25  ;;  %v7251_v25 = vld [vmem:[%s13984_s5 + $0x58] sm:$0xf0]  ;;  %2883 = vmatpush.bf16.msra.mxu3 %v7442_v10 }
 0x25c   : > { %v7254_v39 = vor.u32 %v9438_v59, %v7251_v25  ;;  %v7426_v59 = vor.u32 %v9484_v53, %v7425_v29  ;;  %v7281_v25 = vld [vmem:[%s13984_s5 + $0x88] sm:$0xf] }
 0x25d   : > { %v7282_v44 = vor.u32 %v9448_v37, %v7281_v25  ;;  %v7345_v29 = vld [vmem:[%s13984_s5 + $0x108] sm:$0xf]  ;;  %v7630_v25 = vor.u32 %v9517_v24, %v7627_v28  ;;  %v7643_v28 = vld [vmem:[%s13984_s5 + $0x2f0] sm:$0xf0] }
 0x25e   : > { %2901 = vmatpush.bf16.msra.mxu0 %v7254_v39  ;;  %v7409_v39 = vld [vmem:[%s13984_s5 + $0x188] sm:$0xf] }
 0x25f   : > { %2847 = vmatpush.bf16.msra.mxu2 %v7214_v50  ;;  %v9467_v50 = vld [vmem:[%s13984_s5 + $0x12c] sm:$0xf0]  ;;  %2884 = vmatpush.bf16.msra.mxu3 %v7426_v59 }
 0x260   : > { %v11319_v33 = vpop.f32.mrf.mxu0  ;;  %v7354_v47 = vor.u32 %v9467_v50, %v7353_v31 }
 0x261   : > { %v11345_v55 = vpop.f32.mrf.mxu1 }
 0x262   : > { %2832 = vmatpush.bf16.msrb.mxu1 %v7354_v47  ;;  %v7265_v47 = vld [vmem:[%s13984_s5 + $0x68] sm:$0xf]  ;;  %v1880_v5 = vadd.f32 %v11345_v55, %v11319_v33  ;;  %v9436_v33 = vld [vmem:[%s13984_s5 + $0x34] sm:$0xf0] }
 0x263   : > { %2911 = vmatpush.bf16.msrb.mxu2 %v7446_v27  ;;  %v9434_v27 = vld [vmem:[%s13984_s5 + $0x2c] sm:$0xf]  ;;  %v7266_v61 = vor.u32 %v9444_v60, %v7265_v47  ;;  %v7361_v55 = vld [vmem:[%s13984_s5 + $0x128] sm:$0xf]  ;;  %v9509_v47 = vld [vmem:[%s13984_s5 + $0x284] sm:$0xf] }
 0x264   : > { %v11317_v54 = vpop.f32.mrf.mxu3  ;;  %v7238_v12 = vor.u32 %v9434_v27, %v7235_v8  ;;  %v7393_v27 = vld [vmem:[%s13984_s5 + $0x168] sm:$0xf]  ;;  %v7595_v60 = vld [vmem:[%s13984_s5 + $0x290] sm:$0xf0] }
 0x266   : > { %2902 = vmatpush.bf16.msra.mxu0 %v7238_v12  ;;  %v9476_v12 = vld [vmem:[%s13984_s5 + $0x174] sm:$0xf0] }
 0x267   : > { %2912 = vmatpush.bf16.msrb.mxu2 %v7430_v1  ;;  %v7338_v1 = vor.u32 %v9463_v41, %v7337_v40  ;;  %v7394_v3 = vor.u32 %v9476_v12, %v7393_v27  ;;  %v9440_v40 = vld [vmem:[%s13984_s5 + $0x54] sm:$0xf0]  ;;  %v7377_v41 = vld [vmem:[%s13984_s5 + $0x148] sm:$0xf]  ;;  %v9537_v27 = vld [vmem:[%s13984_s5 + $0x364] sm:$0xf] }
 0x268   : > { %v11393_v23 = vpop.f32.mrf.mxu0 }
 0x269   : > { %v11419_v6 = vpop.f32.mrf.mxu1  ;;  %2833 = vmatpush.bf16.msrb.mxu1 %v7338_v1  ;;  %v9472_v1 = vld [vmem:[%s13984_s5 + $0x154] sm:$0xf0] }
 0x26a   : > { %2903 = vmatpush.bf16.msra.mxu0 %v7222_v35  ;;  %v1882_v9 = vadd.f32 %v11419_v6, %v11393_v23  ;;  %v7378_v17 = vor.u32 %v9472_v1, %v7377_v41 }
 0x26b   : > { %2913 = vmatpush.bf16.msrb.mxu2 %v7414_v19  ;;  %v7350_v19 = vor.u32 %v9462_v11, %v7347_v52  ;;  %v7233_v52 = vld [vmem:[%s13984_s5 + $0x28] sm:$0xf] }
 0x26c   : > { %v11371_v62 = vpop.f32.mrf.mxu3  ;;  %v7234_v6 = vor.u32 %v9436_v33, %v7233_v52  ;;  %v9497_v52 = vld [vmem:[%s13984_s5 + $0x224] sm:$0xf] }
 0x26d   : > { %2868 = vmatpush.bf16.msra.mxu1 %v7330_v7 }
 0x26f   : > { %2914 = vmatpush.bf16.msrb.mxu2 %v7398_v0 }
 0x270   : > { %v11455_v58 = vpop.f32.mrf.mxu0 }
 0x271   : > { %2869 = vmatpush.bf16.msra.mxu1 %v7314_v36  ;;  %v7739_v36 = vld [vmem:[%s13984_s5 + $0x3b0] sm:$0xf0] }
 0x272   : > { %v7742_v37 = vor.u32 %v9545_v34, %v7739_v36 }
 0x273   : > { %2915 = vmatpush.bf16.msrb.mxu2 %v7382_v15  ;;  %v9480_v15 = vld [vmem:[%s13984_s5 + $0x194] sm:$0xf0] }
 0x274   : > { %v11447_v30 = vpop.f32.mrf.mxu3  ;;  %v7410_v31 = vor.u32 %v9480_v15, %v7409_v39  ;;  %v9513_v39 = vld [vmem:[%s13984_s5 + $0x2a4] sm:$0xf] }
 0x275   : > { %2870 = vmatpush.bf16.msra.mxu1 %v7298_v38  ;;  %v7218_v38 = vor.u32 %v9432_v56, %v7217_v48  ;;  %v9541_v15 = vld [vmem:[%s13984_s5 + $0x384] sm:$0xf]  ;;  %v1936_v34 = vadd.f32 %v11455_v58, %v11447_v30 }
 0x276   : > { %2885 = vmatpush.bf16.msra.mxu3 %v7410_v31  ;;  %v7723_v31 = vld [vmem:[%s13984_s5 + $0x390] sm:$0xf0] }
 0x277   : > { %2916 = vmatpush.bf16.msrb.mxu2 %v7366_v4  ;;  %v7249_v4 = vld [vmem:[%s13984_s5 + $0x48] sm:$0xf] }
 0x278   : > { %v11529_v32 = vpop.f32.mrf.mxu0  ;;  %v7250_v45 = vor.u32 %v9440_v40, %v7249_v4  ;;  %v9533_v4 = vld [vmem:[%s13984_s5 + $0x344] sm:$0xf]  ;;  %v7691_v40 = vld [vmem:[%s13984_s5 + $0x350] sm:$0xf0] }
 0x279   : > { %2871 = vmatpush.bf16.msra.mxu1 %v7282_v44  ;;  %v7611_v44 = vld [vmem:[%s13984_s5 + $0x2b0] sm:$0xf0]  ;;  %v7694_v1 = vor.u32 %v9533_v4, %v7691_v40  ;;  %v9515_v4 = vld [vmem:[%s13984_s5 + $0x2ac] sm:$0xf0]  ;;  %v7721_v40 = vld [vmem:[%s13984_s5 + $0x380] sm:$0xf] }
 0x27a   : > { %2886 = vmatpush.bf16.msra.mxu3 %v7394_v3  ;;  %v7579_v3 = vld [vmem:[%s13984_s5 + $0x270] sm:$0xf0] }
 0x27b   : > { %2917 = vmatpush.bf16.msrb.mxu2 %v7350_v19 }
 0x27c   : > { %v11515_v57 = vpop.f32.mrf.mxu3 }
 0x27d   : > { %v11475_v49 = vpop.f32.mrf.mxu1  ;;  %2872 = vmatpush.bf16.msra.mxu1 %v7266_v61  ;;  %v7598_v61 = vor.u32 %v9509_v47, %v7595_v60  ;;  %v1938_v48 = vadd.f32 %v11529_v32, %v11515_v57  ;;  %v7515_v57 = vld [vmem:[%s13984_s5 + $0x1f0] sm:$0xf0]  ;;  %v9546_v60 = vld [vmem:[%s13984_s5 + $0x3ac] sm:$0xf] }
 0x27e   : > { %2887 = vmatpush.bf16.msra.mxu3 %v7378_v17  ;;  %v7675_v17 = vld [vmem:[%s13984_s5 + $0x330] sm:$0xf0] }
 0x281   : > { %2873 = vmatpush.bf16.msra.mxu1 %v7250_v45 }
 0x282   : > { %v2366_v50 = vpop.f32.mrf.mxu0 }
 0x283   : > { %v11373_v2 = vpop.f32.mrf.mxu2 }
 0x284   : > { %v2352_v46 = vpop.f32.mrf.mxu3  ;;  %v1894_v22 = vadd.f32 %v11373_v2, %v1880_v5  ;;  %v9468_v2 = vld [vmem:[%s13984_s5 + $0x134] sm:$0xf0]  ;;  %v9501_v5 = vld [vmem:[%s13984_s5 + $0x244] sm:$0xf] }
 0x285   : > { %v11537_v43 = vpop.f32.mrf.mxu1  ;;  %v7362_v20 = vor.u32 %v9468_v2, %v7361_v55  ;;  %2874 = vmatpush.bf16.msra.mxu1 %v7234_v6  ;;  %v7547_v55 = vld [vmem:[%s13984_s5 + $0x230] sm:$0xf0] }
 0x286   : > { %v1908_v18 = vadd.f32 %v11317_v54, %v1894_v22  ;;  %v9464_v54 = vld [vmem:[%s13984_s5 + $0x114] sm:$0xf0]  ;;  %v7659_v6 = vld [vmem:[%s13984_s5 + $0x310] sm:$0xf0]  ;;  %v7550_v2 = vor.u32 %v9497_v52, %v7547_v55  ;;  %v7705_v55 = vld [vmem:[%s13984_s5 + $0x360] sm:$0xf] }
 0x287   : > { %2888 = vmatpush.bf16.msra.mxu3 %v7362_v20  ;;  %v7346_v59 = vor.u32 %v9464_v54, %v7345_v29  ;;  %v7531_v20 = vld [vmem:[%s13984_s5 + $0x210] sm:$0xf0]  ;;  %v1950_v29 = vadd.f32 %v11475_v49, %v1936_v34  ;;  %v1952_v54 = vadd.f32 %v11537_v43, %v1938_v48  ;;  %v7625_v43 = vld [vmem:[%s13984_s5 + $0x2c0] sm:$0xf] }
 0x289   : > { %2875 = vmatpush.bf16.msra.mxu1 %v7218_v38 }
 0x28a   : > { %v2368_v23 = vpop.f32.mrf.mxu0 }
 0x28b   : > { %v11427_v13 = vpop.f32.mrf.mxu2  ;;  %2889 = vmatpush.bf16.msra.mxu3 %v7346_v59 }
 0x28c   : > { %v2354_v7 = vpop.f32.mrf.mxu3  ;;  %v1896_v11 = vadd.f32 %v11427_v13, %v1882_v9  ;;  %v7563_v9 = vld [vmem:[%s13984_s5 + $0x250] sm:$0xf0] }
 0x28d   : > { %v2380_v8 = vpop.f32.mrf.mxu1 }
 0x28e   : > { %v1910_v42 = vadd.f32 %v11371_v62, %v1896_v11  ;;  %v7566_v11 = vor.u32 %v9501_v5, %v7563_v9  ;;  %v7603_v5 = vld [vmem:[%s13984_s5 + $0x298] sm:$0xf0]  ;;  %v9542_v9 = vld [vmem:[%s13984_s5 + $0x38c] sm:$0xf] }
 0x293   : > { %v11483_v21 = vpop.f32.mrf.mxu2 }
 0x294   : > { %v1964_v49 = vadd.f32 %v11483_v21, %v1950_v29  ;;  %v9547_v21 = vld [vmem:[%s13984_s5 + $0x3ac] sm:$0xf0]  ;;  %v9502_v29 = vld [vmem:[%s13984_s5 + $0x24c] sm:$0xf] }
 0x295   : > { %v2382_v26 = vpop.f32.mrf.mxu1 }
 0x29a   : > { %v2436_v22 = vpop.f32.mrf.mxu0 }
 0x29b   : > { %v11539_v0 = vpop.f32.mrf.mxu2 }
 0x29f   : > { %v2394_v41 = vpop.f32.mrf.mxu1 }
 0x2a2   : > { %v2438_v32 = vpop.f32.mrf.mxu0 }
 0x2a3   : > { %v2338_v51 = vpop.f32.mrf.mxu2 }
 0x2a4   : > { %v2353_v14 = vadd.f32 %v2352_v46, %v2338_v51  ;;  %v7726_v51 = vor.u32 %v9541_v15, %v7723_v31  ;;  %v7737_v15 = vld [vmem:[%s13984_s5 + $0x3a0] sm:$0xf]  ;;  %v9514_v31 = vld [vmem:[%s13984_s5 + $0x2ac] sm:$0xf] }
 0x2a6   : > { %v2367_v16 = vadd.f32 %v2366_v50, %v2353_v14  ;;  %v7614_v50 = vor.u32 %v9513_v39, %v7611_v44  ;;  %v9505_v14 = vld [vmem:[%s13984_s5 + $0x264] sm:$0xf]  ;;  %v9519_v44 = vld [vmem:[%s13984_s5 + $0x2cc] sm:$0xf0] }
 0x2a7   : > { %v7582_v45 = vor.u32 %v9505_v14, %v7579_v3  ;;  %v2396_v36 = vpop.f32.mrf.mxu1  ;;  %v7609_v3 = vld [vmem:[%s13984_s5 + $0x2a0] sm:$0xf] }
 0x2a8   : > { %v2381_v13 = vadd.f32 %v2380_v8, %v2367_v16  ;;  %v7707_v8 = vld [vmem:[%s13984_s5 + $0x370] sm:$0xf0]  ;;  %v9529_v16 = vld [vmem:[%s13984_s5 + $0x324] sm:$0xf] }
 0x2a9   : > { %v7710_v12 = vor.u32 %v9537_v27, %v7707_v8  ;;  %v7747_v27 = vld [vmem:[%s13984_s5 + $0x3b8] sm:$0xf0]  ;;  %v7626_v8 = vor.u32 %v9519_v44, %v7625_v43  ;;  %v9530_v44 = vld [vmem:[%s13984_s5 + $0x32c] sm:$0xf] }
 0x2aa   : > { %v2441_v62 = vmax.f32 %v1908_v18, %v2381_v13  ;;  %v7555_v43 = vld [vmem:[%s13984_s5 + $0x238] sm:$0xf0] }
 0x2ab   : > { %v2340_v63 = vpop.f32.mrf.mxu2 }
 0x2ac   : > { %v2355_v35 = vadd.f32 %v2354_v7, %v2340_v63  ;;  %v2422_v7 = vpop.f32.mrf.mxu3 }
 0x2ae   : > { %v2369_v19 = vadd.f32 %v2368_v23, %v2355_v35  ;;  %v7678_v35 = vor.u32 %v9529_v16, %v7675_v17  ;;  %v9525_v23 = vld [vmem:[%s13984_s5 + $0x304] sm:$0xf]  ;;  %v7731_v16 = vld [vmem:[%s13984_s5 + $0x398] sm:$0xf0] }
 0x2af   : > { %v7662_v13 = vor.u32 %v9525_v23, %v7659_v6  ;;  %v7734_v23 = vor.u32 %v9542_v9, %v7731_v16  ;;  %v9539_v6 = vld [vmem:[%s13984_s5 + $0x36c] sm:$0xf0]  ;;  %v7641_v16 = vld [vmem:[%s13984_s5 + $0x2e0] sm:$0xf] }
 0x2b0   : > { %v2383_v10 = vadd.f32 %v2382_v26, %v2369_v19  ;;  %v9493_v19 = vld [vmem:[%s13984_s5 + $0x204] sm:$0xf]  ;;  %v7706_v34 = vor.u32 %v9539_v6, %v7705_v55  ;;  %v7931_v6 = vld [vmem:[%s13984_s5 + $0x4b0] sm:$0xf0] }
 0x2b1   : > { %v9521_v26 = vld [vmem:[%s13984_s5 + $0x2e4] sm:$0xf]  ;;  %v7534_v30 = vor.u32 %v9493_v19, %v7531_v20  ;;  %v7715_v20 = vld [vmem:[%s13984_s5 + $0x378] sm:$0xf0] }
 0x2b2   : > { %v2443_v53 = vmax.f32 %v1910_v42, %v2383_v10  ;;  %v9518_v42 = vld [vmem:[%s13984_s5 + $0x2cc] sm:$0xf]  ;;  %v7635_v10 = vld [vmem:[%s13984_s5 + $0x2d8] sm:$0xf0]  ;;  %v7646_v58 = vor.u32 %v9521_v26, %v7643_v28  ;;  %v9577_v55 = vld [vmem:[%s13984_s5 + $0x4a4] sm:$0xf] }
 0x2b3   : > { %v7638_v59 = vor.u32 %v9518_v42, %v7635_v10  ;;  %v9507_v42 = vld [vmem:[%s13984_s5 + $0x26c] sm:$0xf0]  ;;  %v7689_v10 = vld [vmem:[%s13984_s5 + $0x340] sm:$0xf] }
 0x2b4   : > { %v11636_v46 = vpack.c.bf16 %v2443_v53, %v2441_v62  ;;  %v2424_v38 = vpop.f32.mrf.mxu3 }
 0x2b6   : > { %2820 = vmatmul.bf16.vlgmr.msrb.gmra.mxu0 %v11636_v46  ;;  %2848 = vmatmul.bf16.vlgmr.msra.gmra.mxu2 %v11636_v46  ;;  %v3005_v28 = vshll.u32 %v11636_v46, 16 }
 0x2b7   : > { %3347 = vmatpush.bf16.msra.mxu2 %v7630_v25  ;;  %3362 = vmatpush.bf16.msrb.mxu0 %v7742_v37  ;;  %v9489_v25 = vld [vmem:[%s13984_s5 + $0x1e4] sm:$0xf]  ;;  %v1966_v37 = vadd.f32 %v11539_v0, %v1952_v54 }
 0x2b8   : > { %v7518_v0 = vor.u32 %v9489_v25, %v7515_v57  ;;  %v7561_v25 = vld [vmem:[%s13984_s5 + $0x240] sm:$0xf]  ;;  %v9503_v57 = vld [vmem:[%s13984_s5 + $0x24c] sm:$0xf0] }
 0x2bb   : > { %3348 = vmatpush.bf16.msra.mxu2 %v7614_v50  ;;  %3363 = vmatpush.bf16.msrb.mxu0 %v7726_v51  ;;  %v7619_v50 = vld [vmem:[%s13984_s5 + $0x2b8] sm:$0xf0] }
 0x2bc   : > { %v7622_v14 = vor.u32 %v9514_v31, %v7619_v50 }
 0x2bf   : > { %3349 = vmatpush.bf16.msra.mxu2 %v7598_v61  ;;  %3364 = vmatpush.bf16.msrb.mxu0 %v7710_v12  ;;  %v7738_v12 = vor.u32 %v9547_v21, %v7737_v15  ;;  %v7683_v15 = vld [vmem:[%s13984_s5 + $0x338] sm:$0xf0]  ;;  %v7562_v21 = vor.u32 %v9503_v57, %v7561_v25  ;;  %v7729_v25 = vld [vmem:[%s13984_s5 + $0x388] sm:$0xf]  ;;  %v9544_v57 = vld [vmem:[%s13984_s5 + $0x394] sm:$0xf0] }
 0x2c3   : > { %v2408_v63 = vpop.f32.mrf.mxu2  ;;  %3350 = vmatpush.bf16.msra.mxu2 %v7582_v45  ;;  %3365 = vmatpush.bf16.msrb.mxu0 %v7694_v1  ;;  %v9543_v45 = vld [vmem:[%s13984_s5 + $0x38c] sm:$0xf0]  ;;  %v9510_v1 = vld [vmem:[%s13984_s5 + $0x28c] sm:$0xf] }
 0x2c4   : > { %v2409_v33 = vadd.f32 %v2408_v63, %v2394_v41  ;;  %v7750_v41 = vor.u32 %v9546_v60, %v7747_v27  ;;  %v7593_v63 = vld [vmem:[%s13984_s5 + $0x280] sm:$0xf] }
 0x2c5   : > { %v7657_v60 = vld [vmem:[%s13984_s5 + $0x300] sm:$0xf] }
 0x2c6   : > { %2904 = vmatmul.bf16.vlgmr.msra.gmra.mxu0 %v11636_v46  ;;  %v2423_v24 = vadd.f32 %v2422_v7, %v2409_v33  ;;  %v7610_v7 = vor.u32 %v9515_v4, %v7609_v3  ;;  %v9511_v33 = vld [vmem:[%s13984_s5 + $0x28c] sm:$0xf0]  ;;  %v7539_v3 = vld [vmem:[%s13984_s5 + $0x218] sm:$0xf0]  ;;  %v9526_v4 = vld [vmem:[%s13984_s5 + $0x30c] sm:$0xf] }
 0x2c7   : > { %3351 = vmatpush.bf16.msra.mxu2 %v7566_v11  ;;  %3366 = vmatpush.bf16.msrb.mxu0 %v7678_v35  ;;  %v7606_v11 = vor.u32 %v9510_v1, %v7603_v5  ;;  %v7594_v26 = vor.u32 %v9511_v33, %v7593_v63  ;;  %v9495_v1 = vld [vmem:[%s13984_s5 + $0x20c] sm:$0xf0]  ;;  %v7651_v33 = vld [vmem:[%s13984_s5 + $0x2f8] sm:$0xf0] }
 0x2c8   : > { %v2437_v62 = vadd.f32 %v2436_v22, %v2423_v24  ;;  %v7722_v22 = vor.u32 %v9543_v45, %v7721_v40  ;;  %v9538_v24 = vld [vmem:[%s13984_s5 + $0x36c] sm:$0xf]  ;;  %v7667_v40 = vld [vmem:[%s13984_s5 + $0x318] sm:$0xf0]  ;;  %v7529_v45 = vld [vmem:[%s13984_s5 + $0x200] sm:$0xf] }
 0x2c9   : > { %v7718_v48 = vor.u32 %v9538_v24, %v7715_v20  ;;  %v7670_v63 = vor.u32 %v9526_v4, %v7667_v40  ;;  %v9593_v4 = vld [vmem:[%s13984_s5 + $0x524] sm:$0xf]  ;;  %v7995_v40 = vld [vmem:[%s13984_s5 + $0x530] sm:$0xf0] }
 0x2ca   : > { %v2442_v51 = vmax.f32 %v1964_v49, %v2437_v62  ;;  %v3007_v62 = vrot.slane %v3005_v28, 1  ;;  %v9491_v28 = vld [vmem:[%s13984_s5 + $0x1ec] sm:$0xf0] }
 0x2cb   : > { %v2410_v18 = vpop.f32.mrf.mxu2  ;;  %3352 = vmatpush.bf16.msra.mxu2 %v7550_v2  ;;  %3367 = vmatpush.bf16.msrb.mxu0 %v7662_v13  ;;  %v9506_v2 = vld [vmem:[%s13984_s5 + $0x26c] sm:$0xf]  ;;  %v7587_v13 = vld [vmem:[%s13984_s5 + $0x278] sm:$0xf0] }
 0x2cc   : > { %v2411_v56 = vadd.f32 %v2410_v18, %v2396_v36  ;;  %v7590_v36 = vor.u32 %v9506_v2, %v7587_v13  ;;  %v7577_v18 = vld [vmem:[%s13984_s5 + $0x260] sm:$0xf]  ;;  %v9605_v2 = vld [vmem:[%s13984_s5 + $0x584] sm:$0xf]  ;;  %v8043_v13 = vld [vmem:[%s13984_s5 + $0x590] sm:$0xf0] }
 0x2cd   : > { %v7578_v54 = vor.u32 %v9507_v42, %v7577_v18  ;;  %v7745_v18 = vld [vmem:[%s13984_s5 + $0x3a8] sm:$0xf]  ;;  %v9548_v42 = vld [vmem:[%s13984_s5 + $0x3b4] sm:$0xf0] }
 0x2ce   : > { %v2425_v53 = vadd.f32 %v2424_v38, %v2411_v56  ;;  %v9535_v56 = vld [vmem:[%s13984_s5 + $0x34c] sm:$0xf0]  ;;  %v7571_v38 = vld [vmem:[%s13984_s5 + $0x258] sm:$0xf0] }
 0x2cf   : > { %3353 = vmatpush.bf16.msra.mxu2 %v7534_v30  ;;  %3368 = vmatpush.bf16.msrb.mxu0 %v7646_v58  ;;  %v9534_v30 = vld [vmem:[%s13984_s5 + $0x34c] sm:$0xf]  ;;  %v7699_v58 = vld [vmem:[%s13984_s5 + $0x358] sm:$0xf0] }
 0x2d0   : > { %v2439_v39 = vadd.f32 %v2438_v32, %v2425_v53  ;;  %v7690_v53 = vor.u32 %v9535_v56, %v7689_v10  ;;  %v7673_v32 = vld [vmem:[%s13984_s5 + $0x320] sm:$0xf]  ;;  %v7702_v49 = vor.u32 %v9534_v30, %v7699_v58  ;;  %v7934_v10 = vor.u32 %v9577_v55, %v7931_v6  ;;  %v7617_v56 = vld [vmem:[%s13984_s5 + $0x2a8] sm:$0xf]  ;;  %v7915_v58 = vld [vmem:[%s13984_s5 + $0x490] sm:$0xf0] }
 0x2d1   : > { %v7681_v55 = vld [vmem:[%s13984_s5 + $0x328] sm:$0xf] }
 0x2d2   : > { %v2444_v47 = vmax.f32 %v1966_v37, %v2439_v39  ;;  %v9531_v37 = vld [vmem:[%s13984_s5 + $0x32c] sm:$0xf0]  ;;  %v9498_v39 = vld [vmem:[%s13984_s5 + $0x22c] sm:$0xf] }
 0x2d3   : > { %3403 = vmatpush.bf16.msra.mxu0 %v7638_v59  ;;  %3354 = vmatpush.bf16.msra.mxu2 %v7518_v0  ;;  %v7574_v59 = vor.u32 %v9502_v29, %v7571_v38  ;;  %v3003_v0 = vshrl.u32 %v11636_v46, 16  ;;  %v7674_v31 = vor.u32 %v9531_v37, %v7673_v32  ;;  %v7558_v50 = vor.u32 %v9498_v39, %v7555_v43  ;;  %v9516_v29 = vld [vmem:[%s13984_s5 + $0x2b4] sm:$0xf0]  ;;  %v9573_v38 = vld [vmem:[%s13984_s5 + $0x484] sm:$0xf] }
 0x2d4   : > { %v11754_v61 = vpack.c.bf16 %v2444_v47, %v2442_v51  ;;  %v7545_v51 = vld [vmem:[%s13984_s5 + $0x220] sm:$0xf]  ;;  %v9499_v47 = vld [vmem:[%s13984_s5 + $0x22c] sm:$0xf0]  ;;  %v7918_v32 = vor.u32 %v9573_v38, %v7915_v58  ;;  %v7601_v37 = vld [vmem:[%s13984_s5 + $0x288] sm:$0xf] }
 0x2d5   : > { %v11875_v27 = vor.u32 %v3007_v62, %v3003_v0  ;;  %v8027_v62 = vld [vmem:[%s13984_s5 + $0x570] sm:$0xf0]  ;;  %v9512_v39 = vld [vmem:[%s13984_s5 + $0x294] sm:$0xf0]  ;;  %v9569_v43 = vld [vmem:[%s13984_s5 + $0x464] sm:$0xf]  ;;  %v7730_v0 = vor.u32 %v9544_v57, %v7729_v25 }
 0x2d6   : > { %7447 = vmatmul.msk.bf16.vlgmr.msrb.gmra.mxu1 %vm2808_vm8, %v11754_v61  ;;  %7448 = vmatmul.msk.bf16.vlgmr.msrb.gmra.mxu3 %vm2808_vm8, %v11754_v61  ;;  %v3011_v17 = vshll.u32 %v11754_v61, 16  ;;  %v3009_v35 = vshrl.u32 %v11754_v61, 16  ;;  %v9496_v38 = vld [vmem:[%s13984_s5 + $0x214] sm:$0xf0]  ;;  %v7835_v58 = vld [vmem:[%s13984_s5 + $0x3f0] sm:$0xf0] }
 0x2d7   : > { %7450 = vmatmul.msk.bf16.vlgmr.msrb.gmra.mxu2 %vm2808_vm8, %v11754_v61  ;;  %3319 = vmatpush.bf16.msrb.mxu3 %v7626_v8  ;;  %v7686_v8 = vor.u32 %v9530_v44, %v7683_v15  ;;  %v7899_v44 = vld [vmem:[%s13984_s5 + $0x470] sm:$0xf0]  ;;  %v9597_v15 = vld [vmem:[%s13984_s5 + $0x544] sm:$0xf]  ;;  %v7939_v25 = vld [vmem:[%s13984_s5 + $0x4b8] sm:$0xf0] }
 0x2d8   : > { %3334 = vmatpush.bf16.msrb.mxu1 %v7738_v12  ;;  %3404 = vmatpush.bf16.msra.mxu0 %v7622_v14  ;;  %v3013_v52 = vrot.slane %v3011_v17, 1  ;;  %v9527_v12 = vld [vmem:[%s13984_s5 + $0x30c] sm:$0xf0]  ;;  %v9494_v14 = vld [vmem:[%s13984_s5 + $0x20c] sm:$0xf] }
 0x2d9   : > { %3418 = vmatpush.bf16.msrb.mxu2 %v7750_v41  ;;  %v7546_v41 = vor.u32 %v9499_v47, %v7545_v51  ;;  %v7658_v5 = vor.u32 %v9527_v12, %v7657_v60  ;;  %v7542_v9 = vor.u32 %v9494_v14, %v7539_v3  ;;  %v9523_v17 = vld [vmem:[%s13984_s5 + $0x2ec] sm:$0xf0]  ;;  %v9540_v51 = vld [vmem:[%s13984_s5 + $0x374] sm:$0xf0]  ;;  %v7902_v47 = vor.u32 %v9569_v43, %v7899_v44  ;;  %v9565_v14 = vld [vmem:[%s13984_s5 + $0x444] sm:$0xf] }
 0x2da   : > { %v11806_v19 = vor.u32 %v3013_v52, %v3009_v35  ;;  %v7523_v35 = vld [vmem:[%s13984_s5 + $0x1f8] sm:$0xf0]  ;;  %v9522_v52 = vld [vmem:[%s13984_s5 + $0x2ec] sm:$0xf]  ;;  %v7642_v24 = vor.u32 %v9523_v17, %v7641_v16  ;;  %v9508_v12 = vld [vmem:[%s13984_s5 + $0x274] sm:$0xf0]  ;;  %v7998_v16 = vor.u32 %v9593_v4, %v7995_v40 }
 0x2db   : > { %3320 = vmatpush.bf16.msrb.mxu3 %v7610_v7  ;;  %v7633_v7 = vld [vmem:[%s13984_s5 + $0x2c8] sm:$0xf]  ;;  %v7883_v3 = vld [vmem:[%s13984_s5 + $0x450] sm:$0xf0]  ;;  %v9492_v44 = vld [vmem:[%s13984_s5 + $0x1f4] sm:$0xf0] }
 0x2dc   : > { %3335 = vmatpush.bf16.msrb.mxu1 %v7722_v22  ;;  %3405 = vmatpush.bf16.msra.mxu0 %v7606_v11  ;;  %v9520_v22 = vld [vmem:[%s13984_s5 + $0x2d4] sm:$0xf0]  ;;  %v9490_v11 = vld [vmem:[%s13984_s5 + $0x1ec] sm:$0xf]  ;;  %v7569_v17 = vld [vmem:[%s13984_s5 + $0x248] sm:$0xf] }
 0x2dd   : > { %3419 = vmatpush.bf16.msrb.mxu2 %v7734_v23  ;;  %7752 = vmatmul.msk.bf16.vlgmr.msrb.gmra.mxu0 %vm2808_vm8, %v11806_v19  ;;  %v7530_v23 = vor.u32 %v9495_v1, %v7529_v45  ;;  %v7526_v20 = vor.u32 %v9490_v11, %v7523_v35  ;;  %v7697_v1 = vld [vmem:[%s13984_s5 + $0x348] sm:$0xf]  ;;  %v9589_v11 = vld [vmem:[%s13984_s5 + $0x504] sm:$0xf]  ;;  %v7979_v35 = vld [vmem:[%s13984_s5 + $0x510] sm:$0xf0] }
 0x2de   : > { %v8051_v4 = vld [vmem:[%s13984_s5 + $0x598] sm:$0xf0]  ;;  %v12143_v40 = vrot.slane %v11754_v61, 1 }
 0x2df   : > { %3321 = vmatpush.bf16.msrb.mxu3 %v7594_v26  ;;  %v7513_v26 = vld [vmem:[%s13984_s5 + $0x1e0] sm:$0xf] }
 0x2e0   : > { %3336 = vmatpush.bf16.msrb.mxu1 %v7706_v34  ;;  %3406 = vmatpush.bf16.msra.mxu0 %v7590_v36  ;;  %v7634_v34 = vor.u32 %v9520_v22, %v7633_v7  ;;  %v7654_v36 = vor.u32 %v9522_v52, %v7651_v33  ;;  %v7514_v30 = vor.u32 %v9491_v28, %v7513_v26  ;;  %v9504_v7 = vld [vmem:[%s13984_s5 + $0x254] sm:$0xf0]  ;;  %v7867_v22 = vld [vmem:[%s13984_s5 + $0x430] sm:$0xf0]  ;;  %v9585_v28 = vld [vmem:[%s13984_s5 + $0x4e4] sm:$0xf] }
 0x2e1   : > { %3420 = vmatpush.bf16.msrb.mxu2 %v7718_v48  ;;  %v8046_v48 = vor.u32 %v9605_v2, %v8043_v13  ;;  %v7570_v33 = vor.u32 %v9504_v7, %v7569_v17  ;;  %v7982_v2 = vor.u32 %v9589_v11, %v7979_v35  ;;  %v7553_v13 = vld [vmem:[%s13984_s5 + $0x228] sm:$0xf]  ;;  %v7851_v26 = vld [vmem:[%s13984_s5 + $0x410] sm:$0xf0]  ;;  %v8025_v17 = vld [vmem:[%s13984_s5 + $0x560] sm:$0xf] }
 0x2e2   : > { %v9603_v7 = vld [vmem:[%s13984_s5 + $0x56c] sm:$0xf0]  ;;  %v9602_v11 = vld [vmem:[%s13984_s5 + $0x56c] sm:$0xf]  ;;  %v8035_v35 = vld [vmem:[%s13984_s5 + $0x578] sm:$0xf0] }
 0x2e3   : > { %3322 = vmatpush.bf16.msrb.mxu3 %v7578_v54  ;;  %v9601_v54 = vld [vmem:[%s13984_s5 + $0x564] sm:$0xf] }
 0x2e4   : > { %3337 = vmatpush.bf16.msrb.mxu1 %v7690_v53  ;;  %3407 = vmatpush.bf16.msra.mxu0 %v7574_v59  ;;  %v7746_v53 = vor.u32 %v9548_v42, %v7745_v18  ;;  %v7618_v59 = vor.u32 %v9516_v29, %v7617_v56  ;;  %v7665_v42 = vld [vmem:[%s13984_s5 + $0x308] sm:$0xf] }
 0x2e5   : > { %3421 = vmatpush.bf16.msrb.mxu2 %v7702_v49  ;;  %v8030_v49 = vor.u32 %v9601_v54, %v8027_v62  ;;  %v7537_v29 = vld [vmem:[%s13984_s5 + $0x208] sm:$0xf]  ;;  %v9581_v54 = vld [vmem:[%s13984_s5 + $0x4c4] sm:$0xf]  ;;  %v7947_v62 = vld [vmem:[%s13984_s5 + $0x4d0] sm:$0xf0] }
 0x2e6   : > { %2876 = vmatmul.bf16.vlgmr.msra.gmra.mxu1 %v11636_v46  ;;  %7449 = vmatmul.msk.bf16.vlgmr.msra.gmra.mxu3 %vm2808_vm8, %v11754_v61  ;;  %v7538_v57 = vor.u32 %v9496_v38, %v7537_v29  ;;  %v7950_v43 = vor.u32 %v9581_v54, %v7947_v62  ;;  %v9562_v29 = vld [vmem:[%s13984_s5 + $0x42c] sm:$0xf]  ;;  %v7875_v38 = vld [vmem:[%s13984_s5 + $0x438] sm:$0xf0] }
 0x2e7   : > { %3323 = vmatpush.bf16.msrb.mxu3 %v7562_v21  ;;  %3355 = vmatmul.bf16.vlgmr.msra.gmra.mxu2 %v11875_v27  ;;  %v8011_v21 = vld [vmem:[%s13984_s5 + $0x550] sm:$0xf0] }
 0x2e8   : > { %3338 = vmatpush.bf16.msrb.mxu1 %v7674_v31  ;;  %3408 = vmatpush.bf16.msra.mxu0 %v7558_v50  ;;  %v7602_v31 = vor.u32 %v9512_v39, %v7601_v37  ;;  %v7713_v50 = vld [vmem:[%s13984_s5 + $0x368] sm:$0xf]  ;;  %v8014_v60 = vor.u32 %v9597_v15, %v8011_v21  ;;  %v9524_v37 = vld [vmem:[%s13984_s5 + $0x2f4] sm:$0xf0]  ;;  %v7929_v15 = vld [vmem:[%s13984_s5 + $0x4a0] sm:$0xf] }
 0x2e9   : > { %3422 = vmatpush.bf16.msrb.mxu2 %v7686_v8  ;;  %v7585_v8 = vld [vmem:[%s13984_s5 + $0x268] sm:$0xf]  ;;  %v9579_v21 = vld [vmem:[%s13984_s5 + $0x4ac] sm:$0xf0] }
 0x2ea   : > { %v7586_v45 = vor.u32 %v9508_v12, %v7585_v8  ;;  %v9574_v8 = vld [vmem:[%s13984_s5 + $0x48c] sm:$0xf]  ;;  %v7923_v12 = vld [vmem:[%s13984_s5 + $0x498] sm:$0xf0] }
 0x2eb   : > { %3324 = vmatpush.bf16.msrb.mxu3 %v7546_v41  ;;  %v7714_v41 = vor.u32 %v9540_v51, %v7713_v50  ;;  %v9607_v50 = vld [vmem:[%s13984_s5 + $0x58c] sm:$0xf0]  ;;  %v9549_v51 = vld [vmem:[%s13984_s5 + $0x3c4] sm:$0xf] }
 0x2ec   : > { %3339 = vmatpush.bf16.msrb.mxu1 %v7658_v5  ;;  %3409 = vmatpush.bf16.msra.mxu0 %v7542_v9  ;;  %v9536_v5 = vld [vmem:[%s13984_s5 + $0x354] sm:$0xf0]  ;;  %v7886_v9 = vor.u32 %v9565_v14, %v7883_v3  ;;  %v9606_v3 = vld [vmem:[%s13984_s5 + $0x58c] sm:$0xf] }
 0x2ed   : > { %3423 = vmatpush.bf16.msrb.mxu2 %v7670_v63  ;;  %v9561_v63 = vld [vmem:[%s13984_s5 + $0x424] sm:$0xf]  ;;  %v7698_v52 = vor.u32 %v9536_v5, %v7697_v1  ;;  %v7926_v5 = vor.u32 %v9574_v8, %v7923_v12  ;;  %v8054_v61 = vor.u32 %v9606_v3, %v8051_v4  ;;  %v9554_v8 = vld [vmem:[%s13984_s5 + $0x3ec] sm:$0xf]  ;;  %v7843_v12 = vld [vmem:[%s13984_s5 + $0x3f8] sm:$0xf0] }
 0x2ee   : > { %v7870_v6 = vor.u32 %v9561_v63, %v7867_v22  ;;  %v9570_v63 = vld [vmem:[%s13984_s5 + $0x46c] sm:$0xf]  ;;  %v7907_v22 = vld [vmem:[%s13984_s5 + $0x478] sm:$0xf0] }
 0x2ef   : > { %3325 = vmatpush.bf16.msrb.mxu3 %v7530_v23  ;;  %v9532_v23 = vld [vmem:[%s13984_s5 + $0x334] sm:$0xf0]  ;;  %v7971_v3 = vld [vmem:[%s13984_s5 + $0x4f8] sm:$0xf0] }
 0x2f0   : > { %3340 = vmatpush.bf16.msrb.mxu1 %v7642_v24  ;;  %3410 = vmatpush.bf16.msra.mxu0 %v7526_v20  ;;  %v9500_v24 = vld [vmem:[%s13984_s5 + $0x234] sm:$0xf0]  ;;  %v9557_v20 = vld [vmem:[%s13984_s5 + $0x404] sm:$0xf] }
 0x2f1   : > { %3424 = vmatpush.bf16.msrb.mxu2 %v7654_v36  ;;  %v7682_v36 = vor.u32 %v9532_v23, %v7681_v55  ;;  %v7554_v18 = vor.u32 %v9500_v24, %v7553_v13  ;;  %v8026_v55 = vor.u32 %v9603_v7, %v8025_v17  ;;  %v7910_v23 = vor.u32 %v9570_v63, %v7907_v22  ;;  %v8009_v13 = vld [vmem:[%s13984_s5 + $0x540] sm:$0xf]  ;;  %v9599_v24 = vld [vmem:[%s13984_s5 + $0x54c] sm:$0xf0]  ;;  %v9550_v7 = vld [vmem:[%s13984_s5 + $0x3cc] sm:$0xf] }
 0x2f2   : > { %v7827_v63 = vld [vmem:[%s13984_s5 + $0x3d8] sm:$0xf0]  ;;  %v9580_v22 = vld [vmem:[%s13984_s5 + $0x4b4] sm:$0xf0] }
 0x2f3   : > { %3326 = vmatpush.bf16.msrb.mxu3 %v7514_v30  ;;  %3411 = vmatmul.bf16.vlgmr.msra.gmra.mxu0 %v11875_v27  ;;  %v9553_v30 = vld [vmem:[%s13984_s5 + $0x3e4] sm:$0xf] }
 0x2f4   : > { %3375 = vmatpush.bf16.msra.mxu1 %v7634_v34  ;;  %3851 = vmatpush.bf16.msrb.mxu0 %v8046_v48  ;;  %v7963_v34 = vld [vmem:[%s13984_s5 + $0x4f0] sm:$0xf0]  ;;  %v7854_v48 = vor.u32 %v9557_v20, %v7851_v26  ;;  %v7838_v39 = vor.u32 %v9553_v30, %v7835_v58  ;;  %v9566_v20 = vld [vmem:[%s13984_s5 + $0x44c] sm:$0xf]  ;;  %v7891_v26 = vld [vmem:[%s13984_s5 + $0x458] sm:$0xf0] }
 0x2f5   : > { %3836 = vmatpush.bf16.msra.mxu2 %v7934_v10  ;;  %v9528_v10 = vld [vmem:[%s13984_s5 + $0x314] sm:$0xf0]  ;;  %v7966_v56 = vor.u32 %v9585_v28, %v7963_v34  ;;  %v8019_v28 = vld [vmem:[%s13984_s5 + $0x558] sm:$0xf0]  ;;  %v9594_v30 = vld [vmem:[%s13984_s5 + $0x52c] sm:$0xf] }
 0x2f6   : > { %3327 = vmatmul.bf16.vlgmr.msrb.gmra.mxu3 %v11875_v27  ;;  %7751 = vmatmul.msk.bf16.vlgmr.msrb.gmra.mxu1 %vm2808_vm8, %v11806_v19  ;;  %v8003_v58 = vld [vmem:[%s13984_s5 + $0x538] sm:$0xf0] }
 0x2f7   : > { %3390 = vmatpush.bf16.msra.mxu3 %v7746_v53  ;;  %7754 = vmatmul.msk.bf16.vlgmr.msrb.gmra.mxu2 %vm2808_vm8, %v11806_v19  ;;  %v7666_v53 = vor.u32 %v9528_v10, %v7665_v42  ;;  %v9567_v42 = vld [vmem:[%s13984_s5 + $0x44c] sm:$0xf0]  ;;  %v7993_v10 = vld [vmem:[%s13984_s5 + $0x520] sm:$0xf] }
 0x2f8   : > { %3376 = vmatpush.bf16.msra.mxu1 %v7618_v59  ;;  %3852 = vmatpush.bf16.msrb.mxu0 %v8030_v49  ;;  %v9578_v59 = vld [vmem:[%s13984_s5 + $0x4ac] sm:$0xf]  ;;  %v7649_v49 = vld [vmem:[%s13984_s5 + $0x2e8] sm:$0xf] }
 0x2f9   : > { %3837 = vmatpush.bf16.msra.mxu2 %v7918_v32  ;;  %v7521_v32 = vld [vmem:[%s13984_s5 + $0x1e8] sm:$0xf] }
 0x2fa   : > { %v7522_v14 = vor.u32 %v9492_v44, %v7521_v32  ;;  %v8006_v32 = vor.u32 %v9594_v30, %v8003_v58  ;;  %v7987_v44 = vld [vmem:[%s13984_s5 + $0x518] sm:$0xf0]  ;;  %v8017_v30 = vld [vmem:[%s13984_s5 + $0x548] sm:$0xf]  ;;  %v9600_v58 = vld [vmem:[%s13984_s5 + $0x554] sm:$0xf0] }
 0x2fb   : > { %3391 = vmatpush.bf16.msra.mxu3 %v7730_v0  ;;  %v7942_v0 = vor.u32 %v9578_v59, %v7939_v25  ;;  %v7865_v59 = vld [vmem:[%s13984_s5 + $0x420] sm:$0xf]  ;;  %v9563_v25 = vld [vmem:[%s13984_s5 + $0x42c] sm:$0xf0] }
 0x2fc   : > { %3377 = vmatpush.bf16.msra.mxu1 %v7602_v31  ;;  %3853 = vmatpush.bf16.msrb.mxu0 %v8014_v60  ;;  %v8041_v31 = vld [vmem:[%s13984_s5 + $0x580] sm:$0xf]  ;;  %v7819_v60 = vld [vmem:[%s13984_s5 + $0x3d0] sm:$0xf0] }
 0x2fd   : > { %3838 = vmatpush.bf16.msra.mxu2 %v7902_v47  ;;  %v7650_v47 = vor.u32 %v9524_v37, %v7649_v49  ;;  %v7822_v1 = vor.u32 %v9549_v51, %v7819_v60  ;;  %v9591_v49 = vld [vmem:[%s13984_s5 + $0x50c] sm:$0xf0]  ;;  %v9558_v37 = vld [vmem:[%s13984_s5 + $0x40c] sm:$0xf]  ;;  %v7961_v51 = vld [vmem:[%s13984_s5 + $0x4e0] sm:$0xf] }
 0x2fe   : > { %v9587_v60 = vld [vmem:[%s13984_s5 + $0x4ec] sm:$0xf0] }
 0x2ff   : > { %3392 = vmatpush.bf16.msra.mxu3 %v7714_v41  ;;  %v7930_v41 = vor.u32 %v9579_v21, %v7929_v15  ;;  %v7866_v15 = vor.u32 %v9563_v25, %v7865_v59  ;;  %v9564_v59 = vld [vmem:[%s13984_s5 + $0x434] sm:$0xf0]  ;;  %v8001_v25 = vld [vmem:[%s13984_s5 + $0x528] sm:$0xf] }
 0x300   : > { %3378 = vmatpush.bf16.msra.mxu1 %v7586_v45  ;;  %3854 = vmatpush.bf16.msrb.mxu0 %v7998_v16  ;;  %v8042_v45 = vor.u32 %v9607_v50, %v8041_v31  ;;  %v9575_v16 = vld [vmem:[%s13984_s5 + $0x48c] sm:$0xf0]  ;;  %v7849_v31 = vld [vmem:[%s13984_s5 + $0x400] sm:$0xf] }
 0x301   : > { %3839 = vmatpush.bf16.msra.mxu2 %v7886_v9  ;;  %v7913_v9 = vld [vmem:[%s13984_s5 + $0x480] sm:$0xf]  ;;  %v9559_v50 = vld [vmem:[%s13984_s5 + $0x40c] sm:$0xf0] }
 0x302   : > { %v7850_v4 = vor.u32 %v9559_v50, %v7849_v31  ;;  %v9556_v31 = vld [vmem:[%s13984_s5 + $0x3f4] sm:$0xf0]  ;;  %v7969_v50 = vld [vmem:[%s13984_s5 + $0x4e8] sm:$0xf] }
 0x303   : > { %3393 = vmatpush.bf16.msra.mxu3 %v7698_v52  ;;  %v12172_v52 = vrot.slane %v11636_v46, 1  ;;  %v8038_v46 = vor.u32 %v9602_v11, %v8035_v35  ;;  %v9582_v11 = vld [vmem:[%s13984_s5 + $0x4cc] sm:$0xf]  ;;  %v7955_v35 = vld [vmem:[%s13984_s5 + $0x4d8] sm:$0xf0] }
 0x304   : > { %3379 = vmatpush.bf16.msra.mxu1 %v7570_v33  ;;  %3855 = vmatpush.bf16.msrb.mxu0 %v7982_v2  ;;  %v7914_v33 = vor.u32 %v9575_v16, %v7913_v9  ;;  %v9571_v2 = vld [vmem:[%s13984_s5 + $0x46c] sm:$0xf0]  ;;  %v7945_v9 = vld [vmem:[%s13984_s5 + $0x4c0] sm:$0xf] }
 0x305   : > { %3840 = vmatpush.bf16.msra.mxu2 %v7870_v6  ;;  %v7897_v6 = vld [vmem:[%s13984_s5 + $0x460] sm:$0xf]  ;;  %v9583_v16 = vld [vmem:[%s13984_s5 + $0x4cc] sm:$0xf0] }
 0x306   : > { %v7898_v34 = vor.u32 %v9571_v2, %v7897_v6  ;;  %v7817_v6 = vld [vmem:[%s13984_s5 + $0x3c0] sm:$0xf]  ;;  %v9551_v2 = vld [vmem:[%s13984_s5 + $0x3cc] sm:$0xf0] }
 0x307   : > { %3394 = vmatpush.bf16.msra.mxu3 %v7682_v36  ;;  %v8010_v36 = vor.u32 %v9599_v24, %v8009_v13  ;;  %v7921_v24 = vld [vmem:[%s13984_s5 + $0x488] sm:$0xf] }
 0x308   : > { %3380 = vmatpush.bf16.msra.mxu1 %v7554_v18  ;;  %3856 = vmatpush.bf16.msrb.mxu0 %v7966_v56  ;;  %v7894_v18 = vor.u32 %v9566_v20, %v7891_v26  ;;  %v9595_v56 = vld [vmem:[%s13984_s5 + $0x52c] sm:$0xf0]  ;;  %v9576_v20 = vld [vmem:[%s13984_s5 + $0x494] sm:$0xf0]  ;;  %v8049_v26 = vld [vmem:[%s13984_s5 + $0x588] sm:$0xf] }
 0x309   : > { %3841 = vmatpush.bf16.msra.mxu2 %v7854_v48  ;;  %v7994_v62 = vor.u32 %v9595_v56, %v7993_v10  ;;  %v9604_v10 = vld [vmem:[%s13984_s5 + $0x574] sm:$0xf0] }
 0x30b   : > { %3395 = vmatpush.bf16.msra.mxu3 %v7666_v53  ;;  %v7878_v53 = vor.u32 %v9562_v29, %v7875_v38  ;;  %v7889_v29 = vld [vmem:[%s13984_s5 + $0x448] sm:$0xf]  ;;  %v9568_v38 = vld [vmem:[%s13984_s5 + $0x454] sm:$0xf0] }
 0x30c   : > { %3381 = vmatpush.bf16.msra.mxu1 %v7538_v57  ;;  %3857 = vmatpush.bf16.msrb.mxu0 %v7950_v43  ;;  %v7977_v57 = vld [vmem:[%s13984_s5 + $0x500] sm:$0xf]  ;;  %v9590_v43 = vld [vmem:[%s13984_s5 + $0x50c] sm:$0xf] }
 0x30d   : > { %3842 = vmatpush.bf16.msra.mxu2 %v7838_v39  ;;  %v7859_v39 = vld [vmem:[%s13984_s5 + $0x418] sm:$0xf0]  ;;  %v7978_v21 = vor.u32 %v9591_v49, %v7977_v57  ;;  %v9596_v57 = vld [vmem:[%s13984_s5 + $0x534] sm:$0xf0] }
 0x30e   : > { %v8002_v49 = vor.u32 %v9596_v57, %v8001_v25 }
 0x30f   : > { %3396 = vmatpush.bf16.msra.mxu3 %v7650_v47  ;;  %8056 = vmatmul.msk.bf16.vlgmr.msrb.gmra.mxu0 %vm2808_vm8, %v12143_v40  ;;  %v7990_v47 = vor.u32 %v9590_v43, %v7987_v44  ;;  %v7985_v43 = vld [vmem:[%s13984_s5 + $0x508] sm:$0xf]  ;;  %v9592_v44 = vld [vmem:[%s13984_s5 + $0x514] sm:$0xf0] }
 0x310   : > { %3892 = vmatpush.bf16.msra.mxu0 %v7942_v0  ;;  %3382 = vmatpush.bf16.msra.mxu1 %v7522_v14  ;;  %v7862_v0 = vor.u32 %v9558_v37, %v7859_v39  ;;  %v9586_v14 = vld [vmem:[%s13984_s5 + $0x4ec] sm:$0xf]  ;;  %v7857_v37 = vld [vmem:[%s13984_s5 + $0x408] sm:$0xf]  ;;  %v9560_v39 = vld [vmem:[%s13984_s5 + $0x414] sm:$0xf0] }
 0x311   : > { %3843 = vmatpush.bf16.msra.mxu2 %v7822_v1  ;;  %v7846_v1 = vor.u32 %v9554_v8, %v7843_v12  ;;  %v7974_v17 = vor.u32 %v9586_v14, %v7971_v3  ;;  %v7825_v8 = vld [vmem:[%s13984_s5 + $0x3c8] sm:$0xf]  ;;  %v9552_v12 = vld [vmem:[%s13984_s5 + $0x3d4] sm:$0xf0] }
 0x312   : > { %7753 = vmatmul.msk.bf16.vlgmr.msra.gmra.mxu3 %vm2808_vm8, %v11806_v19  ;;  %v7881_v19 = vld [vmem:[%s13984_s5 + $0x440] sm:$0xf]  ;;  %v7953_v14 = vld [vmem:[%s13984_s5 + $0x4c8] sm:$0xf]  ;;  %v9584_v3 = vld [vmem:[%s13984_s5 + $0x4d4] sm:$0xf0] }
 0x313   : > { %3808 = vmatpush.bf16.msrb.mxu3 %v7930_v41  ;;  %3383 = vmatmul.bf16.vlgmr.msra.gmra.mxu1 %v11875_v27  ;;  %v9598_v27 = vld [vmem:[%s13984_s5 + $0x54c] sm:$0xf]  ;;  %v7882_v54 = vor.u32 %v9567_v42, %v7881_v19  ;;  %v7833_v41 = vld [vmem:[%s13984_s5 + $0x3e0] sm:$0xf]  ;;  %v9572_v19 = vld [vmem:[%s13984_s5 + $0x474] sm:$0xf0] }
 0x314   : > { %3823 = vmatpush.bf16.msrb.mxu1 %v8042_v45  ;;  %3893 = vmatpush.bf16.msra.mxu0 %v7926_v5  ;;  %v8022_v48 = vor.u32 %v9598_v27, %v8019_v28  ;;  %v7962_v45 = vor.u32 %v9587_v60, %v7961_v51  ;;  %v9555_v5 = vld [vmem:[%s13984_s5 + $0x3ec] sm:$0xf0]  ;;  %v9608_v27 = vld [vmem:[%s13984_s5 + $0x594] sm:$0xf0]  ;;  %v7818_v28 = vor.u32 %v9551_v2, %v7817_v6  ;;  %v8033_v42 = vld [vmem:[%s13984_s5 + $0x568] sm:$0xf] }
 0x315   : > { %3907 = vmatpush.bf16.msrb.mxu2 %v8054_v61  ;;  %v7937_v61 = vld [vmem:[%s13984_s5 + $0x4a8] sm:$0xf]  ;;  %v8034_v56 = vor.u32 %v9604_v10, %v8033_v42  ;;  %v9588_v51 = vld [vmem:[%s13984_s5 + $0x4f4] sm:$0xf0]  ;;  %v12418_v10 = vld [vmem:[%s13985_s6] sm:$0xf] }
 0x316   : > { %3844 = vmatmul.bf16.vlgmr.msra.gmra.mxu2 %v12172_v52  ;;  %v7938_v13 = vor.u32 %v9580_v22, %v7937_v61  ;;  %v7970_v60 = vor.u32 %v9588_v51, %v7969_v50 }
 0x317   : > { %3809 = vmatpush.bf16.msrb.mxu3 %v7914_v33  ;;  %v7834_v33 = vor.u32 %v9555_v5, %v7833_v41  ;;  %v7954_v41 = vor.u32 %v9584_v3, %v7953_v14  ;;  %v2928_v3 = vperm.slane %v12418_v10, 3 }
 0x318   : > { %3824 = vmatpush.bf16.msrb.mxu1 %v8026_v55  ;;  %3894 = vmatpush.bf16.msra.mxu0 %v7910_v23  ;;  %v7946_v55 = vor.u32 %v9583_v16, %v7945_v9  ;;  %v7830_v23 = vor.u32 %v9550_v7, %v7827_v63 }
 0x319   : > { %3908 = vmatpush.bf16.msrb.mxu2 %v8038_v46  ;;  %v7958_v46 = vor.u32 %v9582_v11, %v7955_v35 }
 0x31b   : > { %3810 = vmatpush.bf16.msrb.mxu3 %v7898_v34  ;;  %v7922_v34 = vor.u32 %v9576_v20, %v7921_v24 }
 0x31c   : > { %3825 = vmatpush.bf16.msrb.mxu1 %v8010_v36  ;;  %3895 = vmatpush.bf16.msra.mxu0 %v7894_v18  ;;  %v8050_v36 = vor.u32 %v9608_v27, %v8049_v26  ;;  %v7905_v18 = vld [vmem:[%s13984_s5 + $0x468] sm:$0xf] }
 0x31d   : > { %3909 = vmatpush.bf16.msrb.mxu2 %v8022_v48  ;;  %v7906_v48 = vor.u32 %v9572_v19, %v7905_v18 }
 0x31f   : > { %3811 = vmatpush.bf16.msrb.mxu3 %v7882_v54  ;;  %v7890_v54 = vor.u32 %v9568_v38, %v7889_v29  ;;  %v2926_v29 = vperm.slane %v12418_v10, 1 }
 0x320   : > { %3826 = vmatpush.bf16.msrb.mxu1 %v7994_v62  ;;  %3896 = vmatpush.bf16.msra.mxu0 %v7878_v53  ;;  %v8018_v62 = vor.u32 %v9600_v58, %v8017_v30  ;;  %v7873_v53 = vld [vmem:[%s13984_s5 + $0x428] sm:$0xf] }
 0x321   : > { %3910 = vmatpush.bf16.msrb.mxu2 %v8006_v32  ;;  %v7874_v32 = vor.u32 %v9564_v59, %v7873_v53 }
 0x323   : > { %3812 = vmatpush.bf16.msrb.mxu3 %v7866_v15  ;;  %v7858_v15 = vor.u32 %v9560_v39, %v7857_v37 }
 0x324   : > { %3827 = vmatpush.bf16.msrb.mxu1 %v7978_v21  ;;  %3897 = vmatpush.bf16.msra.mxu0 %v7862_v0  ;;  %v7986_v21 = vor.u32 %v9592_v44, %v7985_v43  ;;  %v7841_v0 = vld [vmem:[%s13984_s5 + $0x3e8] sm:$0xf] }
 0x325   : > { %3911 = vmatpush.bf16.msrb.mxu2 %v7990_v47  ;;  %v7842_v47 = vor.u32 %v9556_v31, %v7841_v0 }
 0x327   : > { %3813 = vmatpush.bf16.msrb.mxu3 %v7850_v4  ;;  %v7826_v4 = vor.u32 %v9552_v12, %v7825_v8 }
 0x328   : > { %3828 = vmatpush.bf16.msrb.mxu1 %v7962_v45  ;;  %3898 = vmatpush.bf16.msra.mxu0 %v7846_v1 }
 0x329   : > { %3912 = vmatpush.bf16.msrb.mxu2 %v7974_v17 }
 0x32b   : > { %3814 = vmatpush.bf16.msrb.mxu3 %v7834_v33 }
 0x32c   : > { %3829 = vmatpush.bf16.msrb.mxu1 %v7946_v55  ;;  %3899 = vmatpush.bf16.msra.mxu0 %v7830_v23 }
 0x32d   : > { %3913 = vmatpush.bf16.msrb.mxu2 %v7958_v46 }
 0x32f   : > { %8055 = vmatmul.msk.bf16.vlgmr.msrb.gmra.mxu1 %vm2808_vm8, %v12143_v40  ;;  %3815 = vmatpush.bf16.msrb.mxu3 %v7818_v28 }
 0x330   : > { %3864 = vmatpush.bf16.msra.mxu1 %v7938_v13  ;;  %3900 = vmatmul.bf16.vlgmr.msra.gmra.mxu0 %v12172_v52 }
 0x331   : > { %8058 = vmatmul.msk.bf16.vlgmr.msrb.gmra.mxu2 %vm2808_vm8, %v12143_v40 }
 0x332   : > { %3816 = vmatmul.bf16.vlgmr.msrb.gmra.mxu3 %v12172_v52 }
 0x333   : > { %3879 = vmatpush.bf16.msra.mxu3 %v8050_v36  ;;  %v2821_v45 = vpop.f32.mrf.mxu0 }
 0x334   : > { %3865 = vmatpush.bf16.msra.mxu1 %v7922_v34 }
 0x337   : > { %3880 = vmatpush.bf16.msra.mxu3 %v8034_v56 }
 0x338   : > { %3866 = vmatpush.bf16.msra.mxu1 %v7906_v48 }
 0x339   : > { %v2849_v1 = vpop.f32.mrf.mxu2 }
 0x33b   : > { %3881 = vmatpush.bf16.msra.mxu3 %v8018_v62  ;;  %v12403_v5 = vpop.f32.mrf.mxu0 }
 0x33c   : > { %3867 = vmatpush.bf16.msra.mxu1 %v7890_v54 }
 0x33f   : > { %3882 = vmatpush.bf16.msra.mxu3 %v8002_v49 }
 0x340   : > { %3868 = vmatpush.bf16.msra.mxu1 %v7874_v32 }
 0x341   : > { %v2851_v9 = vpop.f32.mrf.mxu2 }
 0x343   : > { %3883 = vmatpush.bf16.msra.mxu3 %v7986_v21  ;;  %v2905_v7 = vpop.f32.mrf.mxu0 }
 0x344   : > { %3869 = vmatpush.bf16.msra.mxu1 %v7858_v15 }
 0x347   : > { %3884 = vmatpush.bf16.msra.mxu3 %v7970_v60 }
 0x348   : > { %3870 = vmatpush.bf16.msra.mxu1 %v7842_v47  ;;  %v12429_v47 = vld [vmem:[%s13986_s7] sm:$0x7] }
 0x34b   : > { %3885 = vmatpush.bf16.msra.mxu3 %v7954_v41  ;;  %v2907_v55 = vpop.f32.mrf.mxu0 }
 0x34c   : > { %3871 = vmatpush.bf16.msra.mxu1 %v7826_v4  ;;  %v2925_v4 = vperm.slane %v12418_v10, 0 }
 0x34e   : > { %8057 = vmatmul.msk.bf16.vlgmr.msra.gmra.mxu3 %vm2808_vm8, %v12143_v40 }
 0x34f   : > { %3872 = vmatmul.bf16.vlgmr.msra.gmra.mxu1 %v12172_v52 }
 0x353   : > { %v2835_v16 = vpop.f32.mrf.mxu1 }
 0x354   : > { %v12405_v17 = vadd.f32 %v2835_v16, %v2821_v45 }
 0x359   : > { %v2863_v61 = vpop.f32.mrf.mxu3 }
 0x35a   : > { %v2919_v63 = vpop.f32.mrf.mxu2  ;;  %v3370_v40 = vpop.f32.mrf.mxu0  ;;  %v2864_v56 = vadd.f32 %v2863_v61, %v2849_v1 }
 0x35b   : > { %v12407_v22 = vadd.f32 %v2919_v63, %v2905_v7  ;;  %v2837_v11 = vpop.f32.mrf.mxu1 }
 0x35c   : > { %v2934_v54 = vadd.f32 %v2926_v29, %v2864_v56 }
 0x35d   : > { %v2936_v16 = vadd.f32 %v2928_v3, %v12407_v22 }
 0x361   : > { %v2865_v35 = vpop.f32.mrf.mxu3 }
 0x362   : > { %v2921_v33 = vpop.f32.mrf.mxu2  ;;  %v3372_v13 = vpop.f32.mrf.mxu0  ;;  %v2866_v30 = vadd.f32 %v2865_v35, %v2851_v9  ;;  %v2838_v9 = vadd.f32 %v2837_v11, %v12403_v5  ;;  %v2933_v35 = vadd.f32 %v2925_v4, %v12405_v17  ;;  %v12441_v5 = vld [vmem:[%s13986_s7 + $0x4] sm:$0x7] }
 0x363   : > { %v2877_v52 = vpop.f32.mrf.mxu1  ;;  %v2922_v45 = vadd.f32 %v2921_v33, %v2907_v55 }
 0x364   : > { %v2938_v59 = vadd.f32 %v2926_v29, %v2866_v30 }
 0x369   : > { %v2891_v23 = vpop.f32.mrf.mxu3 }
 0x36a   : > { %v12409_v6 = vadd.f32 %v2891_v23, %v2877_v52  ;;  %v3356_v2 = vpop.f32.mrf.mxu2  ;;  %v2940_v52 = vadd.f32 %v2928_v3, %v2922_v45  ;;  %v9634_v45 = vld [vmem:[%s13987_s8 + $0xc4] sm:$0xf0] }
 0x36b   : > { %v12411_v24 = vpop.f32.mrf.mxu1  ;;  %v3371_v58 = vadd.f32 %v3370_v40, %v3356_v2 }
 0x36d   : > { %v3432_v25 = vadd.f32 %v3371_v58, %v2934_v54 }
 0x370   : > { %v3412_v20 = vpop.f32.mrf.mxu0 }
 0x371   : > { %v12413_v26 = vpop.f32.mrf.mxu3 }
 0x372   : > { %v3358_v46 = vpop.f32.mrf.mxu2 }
 0x373   : > { %v3342_v28 = vpop.f32.mrf.mxu1  ;;  %v3373_v62 = vadd.f32 %v3372_v13, %v3358_v46  ;;  %v2937_v13 = vadd.f32 %v2925_v4, %v2838_v9 }
 0x375   : > { %v3436_v37 = vadd.f32 %v3373_v62, %v2938_v59  ;;  %v2927_v59 = vperm.slane %v12418_v10, 2 }
 0x378   : > { %v3414_v34 = vpop.f32.mrf.mxu0 }
 0x379   : > { %v3328_v36 = vpop.f32.mrf.mxu3 }
 0x37a   : > { %v3426_v27 = vpop.f32.mrf.mxu2  ;;  %v3343_v61 = vadd.f32 %v3342_v28, %v3328_v36 }
 0x37b   : > { %v3344_v42 = vpop.f32.mrf.mxu1  ;;  %v3427_v1 = vadd.f32 %v3426_v27, %v3412_v20 }
 0x37d   : > { %v3434_v23 = vadd.f32 %v3427_v1, %v2936_v16 }
 0x381   : > { %v3330_v38 = vpop.f32.mrf.mxu3 }
 0x382   : > { %v3428_v18 = vpop.f32.mrf.mxu2  ;;  %v3345_v40 = vadd.f32 %v3344_v42, %v3330_v38 }
 0x383   : > { %v3429_v7 = vadd.f32 %v3428_v18, %v3414_v34 }
 0x384   : > { %v3435_v20 = vadd.f32 %v3345_v40, %v2937_v13  ;;  %v8158_v13 = vld [vmem:[%s13987_s8 + $0xb0] sm:$0xf] }
 0x385   : > { %v3438_v56 = vadd.f32 %v3429_v7, %v2940_v52  ;;  %v9670_v7 = vld [vmem:[%s13987_s8 + $0x1e4] sm:$0xf0] }
 0x38c   : > { %v3859_v19 = vpop.f32.mrf.mxu0 }
 0x390   : > { %v12421_v57 = vpop.f32.mrf.mxu1 }
 0x394   : > { %v3861_v32 = vpop.f32.mrf.mxu0 }
 0x395   : > { %v12423_v39 = vpop.f32.mrf.mxu3 }
 0x398   : > { %v3386_v50 = vpop.f32.mrf.mxu1 }
 0x399   : > { %v3845_v48 = vpop.f32.mrf.mxu2 }
 0x39a   : > { %v3860_v53 = vadd.f32 %v3859_v19, %v3845_v48  ;;  %v3431_v48 = vadd.f32 %v3343_v61, %v2933_v35  ;;  %v8310_v61 = vld [vmem:[%s13987_s8 + $0x1e0] sm:$0xf]  ;;  %v9624_v35 = vld [vmem:[%s13987_s8 + $0x74] sm:$0xf0] }
 0x39c   : > { %v3921_v43 = vadd.f32 %v3860_v53, %v3432_v25  ;;  %v2894_v25 = vadd.f32 %v12413_v26, %v12411_v24  ;;  %v8182_v24 = vld [vmem:[%s13987_s8 + $0xe0] sm:$0xf]  ;;  %v9638_v26 = vld [vmem:[%s13987_s8 + $0xe4] sm:$0xf0] }
 0x39d   : > { %v3400_v60 = vpop.f32.mrf.mxu3 }
 0x39e   : > { %v3929_v21 = vmax.f32 %v3921_v43, 0.0 }
 0x3a1   : > { %v3847_v49 = vpop.f32.mrf.mxu2 }
 0x3a2   : > { %v3862_v44 = vadd.f32 %v3861_v32, %v3847_v49  ;;  %v3399_v32 = vadd.f32 %v12423_v39, %v12421_v57  ;;  %v2935_v49 = vadd.f32 %v2927_v59, %v12409_v6  ;;  %v2939_v6 = vadd.f32 %v2927_v59, %v2894_v25  ;;  %v9635_v59 = vld [vmem:[%s13987_s8 + $0xd4] sm:$0xf] }
 0x3a4   : > { %v3925_v15 = vadd.f32 %v3862_v44, %v3436_v37  ;;  %v3401_v37 = vadd.f32 %v3400_v60, %v3386_v50  ;;  %v8190_v44 = vld [vmem:[%s13987_s8 + $0xf0] sm:$0xf]  ;;  %v3433_v10 = vadd.f32 %v3399_v32, %v2935_v49  ;;  %v8118_v32 = vld [vmem:[%s13987_s8 + $0x60] sm:$0xf]  ;;  %v9622_v49 = vld [vmem:[%s13987_s8 + $0x64] sm:$0xf0] }
 0x3a5   : > { %v8174_v60 = vld [vmem:[%s13987_s8 + $0xd0] sm:$0xf] }
 0x3a6   : > { %v3933_v0 = vmax.f32 %v3925_v15, 0.0  ;;  %v9640_v15 = vld [vmem:[%s13987_s8 + $0xf4] sm:$0xf0] }
 0x3a8   : > { %v3937_v31 = vpack.c.bf16 %v3933_v0, %v3929_v21  ;;  %v8191_v21 = vor.u32 %v9640_v15, %v8190_v44  ;;  %v8183_v0 = vor.u32 %v9638_v26, %v8182_v24  ;;  %v8286_v44 = vld [vmem:[%s13987_s8 + $0x1b0] sm:$0xf]  ;;  %v9664_v15 = vld [vmem:[%s13987_s8 + $0x1b4] sm:$0xf0]  ;;  %v8168_v26 = vld [vmem:[%s13987_s8 + $0xc8] sm:$0xf0] }
 0x3a9   : > { %v8287_v24 = vor.u32 %v9664_v15, %v8286_v44 }
 0x3aa   : > { %v3950_v51 = vsel %vm3945_vm9, %v3937_v31, 0  ;;  %v3437_v31 = vadd.f32 %v3401_v37, %v2939_v6  ;;  %v8110_v6 = vld [vmem:[%s13987_s8 + $0x50] sm:$0xf] }
 0x3ab   : > { %3978 = vmatpush.bf16.msrb.mxu1 %v3950_v51 }
 0x3ac   : > { %v3831_v12 = vpop.f32.mrf.mxu1 }
 0x3ad   : > { %v3901_v8 = vpop.f32.mrf.mxu0 }
 0x3ae   : > { %8060 = vmatmul.msk.bf16.vlgmr.msrb.gmra.mxu1 %vm3941_vm10, %v12429_v47 }
 0x3af   : > { %4035 = vmatpush.bf16.msra.mxu1 %v3950_v51 }
 0x3b3   : > { %4477 = vmatpush.bf16.msrb.mxu1 %v8191_v21  ;;  %v9633_v21 = vld [vmem:[%s13987_s8 + $0xc4] sm:$0xf] }
 0x3b4   : > { %v3915_v14 = vpop.f32.mrf.mxu2  ;;  %v3833_v22 = vpop.f32.mrf.mxu1 }
 0x3b5   : > { %v3817_v41 = vpop.f32.mrf.mxu3  ;;  %v3916_v63 = vadd.f32 %v3915_v14, %v3901_v8  ;;  %v3903_v46 = vpop.f32.mrf.mxu0  ;;  %v9636_v8 = vld [vmem:[%s13987_s8 + $0xd4] sm:$0xf0] }
 0x3b6   : > { %v3832_v2 = vadd.f32 %v3831_v12, %v3817_v41  ;;  %v12480_v12 = vld [vmem:[%s13987_s8 + $0x1f0] sm:$0x33]  ;;  %v8175_v4 = vor.u32 %v9636_v8, %v8174_v60  ;;  %v8166_v41 = vld [vmem:[%s13987_s8 + $0xc0] sm:$0xf]  ;;  %v8160_v60 = vld [vmem:[%s13987_s8 + $0xb8] sm:$0xf0] }
 0x3b7   : > { %v3923_v33 = vadd.f32 %v3916_v63, %v3434_v23  ;;  %v4325_v3 = vunpack.c.l.b16 %v12480_v12  ;;  %4478 = vmatpush.bf16.msrb.mxu1 %v8183_v0  ;;  %v8126_v63 = vld [vmem:[%s13987_s8 + $0x70] sm:$0xf]  ;;  %v8278_v0 = vld [vmem:[%s13987_s8 + $0x1a0] sm:$0xf] }
 0x3b8   : > { %v3920_v17 = vadd.f32 %v3832_v2, %v3431_v48  ;;  %v8127_v40 = vor.u32 %v9624_v35, %v8126_v63  ;;  %v8167_v2 = vor.u32 %v9634_v45, %v8166_v41  ;;  %v8102_v8 = vld [vmem:[%s13987_s8 + $0x40] sm:$0xf]  ;;  %v8270_v41 = vld [vmem:[%s13987_s8 + $0x190] sm:$0xf]  ;;  %v9660_v45 = vld [vmem:[%s13987_s8 + $0x194] sm:$0xf0] }
 0x3b9   : > { %v3931_v34 = vmax.f32 %v3923_v33, 0.0  ;;  %v4389_v16 = vpack.c.b16 %v4325_v3, %v4325_v3  ;;  %v9668_v33 = vld [vmem:[%s13987_s8 + $0x1d4] sm:$0xf0] }
 0x3ba   : > { %v3928_v42 = vmax.f32 %v3920_v17, 0.0 }
 0x3bb   : > { %v4459_v23 = vsel %vm4457_vm11, %v4389_v16, 0  ;;  %4479 = vmatpush.bf16.msrb.mxu1 %v8175_v4  ;;  %v8152_v16 = vld [vmem:[%s13987_s8 + $0xa8] sm:$0xf0] }
 0x3bc   : > { %v3917_v19 = vpop.f32.mrf.mxu2 }
 0x3bd   : > { %v3918_v55 = vadd.f32 %v3917_v19, %v3903_v46  ;;  %v3819_v11 = vpop.f32.mrf.mxu3  ;;  %v9632_v46 = vld [vmem:[%s13987_s8 + $0xb4] sm:$0xf0]  ;;  %v8311_v19 = vor.u32 %v9670_v7, %v8310_v61  ;;  %v8094_v61 = vld [vmem:[%s13987_s8 + $0x30] sm:$0xf] }
 0x3be   : > { %v3834_v28 = vadd.f32 %v3833_v22, %v3819_v11  ;;  %8065 = vmatmul.msk.bf16.vlgmr.msra.gmra.mxu1 %vm3941_vm10, %v12441_v5  ;;  %v8150_v11 = vld [vmem:[%s13987_s8 + $0xa0] sm:$0xf]  ;;  %v9616_v7 = vld [vmem:[%s13987_s8 + $0x34] sm:$0xf0] }
 0x3bf   : > { %v3927_v27 = vadd.f32 %v3918_v55, %v3438_v56  ;;  %v8302_v56 = vld [vmem:[%s13987_s8 + $0x1d0] sm:$0xf]  ;;  %4480 = vmatpush.bf16.msrb.mxu1 %v8167_v2  ;;  %v8159_v55 = vor.u32 %v9632_v46, %v8158_v13  ;;  %v8095_v35 = vor.u32 %v9616_v7, %v8094_v61  ;;  %v9627_v2 = vld [vmem:[%s13987_s8 + $0x94] sm:$0xf]  ;;  %v8144_v46 = vld [vmem:[%s13987_s8 + $0x98] sm:$0xf0] }
 0x3c0   : > { %v3924_v18 = vadd.f32 %v3834_v28, %v3435_v20  ;;  %v8303_v22 = vor.u32 %v9668_v33, %v8302_v56  ;;  %v9630_v20 = vld [vmem:[%s13987_s8 + $0xa4] sm:$0xf0]  ;;  %v9628_v28 = vld [vmem:[%s13987_s8 + $0x94] sm:$0xf0]  ;;  %v8147_v56 = vor.u32 %v9627_v2, %v8144_v46  ;;  %v9617_v61 = vld [vmem:[%s13987_s8 + $0x44] sm:$0xf] }
 0x3c1   : > { %v3935_v36 = vmax.f32 %v3927_v27, 0.0  ;;  %v8151_v17 = vor.u32 %v9630_v20, %v8150_v11  ;;  %v8142_v27 = vld [vmem:[%s13987_s8 + $0x90] sm:$0xf]  ;;  %v8136_v11 = vld [vmem:[%s13987_s8 + $0x88] sm:$0xf0] }
 0x3c2   : > { %v3932_v38 = vmax.f32 %v3924_v18, 0.0  ;;  %v9639_v18 = vld [vmem:[%s13987_s8 + $0xf4] sm:$0xf]  ;;  %v9646_v46 = vld [vmem:[%s13987_s8 + $0x124] sm:$0xf0] }
 0x3c3   : > { %v3939_v29 = vpack.c.bf16 %v3935_v36, %v3931_v34  ;;  %4481 = vmatpush.bf16.msrb.mxu1 %v8159_v55  ;;  %v8134_v34 = vld [vmem:[%s13987_s8 + $0x80] sm:$0xf]  ;;  %v9626_v36 = vld [vmem:[%s13987_s8 + $0x84] sm:$0xf0] }
 0x3c4   : > { %v3936_v58 = vpack.c.bf16 %v3932_v38, %v3928_v42  ;;  %v8192_v42 = vld [vmem:[%s13987_s8 + $0xf8] sm:$0xf0] }
 0x3c5   : > { %v3956_v30 = vsel %vm3945_vm9, %v3939_v29, 0  ;;  %v8135_v29 = vor.u32 %v9626_v36, %v8134_v34  ;;  %v8195_v38 = vor.u32 %v9639_v18, %v8192_v42  ;;  %v8312_v34 = vld [vmem:[%s13987_s8 + $0x1e8] sm:$0xf0]  ;;  %v8254_v18 = vld [vmem:[%s13987_s8 + $0x170] sm:$0xf] }
 0x3c6   : > { %4004 = vmatpush.bf16.msrb.mxu0 %v3956_v30  ;;  %v3947_v54 = vsel %vm3945_vm9, %v3936_v58, 0  ;;  %v8184_v58 = vld [vmem:[%s13987_s8 + $0xe8] sm:$0xf0]  ;;  %v9656_v42 = vld [vmem:[%s13987_s8 + $0x174] sm:$0xf0] }
 0x3c7   : > { %3965 = vmatpush.bf16.msrb.mxu3 %v3947_v54  ;;  %4482 = vmatpush.bf16.msrb.mxu1 %v8151_v17  ;;  %v8078_v17 = vld [vmem:[%s13987_s8 + $0x10] sm:$0xf] }
 0x3c9   : > { %8062 = vmatmul.msk.bf16.vlgmr.msrb.gmra.mxu0 %vm3941_vm10, %v12429_v47 }
 0x3ca   : > { %4061 = vmatpush.bf16.msra.mxu0 %v3956_v30  ;;  %8059 = vmatmul.msk.bf16.vlgmr.msrb.gmra.mxu3 %vm3941_vm10, %v12429_v47  ;;  %v9637_v30 = vld [vmem:[%s13987_s8 + $0xe4] sm:$0xf] }
 0x3cb   : > { %4022 = vmatpush.bf16.msra.mxu3 %v3947_v54  ;;  %v8187_v54 = vor.u32 %v9637_v30, %v8184_v58  ;;  %v9610_v30 = vld [vmem:[%s13987_s8 + $0x4] sm:$0xf0]  ;;  %v9667_v58 = vld [vmem:[%s13987_s8 + $0x1d4] sm:$0xf] }
 0x3cc   : > { %v3873_v62 = vpop.f32.mrf.mxu1 }
 0x3ce   : > { %4503 = vmatpush.bf16.msrb.mxu0 %v4459_v23  ;;  %v8262_v23 = vld [vmem:[%s13987_s8 + $0x180] sm:$0xf] }
 0x3cf   : > { %4464 = vmatpush.bf16.msrb.mxu3 %v8127_v40  ;;  %v9658_v40 = vld [vmem:[%s13987_s8 + $0x184] sm:$0xf0] }
 0x3d0   : > { %v8263_v13 = vor.u32 %v9658_v40, %v8262_v23  ;;  %v8272_v23 = vld [vmem:[%s13987_s8 + $0x198] sm:$0xf0] }
 0x3d1   : > { %v3887_v53 = vpop.f32.mrf.mxu3 }
 0x3d2   : > { %v3888_v43 = vadd.f32 %v3887_v53, %v3873_v62  ;;  %4504 = vmatpush.bf16.msrb.mxu0 %v8311_v19  ;;  %v8294_v62 = vld [vmem:[%s13987_s8 + $0x1c0] sm:$0xf]  ;;  %v9666_v53 = vld [vmem:[%s13987_s8 + $0x1c4] sm:$0xf0] }
 0x3d3   : > { %v8295_v25 = vor.u32 %v9666_v53, %v8294_v62  ;;  %v9614_v19 = vld [vmem:[%s13987_s8 + $0x24] sm:$0xf0]  ;;  %v8304_v62 = vld [vmem:[%s13987_s8 + $0x1d8] sm:$0xf0] }
 0x3d4   : > { %v3875_v57 = vpop.f32.mrf.mxu1  ;;  %v3922_v50 = vadd.f32 %v3888_v43, %v3433_v10  ;;  %v8119_v43 = vor.u32 %v9622_v49, %v8118_v32  ;;  %v9620_v10 = vld [vmem:[%s13987_s8 + $0x54] sm:$0xf0]  ;;  %v8307_v53 = vor.u32 %v9667_v58, %v8304_v62  ;;  %v8128_v49 = vld [vmem:[%s13987_s8 + $0x78] sm:$0xf0] }
 0x3d6   : > { %v3930_v1 = vmax.f32 %v3922_v50, 0.0  ;;  %4505 = vmatpush.bf16.msrb.mxu0 %v8303_v22  ;;  %4465 = vmatpush.bf16.msrb.mxu3 %v8119_v43  ;;  %v9631_v50 = vld [vmem:[%s13987_s8 + $0xb4] sm:$0xf]  ;;  %v9625_v22 = vld [vmem:[%s13987_s8 + $0x84] sm:$0xf] }
 0x3d7   : > { %v8163_v3 = vor.u32 %v9631_v50, %v8160_v60  ;;  %v8139_v20 = vor.u32 %v9625_v22, %v8136_v11  ;;  %v8296_v43 = vld [vmem:[%s13987_s8 + $0x1c8] sm:$0xf0]  ;;  %v9650_v60 = vld [vmem:[%s13987_s8 + $0x144] sm:$0xf0]  ;;  %v8206_v11 = vld [vmem:[%s13987_s8 + $0x110] sm:$0xf] }
 0x3d9   : > { %v3889_v39 = vpop.f32.mrf.mxu3  ;;  %8067 = vmatmul.msk.bf16.vlgmr.msra.gmra.mxu0 %vm3941_vm10, %v12441_v5 }
 0x3da   : > { %v3890_v51 = vadd.f32 %v3889_v39, %v3875_v57  ;;  %8064 = vmatmul.msk.bf16.vlgmr.msra.gmra.mxu3 %vm3941_vm10, %v12441_v5  ;;  %4506 = vmatpush.bf16.msrb.mxu0 %v8295_v25  ;;  %v8171_v57 = vor.u32 %v9633_v21, %v8168_v26  ;;  %v8111_v39 = vor.u32 %v9620_v10, %v8110_v6  ;;  %v9654_v25 = vld [vmem:[%s13987_s8 + $0x164] sm:$0xf0]  ;;  %v8238_v21 = vld [vmem:[%s13987_s8 + $0x150] sm:$0xf]  ;;  %v9621_v26 = vld [vmem:[%s13987_s8 + $0x64] sm:$0xf] }
 0x3db   : > { %v8120_v10 = vld [vmem:[%s13987_s8 + $0x68] sm:$0xf0] }
 0x3dc   : > { %v3926_v14 = vadd.f32 %v3890_v51, %v3437_v31  ;;  %4466 = vmatpush.bf16.msrb.mxu3 %v8111_v39  ;;  %v9662_v31 = vld [vmem:[%s13987_s8 + $0x1a4] sm:$0xf0]  ;;  %v9663_v39 = vld [vmem:[%s13987_s8 + $0x1b4] sm:$0xf] }
 0x3dd   : > { %v8279_v51 = vor.u32 %v9662_v31, %v8278_v0  ;;  %v8288_v0 = vld [vmem:[%s13987_s8 + $0x1b8] sm:$0xf0] }
 0x3de   : > { %v3934_v9 = vmax.f32 %v3926_v14, 0.0  ;;  %4507 = vmatpush.bf16.msrb.mxu0 %v8287_v24  ;;  %v9618_v14 = vld [vmem:[%s13987_s8 + $0x44] sm:$0xf0]  ;;  %v9652_v24 = vld [vmem:[%s13987_s8 + $0x154] sm:$0xf0]  ;;  %v8291_v50 = vor.u32 %v9663_v39, %v8288_v0 }
 0x3df   : > { %v8103_v4 = vor.u32 %v9618_v14, %v8102_v8  ;;  %v8239_v6 = vor.u32 %v9652_v24, %v8238_v21  ;;  %v9619_v14 = vld [vmem:[%s13987_s8 + $0x54] sm:$0xf]  ;;  %v9653_v24 = vld [vmem:[%s13987_s8 + $0x164] sm:$0xf] }
 0x3e0   : > { %v3938_v52 = vpack.c.bf16 %v3934_v9, %v3930_v1  ;;  %v9629_v1 = vld [vmem:[%s13987_s8 + $0xa4] sm:$0xf]  ;;  %v8271_v9 = vor.u32 %v9660_v45, %v8270_v41  ;;  %v8280_v45 = vld [vmem:[%s13987_s8 + $0x1a8] sm:$0xf0] }
 0x3e1   : > { %4467 = vmatpush.bf16.msrb.mxu3 %v8103_v4  ;;  %v8155_v63 = vor.u32 %v9629_v1, %v8152_v16  ;;  %v9661_v41 = vld [vmem:[%s13987_s8 + $0x1a4] sm:$0xf]  ;;  %v9648_v16 = vld [vmem:[%s13987_s8 + $0x134] sm:$0xf0] }
 0x3e2   : > { %v3953_v48 = vsel %vm3945_vm9, %v3938_v52, 0  ;;  %4508 = vmatpush.bf16.msrb.mxu0 %v8279_v51  ;;  %v4326_v52 = vunpack.c.h.b16 %v12480_v12  ;;  %v8086_v12 = vld [vmem:[%s13987_s8 + $0x20] sm:$0xf]  ;;  %v8283_v1 = vor.u32 %v9661_v41, %v8280_v45 }
 0x3e3   : > { %3991 = vmatpush.bf16.msra.mxu2 %v3953_v48  ;;  %v8087_v33 = vor.u32 %v9614_v19, %v8086_v12  ;;  %v8230_v51 = vld [vmem:[%s13987_s8 + $0x140] sm:$0xf]  ;;  %v9615_v19 = vld [vmem:[%s13987_s8 + $0x34] sm:$0xf] }
 0x3e4   : > { %v8231_v8 = vor.u32 %v9650_v60, %v8230_v51 }
 0x3e5   : > { %4468 = vmatpush.bf16.msrb.mxu3 %v8095_v35 }
 0x3e6   : > { %8061 = vmatmul.msk.bf16.vlgmr.msra.gmra.mxu2 %vm3941_vm10, %v12429_v47  ;;  %v8143_v47 = vor.u32 %v9628_v28, %v8142_v27  ;;  %4509 = vmatpush.bf16.msrb.mxu0 %v8271_v9  ;;  %v9612_v27 = vld [vmem:[%s13987_s8 + $0x14] sm:$0xf0]  ;;  %v9669_v28 = vld [vmem:[%s13987_s8 + $0x1e4] sm:$0xf]  ;;  %v8222_v9 = vld [vmem:[%s13987_s8 + $0x130] sm:$0xf] }
 0x3e7   : > { %4048 = vmatpush.bf16.msrb.mxu2 %v3953_v48  ;;  %v4390_v48 = vpack.c.b16 %v4326_v52, %v4326_v52  ;;  %v8315_v36 = vor.u32 %v9669_v28, %v8312_v34  ;;  %v8223_v7 = vor.u32 %v9648_v16, %v8222_v9  ;;  %v9659_v52 = vld [vmem:[%s13987_s8 + $0x194] sm:$0xf]  ;;  %v8088_v28 = vld [vmem:[%s13987_s8 + $0x28] sm:$0xf0]  ;;  %v8503_v34 = vld [vmem:[%s13987_s8 + $0x2e8] sm:$0xf] }
 0x3e8   : > { %4483 = vmatpush.bf16.msrb.mxu1 %v8143_v47  ;;  %v8079_v47 = vor.u32 %v9612_v27, %v8078_v17  ;;  %v8275_v2 = vor.u32 %v9659_v52, %v8272_v23  ;;  %v9613_v27 = vld [vmem:[%s13987_s8 + $0x24] sm:$0xf]  ;;  %v9694_v9 = vld [vmem:[%s13987_s8 + $0x2ac] sm:$0xf0]  ;;  %v12859_v16 = vld [vmem:[%s13987_s8 + $0x3e8] sm:$0x33] }
 0x3e9   : > { %v4462_v55 = vsel %vm4457_vm11, %v4390_v48, 0  ;;  %4469 = vmatpush.bf16.msrb.mxu3 %v8087_v33  ;;  %v8096_v48 = vld [vmem:[%s13987_s8 + $0x38] sm:$0xf0]  ;;  %v9657_v33 = vld [vmem:[%s13987_s8 + $0x184] sm:$0xf]  ;;  %v4819_v23 = vunpack.c.l.b16 %v12859_v16 }
 0x3ea   : > { %4510 = vmatpush.bf16.msrb.mxu0 %v8263_v13  ;;  %v8214_v13 = vld [vmem:[%s13987_s8 + $0x120] sm:$0xf] }
 0x3eb   : > { %v8215_v12 = vor.u32 %v9646_v46, %v8214_v13  ;;  %v9692_v13 = vld [vmem:[%s13987_s8 + $0x29c] sm:$0xf0]  ;;  %v9645_v46 = vld [vmem:[%s13987_s8 + $0x124] sm:$0xf] }
 0x3ec   : > { %4484 = vmatpush.bf16.msrb.mxu1 %v8135_v29  ;;  %v8255_v29 = vor.u32 %v9656_v42, %v8254_v18  ;;  %v8198_v42 = vld [vmem:[%s13987_s8 + $0x100] sm:$0xf] }
 0x3ed   : > { %4470 = vmatpush.bf16.msrb.mxu3 %v8079_v47  ;;  %v8091_v47 = vor.u32 %v9613_v27, %v8088_v28 }
 0x3ee   : > { %4555 = vmatpush.bf16.msra.mxu0 %v4462_v55  ;;  %4490 = vmatpush.bf16.msra.mxu2 %v8255_v29  ;;  %v8264_v55 = vld [vmem:[%s13987_s8 + $0x188] sm:$0xf0]  ;;  %v9642_v29 = vld [vmem:[%s13987_s8 + $0x104] sm:$0xf0] }
 0x3ef   : > { %v8267_v22 = vor.u32 %v9657_v33, %v8264_v55  ;;  %v8199_v58 = vor.u32 %v9642_v29, %v8198_v42  ;;  %v8455_v33 = vld [vmem:[%s13987_s8 + $0x288] sm:$0xf]  ;;  %v9690_v55 = vld [vmem:[%s13987_s8 + $0x28c] sm:$0xf0] }
 0x3f0   : > { %4529 = vmatpush.bf16.msra.mxu1 %v8195_v38  ;;  %v8070_v38 = vld [vmem:[%s13987_s8] sm:$0xf]  ;;  %v8456_v28 = vor.u32 %v9690_v55, %v8455_v33 }
 0x3f2   : > { %4556 = vmatpush.bf16.msra.mxu0 %v8315_v36  ;;  %v9702_v36 = vld [vmem:[%s13987_s8 + $0x2ec] sm:$0xf0] }
 0x3f3   : > { %v8504_v62 = vor.u32 %v9702_v36, %v8503_v34  ;;  %v8447_v34 = vld [vmem:[%s13987_s8 + $0x278] sm:$0xf]  ;;  %v9688_v36 = vld [vmem:[%s13987_s8 + $0x27c] sm:$0xf0] }
 0x3f4   : > { %4530 = vmatpush.bf16.msra.mxu1 %v8187_v54  ;;  %v8071_v54 = vor.u32 %v9610_v30, %v8070_v38  ;;  %v9611_v38 = vld [vmem:[%s13987_s8 + $0x14] sm:$0xf] }
 0x3f6   : > { %8066 = vmatmul.msk.bf16.vlgmr.msrb.gmra.mxu2 %vm3941_vm10, %v12441_v5  ;;  %v8176_v5 = vld [vmem:[%s13987_s8 + $0xd8] sm:$0xf0]  ;;  %4471 = vmatpush.bf16.msrb.mxu3 %v8071_v54 }
 0x3f7   : > { %v8179_v37 = vor.u32 %v9635_v59, %v8176_v5  ;;  %v8246_v59 = vld [vmem:[%s13987_s8 + $0x160] sm:$0xf]  ;;  %v9623_v5 = vld [vmem:[%s13987_s8 + $0x74] sm:$0xf]  ;;  %4557 = vmatpush.bf16.msra.mxu0 %v8307_v53  ;;  %v8080_v54 = vld [vmem:[%s13987_s8 + $0x18] sm:$0xf0] }
 0x3f8   : > { %v8247_v32 = vor.u32 %v9654_v25, %v8246_v59  ;;  %v8131_v44 = vor.u32 %v9623_v5, %v8128_v49  ;;  %v8083_v53 = vor.u32 %v9611_v38, %v8080_v54  ;;  %v9655_v59 = vld [vmem:[%s13987_s8 + $0x174] sm:$0xf]  ;;  %v8495_v5 = vld [vmem:[%s13987_s8 + $0x2d8] sm:$0xf]  ;;  %v8256_v49 = vld [vmem:[%s13987_s8 + $0x178] sm:$0xf0] }
 0x3f9   : > { %4531 = vmatpush.bf16.msra.mxu1 %v8179_v37  ;;  %v9665_v37 = vld [vmem:[%s13987_s8 + $0x1c4] sm:$0xf]  ;;  %v9732_v38 = vld [vmem:[%s13987_s8 + $0x3dc] sm:$0xf0] }
 0x3fa   : > { %v8299_v15 = vor.u32 %v9665_v37, %v8296_v43  ;;  %4491 = vmatpush.bf16.msra.mxu2 %v8247_v32  ;;  %4516 = vmatpush.bf16.msra.mxu3 %v8131_v44  ;;  %v9700_v32 = vld [vmem:[%s13987_s8 + $0x2dc] sm:$0xf0]  ;;  %v8259_v37 = vor.u32 %v9655_v59, %v8256_v49  ;;  %v9609_v43 = vld [vmem:[%s13987_s8 + $0x4] sm:$0xf]  ;;  %v8072_v44 = vld [vmem:[%s13987_s8 + $0x8] sm:$0xf0] }
 0x3fb   : > { %v8496_v21 = vor.u32 %v9700_v32, %v8495_v5  ;;  %v9641_v54 = vld [vmem:[%s13987_s8 + $0x104] sm:$0xf]  ;;  %v8615_v32 = vld [vmem:[%s13987_s8 + $0x3c8] sm:$0xf]  ;;  %v9730_v49 = vld [vmem:[%s13987_s8 + $0x3cc] sm:$0xf0] }
 0x3fc   : > { %4558 = vmatpush.bf16.msra.mxu0 %v8299_v15  ;;  %v8075_v15 = vor.u32 %v9609_v43, %v8072_v44  ;;  %v8497_v43 = vld [vmem:[%s13987_s8 + $0x2e0] sm:$0xf0] }
 0x3fd   : > { %4532 = vmatpush.bf16.msra.mxu1 %v8171_v57  ;;  %v8123_v57 = vor.u32 %v9621_v26, %v8120_v10  ;;  %v8248_v26 = vld [vmem:[%s13987_s8 + $0x168] sm:$0xf0]  ;;  %v9698_v10 = vld [vmem:[%s13987_s8 + $0x2cc] sm:$0xf0] }
 0x3fe   : > { %4492 = vmatpush.bf16.msra.mxu2 %v8239_v6  ;;  %v8487_v6 = vld [vmem:[%s13987_s8 + $0x2c8] sm:$0xf] }
 0x3ff   : > { %4517 = vmatpush.bf16.msra.mxu3 %v8123_v57  ;;  %v8251_v57 = vor.u32 %v9653_v24, %v8248_v26  ;;  %v8488_v51 = vor.u32 %v9698_v10, %v8487_v6  ;;  %v9686_v24 = vld [vmem:[%s13987_s8 + $0x26c] sm:$0xf0]  ;;  %v8616_v10 = vor.u32 %v9730_v49, %v8615_v32 }
 0x400   : > { %4559 = vmatpush.bf16.msra.mxu0 %v8291_v50  ;;  %v8240_v50 = vld [vmem:[%s13987_s8 + $0x158] sm:$0xf0] }
 0x401   : > { %4533 = vmatpush.bf16.msra.mxu1 %v8163_v3  ;;  %v8112_v3 = vld [vmem:[%s13987_s8 + $0x58] sm:$0xf0] }
 0x402   : > { %v8115_v4 = vor.u32 %v9619_v14, %v8112_v3  ;;  %4493 = vmatpush.bf16.msra.mxu2 %v8231_v8  ;;  %v8479_v8 = vld [vmem:[%s13987_s8 + $0x2b8] sm:$0xf]  ;;  %v9696_v14 = vld [vmem:[%s13987_s8 + $0x2bc] sm:$0xf0]  ;;  %v9649_v3 = vld [vmem:[%s13987_s8 + $0x144] sm:$0xf] }
 0x403   : > { %v8480_v41 = vor.u32 %v9696_v14, %v8479_v8  ;;  %v8431_v8 = vld [vmem:[%s13987_s8 + $0x258] sm:$0xf]  ;;  %v9684_v14 = vld [vmem:[%s13987_s8 + $0x25c] sm:$0xf0] }
 0x404   : > { %4518 = vmatpush.bf16.msra.mxu3 %v8115_v4  ;;  %4560 = vmatpush.bf16.msra.mxu0 %v8283_v1  ;;  %v8232_v4 = vld [vmem:[%s13987_s8 + $0x148] sm:$0xf0]  ;;  %v8471_v1 = vld [vmem:[%s13987_s8 + $0x2a8] sm:$0xf] }
 0x405   : > { %4534 = vmatpush.bf16.msra.mxu1 %v8155_v63  ;;  %v8104_v63 = vld [vmem:[%s13987_s8 + $0x48] sm:$0xf0]  ;;  %v8235_v45 = vor.u32 %v9649_v3, %v8232_v4  ;;  %v8472_v52 = vor.u32 %v9694_v9, %v8471_v1  ;;  %v9726_v1 = vld [vmem:[%s13987_s8 + $0x3ac] sm:$0xf0]  ;;  %v9695_v9 = vld [vmem:[%s13987_s8 + $0x2bc] sm:$0xf] }
 0x406   : > { %v8107_v35 = vor.u32 %v9617_v61, %v8104_v63  ;;  %4494 = vmatpush.bf16.msra.mxu2 %v8223_v7  ;;  %v9647_v63 = vld [vmem:[%s13987_s8 + $0x134] sm:$0xf] }
 0x408   : > { %4519 = vmatpush.bf16.msra.mxu3 %v8107_v35  ;;  %4561 = vmatpush.bf16.msra.mxu0 %v8275_v2  ;;  %v8224_v35 = vld [vmem:[%s13987_s8 + $0x138] sm:$0xf0]  ;;  %v8463_v2 = vld [vmem:[%s13987_s8 + $0x298] sm:$0xf] }
 0x409   : > { %4535 = vmatpush.bf16.msra.mxu1 %v8147_v56  ;;  %v8099_v56 = vor.u32 %v9615_v19, %v8096_v48  ;;  %v8464_v19 = vor.u32 %v9692_v13, %v8463_v2  ;;  %v4883_v48 = vpack.c.b16 %v4819_v23, %v4819_v23  ;;  %v8591_v2 = vld [vmem:[%s13987_s8 + $0x398] sm:$0xf] }
 0x40a   : > { %4495 = vmatpush.bf16.msra.mxu2 %v8215_v12  ;;  %v8216_v12 = vld [vmem:[%s13987_s8 + $0x128] sm:$0xf0] }
 0x40c   : > { %4520 = vmatpush.bf16.msra.mxu3 %v8099_v56  ;;  %4562 = vmatpush.bf16.msra.mxu0 %v8267_v22  ;;  %v8219_v56 = vor.u32 %v9645_v46, %v8216_v12  ;;  %v9724_v46 = vld [vmem:[%s13987_s8 + $0x39c] sm:$0xf0]  ;;  %v9693_v12 = vld [vmem:[%s13987_s8 + $0x2ac] sm:$0xf] }
 0x40d   : > { %4536 = vmatpush.bf16.msra.mxu1 %v8139_v20  ;;  %v9644_v20 = vld [vmem:[%s13987_s8 + $0x114] sm:$0xf0]  ;;  %v8592_v33 = vor.u32 %v9724_v46, %v8591_v2  ;;  %v9683_v2 = vld [vmem:[%s13987_s8 + $0x25c] sm:$0xf] }
 0x40e   : > { %v8207_v17 = vor.u32 %v9644_v20, %v8206_v11  ;;  %v9643_v20 = vld [vmem:[%s13987_s8 + $0x114] sm:$0xf] }
 0x410   : > { %4496 = vmatpush.bf16.msra.mxu2 %v8207_v17  ;;  %4521 = vmatpush.bf16.msra.mxu3 %v8091_v47  ;;  %v8208_v17 = vld [vmem:[%s13987_s8 + $0x118] sm:$0xf0]  ;;  %v4948_v47 = vsel %vm4457_vm11, %v4883_v48, 0  ;;  %v8415_v48 = vld [vmem:[%s13987_s8 + $0x238] sm:$0xf] }
 0x411   : > { %v8211_v42 = vor.u32 %v9643_v20, %v8208_v17  ;;  %v9722_v17 = vld [vmem:[%s13987_s8 + $0x38c] sm:$0xf0] }
 0x414   : > { %4497 = vmatpush.bf16.msra.mxu2 %v8199_v58  ;;  %4522 = vmatpush.bf16.msra.mxu3 %v8083_v53  ;;  %v8505_v58 = vld [vmem:[%s13987_s8 + $0x2f0] sm:$0xf0]  ;;  %v8448_v53 = vor.u32 %v9688_v36, %v8447_v34 }
 0x418   : > { %4542 = vmatpush.bf16.msrb.mxu2 %v8259_v37  ;;  %4523 = vmatpush.bf16.msra.mxu3 %v8075_v15  ;;  %v9699_v37 = vld [vmem:[%s13987_s8 + $0x2dc] sm:$0xf] }
 0x41c   : > { %4543 = vmatpush.bf16.msrb.mxu2 %v8251_v57  ;;  %v8500_v57 = vor.u32 %v9699_v37, %v8497_v43  ;;  %v9687_v43 = vld [vmem:[%s13987_s8 + $0x27c] sm:$0xf] }
 0x42b   : > { %v3980_v31 = vpop.f32.mrf.mxu1 }
 0x433   : > { %v3982_v40 = vpop.f32.mrf.mxu1 }
 0x434   : > { %v8227_v40 = vor.u32 %v9647_v63, %v8224_v35  ;;  %v9682_v63 = vld [vmem:[%s13987_s8 + $0x24c] sm:$0xf0] }
 0x43b   : > { %v4037_v18 = vpop.f32.mrf.mxu1 }
 0x43c   : > { %v4068_v30 = vmax.f32 %v3980_v31, %v4037_v18  ;;  %v9651_v31 = vld [vmem:[%s13987_s8 + $0x154] sm:$0xf]  ;;  %v8623_v18 = vld [vmem:[%s13987_s8 + $0x3d8] sm:$0xf] }
 0x43d   : > { %v8243_v60 = vor.u32 %v9651_v31, %v8240_v50  ;;  %v8624_v59 = vor.u32 %v9732_v38, %v8623_v18  ;;  %v9728_v50 = vld [vmem:[%s13987_s8 + $0x3bc] sm:$0xf0] }
 0x43e   : > { %v12802_v25 = vpack.c.bf16 %v4068_v30, %v4068_v30  ;;  %v9701_v30 = vld [vmem:[%s13987_s8 + $0x2ec] sm:$0xf] }
 0x43f   : > { %4544 = vmatpush.bf16.msrb.mxu2 %v8243_v60  ;;  %v8508_v5 = vor.u32 %v9701_v30, %v8505_v58  ;;  %v8489_v60 = vld [vmem:[%s13987_s8 + $0x2d0] sm:$0xf0]  ;;  %v9720_v58 = vld [vmem:[%s13987_s8 + $0x37c] sm:$0xf0] }
 0x440   : > { %4485 = vmatmul.bf16.vlgmr.msrb.gmra.mxu1 %v12802_v25 }
 0x441   : > { %4966 = vmatpush.bf16.msrb.mxu1 %v8504_v62  ;;  %v8200_v62 = vld [vmem:[%s13987_s8 + $0x108] sm:$0xf0] }
 0x442   : > { %v8203_v44 = vor.u32 %v9641_v54, %v8200_v62  ;;  %v9689_v54 = vld [vmem:[%s13987_s8 + $0x28c] sm:$0xf]  ;;  %v8457_v62 = vld [vmem:[%s13987_s8 + $0x290] sm:$0xf0] }
 0x443   : > { %v4039_v39 = vpop.f32.mrf.mxu1  ;;  %4545 = vmatpush.bf16.msrb.mxu2 %v8235_v45  ;;  %v8432_v45 = vor.u32 %v9684_v14, %v8431_v8  ;;  %v8460_v32 = vor.u32 %v9689_v54, %v8457_v62  ;;  %v9672_v8 = vld [vmem:[%s13987_s8 + $0x1fc] sm:$0xf0]  ;;  %v9729_v14 = vld [vmem:[%s13987_s8 + $0x3cc] sm:$0xf]  ;;  %v8585_v62 = vld [vmem:[%s13987_s8 + $0x390] sm:$0xf0] }
 0x444   : > { %v8607_v39 = vld [vmem:[%s13987_s8 + $0x3b8] sm:$0xf]  ;;  %v9721_v54 = vld [vmem:[%s13987_s8 + $0x38c] sm:$0xf] }
 0x445   : > { %4967 = vmatpush.bf16.msrb.mxu1 %v8496_v21  ;;  %v8439_v21 = vld [vmem:[%s13987_s8 + $0x268] sm:$0xf]  ;;  %v8608_v3 = vor.u32 %v9728_v50, %v8607_v39  ;;  %v9718_v39 = vld [vmem:[%s13987_s8 + $0x36c] sm:$0xf0] }
 0x446   : > { %v4006_v0 = vpop.f32.mrf.mxu0  ;;  %v8440_v31 = vor.u32 %v9686_v24, %v8439_v21  ;;  %v9674_v21 = vld [vmem:[%s13987_s8 + $0x20c] sm:$0xf0]  ;;  %v9731_v24 = vld [vmem:[%s13987_s8 + $0x3dc] sm:$0xf] }
 0x447   : > { %4546 = vmatpush.bf16.msrb.mxu2 %v8227_v40 }
 0x449   : > { %4968 = vmatpush.bf16.msrb.mxu1 %v8488_v51  ;;  %v9697_v51 = vld [vmem:[%s13987_s8 + $0x2cc] sm:$0xf] }
 0x44a   : > { %v8492_v4 = vor.u32 %v9697_v51, %v8489_v60  ;;  %v8383_v60 = vld [vmem:[%s13987_s8 + $0x1f8] sm:$0xf] }
 0x44b   : > { %4547 = vmatpush.bf16.msrb.mxu2 %v8219_v56  ;;  %v9680_v56 = vld [vmem:[%s13987_s8 + $0x23c] sm:$0xf0] }
 0x44c   : > { %v8416_v20 = vor.u32 %v9680_v56, %v8415_v48  ;;  %v9725_v56 = vld [vmem:[%s13987_s8 + $0x3ac] sm:$0xf] }
 0x44d   : > { %v3967_v7 = vpop.f32.mrf.mxu3  ;;  %4969 = vmatpush.bf16.msrb.mxu1 %v8480_v41  ;;  %v8599_v41 = vld [vmem:[%s13987_s8 + $0x3a8] sm:$0xf] }
 0x44e   : > { %v4008_v61 = vpop.f32.mrf.mxu0  ;;  %v8600_v23 = vor.u32 %v9726_v1, %v8599_v41  ;;  %v8441_v1 = vld [vmem:[%s13987_s8 + $0x270] sm:$0xf0] }
 0x44f   : > { %4548 = vmatpush.bf16.msrb.mxu2 %v8211_v42  ;;  %v8481_v61 = vld [vmem:[%s13987_s8 + $0x2c0] sm:$0xf0]  ;;  %v8575_v42 = vld [vmem:[%s13987_s8 + $0x378] sm:$0xf] }
 0x450   : > { %4537 = vmatmul.bf16.vlgmr.msra.gmra.mxu1 %v12802_v25  ;;  %v8484_v40 = vor.u32 %v9695_v9, %v8481_v61  ;;  %v8559_v9 = vld [vmem:[%s13987_s8 + $0x358] sm:$0xf]  ;;  %v9716_v61 = vld [vmem:[%s13987_s8 + $0x35c] sm:$0xf0] }
 0x451   : > { %4970 = vmatpush.bf16.msrb.mxu1 %v8472_v52 }
 0x453   : > { %4549 = vmatpush.bf16.msrb.mxu2 %v8203_v44  ;;  %v8449_v44 = vld [vmem:[%s13987_s8 + $0x280] sm:$0xf0] }
 0x455   : > { %v3969_v11 = vpop.f32.mrf.mxu3  ;;  %4971 = vmatpush.bf16.msrb.mxu1 %v8464_v19  ;;  %v8473_v19 = vld [vmem:[%s13987_s8 + $0x2b0] sm:$0xf0] }
 0x456   : > { %v4063_v22 = vpop.f32.mrf.mxu0  ;;  %v8476_v55 = vor.u32 %v9693_v12, %v8473_v19  ;;  %v4820_v11 = vunpack.c.h.b16 %v12859_v16  ;;  %v9678_v16 = vld [vmem:[%s13987_s8 + $0x22c] sm:$0xf0]  ;;  %v8551_v12 = vld [vmem:[%s13987_s8 + $0x348] sm:$0xf] }
 0x457   : > { %v4070_v27 = vmax.f32 %v4006_v0, %v4063_v22  ;;  %v8583_v22 = vld [vmem:[%s13987_s8 + $0x388] sm:$0xf]  ;;  %v9714_v19 = vld [vmem:[%s13987_s8 + $0x34c] sm:$0xf0] }
 0x458   : > { %v8584_v36 = vor.u32 %v9722_v17, %v8583_v22  ;;  %v4884_v38 = vpack.c.b16 %v4820_v11, %v4820_v11  ;;  %v9681_v22 = vld [vmem:[%s13987_s8 + $0x24c] sm:$0xf]  ;;  %v8425_v11 = vld [vmem:[%s13987_s8 + $0x250] sm:$0xf0]  ;;  %v9712_v17 = vld [vmem:[%s13987_s8 + $0x33c] sm:$0xf0] }
 0x459   : > { %v12903_v29 = vpack.c.bf16 %v4070_v27, %v4070_v27  ;;  %4972 = vmatpush.bf16.msrb.mxu1 %v8456_v28  ;;  %v9691_v27 = vld [vmem:[%s13987_s8 + $0x29c] sm:$0xf]  ;;  %v8465_v28 = vld [vmem:[%s13987_s8 + $0x2a0] sm:$0xf0] }
 0x45a   : > { %v8468_v18 = vor.u32 %v9691_v27, %v8465_v28  ;;  %v4951_v49 = vsel %vm4457_vm11, %v4884_v38, 0  ;;  %v8428_v28 = vor.u32 %v9681_v22, %v8425_v11  ;;  %v9710_v38 = vld [vmem:[%s13987_s8 + $0x32c] sm:$0xf0]  ;;  %v9703_v11 = vld [vmem:[%s13987_s8 + $0x2fc] sm:$0xf] }
 0x45b   : > { %8316 = vmatmul.msk.bf16.vlgmr.msrb.gmra.mxu0 %vm4453_vm12, %v12903_v29 }
 0x45c   : > { %4992 = vmatpush.bf16.msrb.mxu0 %v4948_v47  ;;  %v8407_v47 = vld [vmem:[%s13987_s8 + $0x228] sm:$0xf] }
 0x45d   : > { %v4024_v15 = vpop.f32.mrf.mxu3  ;;  %4973 = vmatpush.bf16.msrb.mxu1 %v8448_v53  ;;  %v8408_v30 = vor.u32 %v9678_v16, %v8407_v47  ;;  %v8399_v53 = vld [vmem:[%s13987_s8 + $0x218] sm:$0xf]  ;;  %v9723_v47 = vld [vmem:[%s13987_s8 + $0x39c] sm:$0xf]  ;;  %v8593_v16 = vld [vmem:[%s13987_s8 + $0x3a0] sm:$0xf0] }
 0x45e   : > { %v4065_v26 = vpop.f32.mrf.mxu0  ;;  %v4067_v6 = vmax.f32 %v3967_v7, %v4024_v15  ;;  %v8423_v7 = vld [vmem:[%s13987_s8 + $0x248] sm:$0xf] }
 0x45f   : > { %v8424_v13 = vor.u32 %v9682_v63, %v8423_v7  ;;  %v8391_v15 = vld [vmem:[%s13987_s8 + $0x208] sm:$0xf]  ;;  %v8625_v26 = vld [vmem:[%s13987_s8 + $0x3e0] sm:$0xf0]  ;;  %v8384_v7 = vor.u32 %v9672_v8, %v8383_v60  ;;  %v8511_v60 = vld [vmem:[%s13987_s8 + $0x2f8] sm:$0xf] }
 0x460   : > { %4993 = vmatpush.bf16.msrb.mxu0 %v8624_v59  ;;  %v12943_v0 = vpack.c.bf16 %v4067_v6, %v4067_v6  ;;  %4974 = vmatmul.bf16.vlgmr.msrb.gmra.mxu1 %v12802_v25  ;;  %v9676_v59 = vld [vmem:[%s13987_s8 + $0x21c] sm:$0xf0]  ;;  %v8392_v50 = vor.u32 %v9674_v21, %v8391_v15  ;;  %v8628_v51 = vor.u32 %v9731_v24, %v8625_v26  ;;  %v8577_v15 = vld [vmem:[%s13987_s8 + $0x380] sm:$0xf0]  ;;  %v9675_v24 = vld [vmem:[%s13987_s8 + $0x21c] sm:$0xf] }
 0x461   : > { %5018 = vmatpush.bf16.msra.mxu1 %v8508_v5  ;;  %v8576_v5 = vor.u32 %v9720_v58, %v8575_v42  ;;  %v8400_v37 = vor.u32 %v9676_v59, %v8399_v53  ;;  %v8535_v42 = vld [vmem:[%s13987_s8 + $0x328] sm:$0xf]  ;;  %v9677_v59 = vld [vmem:[%s13987_s8 + $0x22c] sm:$0xf]  ;;  %v8401_v26 = vld [vmem:[%s13987_s8 + $0x220] sm:$0xf0] }
 0x462   : > { %4472 = vmatmul.bf16.vlgmr.msrb.gmra.mxu3 %v12943_v0  ;;  %v8536_v53 = vor.u32 %v9710_v38, %v8535_v42  ;;  %v9704_v8 = vld [vmem:[%s13987_s8 + $0x2fc] sm:$0xf0]  ;;  %v9746_v38 = vld [vmem:[%s13988_s9 + $0x64] sm:$0xf0] }
 0x463   : > { %4953 = vmatpush.bf16.msrb.mxu3 %v8440_v31  ;;  %v8681_v42 = vld [vmem:[%s13988_s9 + $0x60] sm:$0xf] }
 0x464   : > { %4994 = vmatpush.bf16.msrb.mxu0 %v8616_v10  ;;  %v8452_v10 = vor.u32 %v9687_v43, %v8449_v44  ;;  %v9719_v44 = vld [vmem:[%s13987_s8 + $0x37c] sm:$0xf] }
 0x465   : > { %5019 = vmatpush.bf16.msra.mxu1 %v8500_v57  ;;  %v4026_v35 = vpop.f32.mrf.mxu3  ;;  %v8567_v57 = vld [vmem:[%s13987_s8 + $0x368] sm:$0xf] }
 0x466   : > { %v8568_v41 = vor.u32 %v9718_v39, %v8567_v57  ;;  %v8580_v57 = vor.u32 %v9719_v44, %v8577_v15  ;;  %v8404_v39 = vor.u32 %v9675_v24, %v8401_v26  ;;  %v8675_v44 = vld [vmem:[%s13988_s9 + $0x58] sm:$0xf0]  ;;  %v9742_v24 = vld [vmem:[%s13988_s9 + $0x44] sm:$0xf0]  ;;  %v9741_v26 = vld [vmem:[%s13988_s9 + $0x44] sm:$0xf] }
 0x467   : > { %4954 = vmatpush.bf16.msrb.mxu3 %v8432_v45  ;;  %v9685_v45 = vld [vmem:[%s13987_s8 + $0x26c] sm:$0xf] }
 0x468   : > { %4995 = vmatpush.bf16.msrb.mxu0 %v8608_v3  ;;  %v8617_v3 = vld [vmem:[%s13987_s8 + $0x3d0] sm:$0xf0]  ;;  %v8444_v35 = vor.u32 %v9685_v45, %v8441_v1  ;;  %v8512_v45 = vor.u32 %v9704_v8, %v8511_v60  ;;  %v9671_v1 = vld [vmem:[%s13987_s8 + $0x1fc] sm:$0xf] }
 0x469   : > { %5020 = vmatpush.bf16.msra.mxu1 %v8492_v4  ;;  %v3993_v52 = vpop.f32.mrf.mxu2  ;;  %v8620_v63 = vor.u32 %v9729_v14, %v8617_v3  ;;  %v9717_v14 = vld [vmem:[%s13987_s8 + $0x36c] sm:$0xf]  ;;  %v8569_v3 = vld [vmem:[%s13987_s8 + $0x370] sm:$0xf0] }
 0x46b   : > { %8317 = vmatmul.msk.bf16.vlgmr.msra.gmra.mxu0 %vm4453_vm12, %v12903_v29  ;;  %4955 = vmatpush.bf16.msrb.mxu3 %v8424_v13  ;;  %v8433_v13 = vld [vmem:[%s13987_s8 + $0x260] sm:$0xf0] }
 0x46c   : > { %4996 = vmatpush.bf16.msrb.mxu0 %v8600_v23  ;;  %v8609_v23 = vld [vmem:[%s13987_s8 + $0x3c0] sm:$0xf0]  ;;  %v8436_v48 = vor.u32 %v9683_v2, %v8433_v13  ;;  %v9711_v2 = vld [vmem:[%s13987_s8 + $0x33c] sm:$0xf] }
 0x46d   : > { %5021 = vmatpush.bf16.msra.mxu1 %v8484_v40  ;;  %v8560_v40 = vor.u32 %v9716_v61, %v8559_v9  ;;  %v8385_v9 = vld [vmem:[%s13987_s8 + $0x200] sm:$0xf0]  ;;  %v8572_v61 = vor.u32 %v9717_v14, %v8569_v3  ;;  %v8659_v14 = vld [vmem:[%s13988_s9 + $0x38] sm:$0xf0] }
 0x46e   : > { %v8545_v13 = vld [vmem:[%s13987_s8 + $0x340] sm:$0xf0] }
 0x46f   : > { %4956 = vmatpush.bf16.msrb.mxu3 %v8416_v20  ;;  %v8543_v20 = vld [vmem:[%s13987_s8 + $0x338] sm:$0xf] }
 0x470   : > { %4997 = vmatpush.bf16.msrb.mxu0 %v8592_v33  ;;  %v8601_v33 = vld [vmem:[%s13987_s8 + $0x3b0] sm:$0xf0] }
 0x471   : > { %5022 = vmatpush.bf16.msra.mxu1 %v8476_v55  ;;  %v3995_v34 = vpop.f32.mrf.mxu2  ;;  %v8552_v55 = vor.u32 %v9714_v19, %v8551_v12  ;;  %v8604_v27 = vor.u32 %v9725_v56, %v8601_v33  ;;  %v9709_v12 = vld [vmem:[%s13987_s8 + $0x32c] sm:$0xf]  ;;  %v8537_v19 = vld [vmem:[%s13987_s8 + $0x330] sm:$0xf0] }
 0x472   : > { %4524 = vmatmul.bf16.vlgmr.msra.gmra.mxu3 %v12943_v0  ;;  %v8544_v34 = vor.u32 %v9712_v17, %v8543_v20  ;;  %v9705_v33 = vld [vmem:[%s13987_s8 + $0x30c] sm:$0xf]  ;;  %v8513_v20 = vld [vmem:[%s13987_s8 + $0x300] sm:$0xf0] }
 0x473   : > { %4957 = vmatpush.bf16.msrb.mxu3 %v8408_v30  ;;  %v8596_v30 = vor.u32 %v9723_v47, %v8593_v16  ;;  %v8516_v17 = vor.u32 %v9703_v11, %v8513_v20  ;;  %v8689_v16 = vld [vmem:[%s13988_s9 + $0x70] sm:$0xf]  ;;  %v9763_v11 = vld [vmem:[%s13988_s9 + $0xf4] sm:$0xf]  ;;  %v8755_v20 = vld [vmem:[%s13988_s9 + $0xf8] sm:$0x10] }
 0x474   : > { %4998 = vmatpush.bf16.msrb.mxu0 %v8584_v36  ;;  %v9679_v36 = vld [vmem:[%s13987_s8 + $0x23c] sm:$0xf] }
 0x475   : > { %5023 = vmatpush.bf16.msra.mxu1 %v8468_v18  ;;  %v8417_v18 = vld [vmem:[%s13987_s8 + $0x240] sm:$0xf0] }
 0x476   : > { %v8420_v58 = vor.u32 %v9679_v36, %v8417_v18  ;;  %v9747_v36 = vld [vmem:[%s13988_s9 + $0x74] sm:$0xf] }
 0x477   : > { %4958 = vmatpush.bf16.msrb.mxu3 %v8400_v37  ;;  %v8588_v37 = vor.u32 %v9721_v54, %v8585_v62  ;;  %v8683_v54 = vld [vmem:[%s13988_s9 + $0x68] sm:$0xf0]  ;;  %v8682_v62 = vor.u32 %v9746_v38, %v8681_v42 }
 0x478   : > { %4999 = vmatpush.bf16.msrb.mxu0 %v8576_v5  ;;  %v8409_v5 = vld [vmem:[%s13987_s8 + $0x230] sm:$0xf0] }
 0x479   : > { %5024 = vmatpush.bf16.msra.mxu1 %v8460_v32  ;;  %v4050_v6 = vpop.f32.mrf.mxu2  ;;  %v8527_v32 = vld [vmem:[%s13987_s8 + $0x318] sm:$0xf]  ;;  %v8412_v43 = vor.u32 %v9677_v59, %v8409_v5  ;;  %v8673_v5 = vld [vmem:[%s13988_s9 + $0x50] sm:$0xf] }
 0x47a   : > { %v4069_v31 = vmax.f32 %v3993_v52, %v4050_v6  ;;  %v9727_v52 = vld [vmem:[%s13987_s8 + $0x3bc] sm:$0xf]  ;;  %v8519_v6 = vld [vmem:[%s13987_s8 + $0x308] sm:$0xf] }
 0x47b   : > { %8629 = vmatmul.msk.bf16.vlgmr.msrb.gmra.mxu0 %vm4453_vm12, %v12903_v29  ;;  %4959 = vmatpush.bf16.msrb.mxu3 %v8392_v50  ;;  %v9673_v50 = vld [vmem:[%s13987_s8 + $0x20c] sm:$0xf] }
 0x47c   : > { %5044 = vmatpush.bf16.msra.mxu0 %v4951_v49  ;;  %v13075_v4 = vpack.c.bf16 %v4069_v31, %v4069_v31  ;;  %v9708_v49 = vld [vmem:[%s13987_s8 + $0x31c] sm:$0xf0] }
 0x47d   : > { %5025 = vmatpush.bf16.msra.mxu1 %v8452_v10  ;;  %v8528_v21 = vor.u32 %v9708_v49, %v8527_v32  ;;  %v9706_v10 = vld [vmem:[%s13987_s8 + $0x30c] sm:$0xf0]  ;;  %v9744_v32 = vld [vmem:[%s13988_s9 + $0x54] sm:$0xf0]  ;;  %v9743_v49 = vld [vmem:[%s13988_s9 + $0x54] sm:$0xf] }
 0x47e   : > { %4498 = vmatmul.bf16.vlgmr.msra.gmra.mxu2 %v13075_v4  ;;  %v8520_v31 = vor.u32 %v9706_v10, %v8519_v6  ;;  %v8678_v15 = vor.u32 %v9743_v49, %v8675_v44  ;;  %v8667_v10 = vld [vmem:[%s13988_s9 + $0x48] sm:$0xf0]  ;;  %v9778_v49 = vld [vmem:[%s13988_s9 + $0x164] sm:$0xf0] }
 0x47f   : > { %4979 = vmatpush.bf16.msra.mxu2 %v8568_v41  ;;  %4960 = vmatpush.bf16.msrb.mxu3 %v8384_v7  ;;  %v9715_v7 = vld [vmem:[%s13987_s8 + $0x35c] sm:$0xf] }
 0x480   : > { %5045 = vmatpush.bf16.msra.mxu0 %v8628_v51  ;;  %5026 = vmatmul.bf16.vlgmr.msra.gmra.mxu1 %v12802_v25  ;;  %v8612_v25 = vor.u32 %v9727_v52, %v8609_v23  ;;  %v8393_v51 = vld [vmem:[%s13987_s8 + $0x210] sm:$0xf0]  ;;  %v9713_v23 = vld [vmem:[%s13987_s8 + $0x34c] sm:$0xf] }
 0x481   : > { %v4052_v46 = vpop.f32.mrf.mxu2  ;;  %v8396_v41 = vor.u32 %v9673_v50, %v8393_v51  ;;  %v9740_v50 = vld [vmem:[%s13988_s9 + $0x34] sm:$0xf0]  ;;  %v9739_v51 = vld [vmem:[%s13988_s9 + $0x34] sm:$0xf] }
 0x482   : > { %4961 = vmatmul.bf16.vlgmr.msrb.gmra.mxu3 %v12943_v0  ;;  %v8548_v46 = vor.u32 %v9711_v2, %v8545_v13  ;;  %v8662_v3 = vor.u32 %v9739_v51, %v8659_v14  ;;  %v8643_v13 = vld [vmem:[%s13988_s9 + $0x18] sm:$0xf0]  ;;  %v9776_v51 = vld [vmem:[%s13988_s9 + $0x154] sm:$0xf0]  ;;  %v9775_v14 = vld [vmem:[%s13988_s9 + $0x154] sm:$0xf] }
 0x483   : > { %5005 = vmatpush.bf16.msra.mxu3 %v8444_v35  ;;  %4980 = vmatpush.bf16.msra.mxu2 %v8560_v40  ;;  %v8388_v35 = vor.u32 %v9671_v1, %v8385_v9  ;;  %v9737_v1 = vld [vmem:[%s13988_s9 + $0x24] sm:$0xf] }
 0x484   : > { %5046 = vmatpush.bf16.msra.mxu0 %v8620_v63  ;;  %v8561_v63 = vld [vmem:[%s13987_s8 + $0x360] sm:$0xf0] }
 0x485   : > { %v8564_v52 = vor.u32 %v9715_v7, %v8561_v63 }
 0x487   : > { %5006 = vmatpush.bf16.msra.mxu3 %v8436_v48  ;;  %4981 = vmatpush.bf16.msra.mxu2 %v8552_v55  ;;  %v8529_v48 = vld [vmem:[%s13987_s8 + $0x320] sm:$0xf0]  ;;  %v8521_v55 = vld [vmem:[%s13987_s8 + $0x310] sm:$0xf0] }
 0x488   : > { %5047 = vmatpush.bf16.msra.mxu0 %v8612_v25  ;;  %v9707_v25 = vld [vmem:[%s13987_s8 + $0x31c] sm:$0xf]  ;;  %v8524_v22 = vor.u32 %v9705_v33, %v8521_v55  ;;  %v8635_v33 = vld [vmem:[%s13988_s9 + $0x8] sm:$0xf0] }
 0x489   : > { %v8532_v56 = vor.u32 %v9707_v25, %v8529_v48  ;;  %v9764_v48 = vld [vmem:[%s13988_s9 + $0xf4] sm:$0x10] }
 0x48b   : > { %5007 = vmatpush.bf16.msra.mxu3 %v8428_v28  ;;  %4982 = vmatpush.bf16.msra.mxu2 %v8544_v34  ;;  %v9748_v34 = vld [vmem:[%s13988_s9 + $0x74] sm:$0xf0] }
 0x48c   : > { %5048 = vmatpush.bf16.msra.mxu0 %v8604_v27  ;;  %v8690_v18 = vor.u32 %v9748_v34, %v8689_v16  ;;  %v9780_v16 = vld [vmem:[%s13988_s9 + $0x174] sm:$0xf0]  ;;  %v9779_v34 = vld [vmem:[%s13988_s9 + $0x174] sm:$0xf] }
 0x48e   : > { %4550 = vmatmul.bf16.vlgmr.msrb.gmra.mxu2 %v13075_v4 }
 0x48f   : > { %5008 = vmatpush.bf16.msra.mxu3 %v8420_v58  ;;  %4983 = vmatpush.bf16.msra.mxu2 %v8536_v53  ;;  %v9745_v58 = vld [vmem:[%s13988_s9 + $0x64] sm:$0xf] }
 0x490   : > { %5049 = vmatpush.bf16.msra.mxu0 %v8596_v30  ;;  %v8686_v53 = vor.u32 %v9745_v58, %v8683_v54  ;;  %v8745_v58 = vld [vmem:[%s13988_s9 + $0xe0] sm:$0xf]  ;;  %v9762_v54 = vld [vmem:[%s13988_s9 + $0xe4] sm:$0xf0] }
 0x493   : > { %5009 = vmatpush.bf16.msra.mxu3 %v8412_v43  ;;  %4984 = vmatpush.bf16.msra.mxu2 %v8528_v21  ;;  %v8674_v43 = vor.u32 %v9744_v32, %v8673_v5  ;;  %v8665_v21 = vld [vmem:[%s13988_s9 + $0x40] sm:$0xf]  ;;  %v8747_v5 = vld [vmem:[%s13988_s9 + $0xe8] sm:$0xf0] }
 0x494   : > { %5050 = vmatpush.bf16.msra.mxu0 %v8588_v37  ;;  %v8666_v6 = vor.u32 %v9742_v24, %v8665_v21  ;;  %v8843_v32 = vld [vmem:[%s13988_s9 + $0x160] sm:$0xf]  ;;  %v8845_v21 = vld [vmem:[%s13988_s9 + $0x168] sm:$0xf0] }
 0x495   : > { %v8844_v44 = vor.u32 %v9778_v49, %v8843_v32 }
 0x497   : > { %5010 = vmatpush.bf16.msra.mxu3 %v8404_v39  ;;  %4985 = vmatpush.bf16.msra.mxu2 %v8520_v31  ;;  %v8657_v31 = vld [vmem:[%s13988_s9 + $0x30] sm:$0xf] }
 0x498   : > { %5051 = vmatpush.bf16.msra.mxu0 %v8580_v57  ;;  %v8670_v57 = vor.u32 %v9741_v26, %v8667_v10  ;;  %v8658_v8 = vor.u32 %v9740_v50, %v8657_v31  ;;  %v8737_v26 = vld [vmem:[%s13988_s9 + $0xd0] sm:$0xf]  ;;  %v9759_v10 = vld [vmem:[%s13988_s9 + $0xd4] sm:$0xf]  ;;  %v8739_v31 = vld [vmem:[%s13988_s9 + $0xd8] sm:$0xf0] }
 0x499   : > { %v8835_v50 = vld [vmem:[%s13988_s9 + $0x150] sm:$0xf] }
 0x49b   : > { %8630 = vmatmul.msk.bf16.vlgmr.msra.gmra.mxu0 %vm4453_vm12, %v12903_v29  ;;  %5011 = vmatpush.bf16.msra.mxu3 %v8396_v41  ;;  %v8553_v29 = vld [vmem:[%s13987_s8 + $0x350] sm:$0xf0]  ;;  %v8649_v41 = vld [vmem:[%s13988_s9 + $0x20] sm:$0xf] }
 0x49c   : > { %4986 = vmatpush.bf16.msra.mxu2 %v8512_v45  ;;  %v8556_v40 = vor.u32 %v9713_v23, %v8553_v29  ;;  %v9738_v45 = vld [vmem:[%s13988_s9 + $0x24] sm:$0xf0]  ;;  %v9736_v23 = vld [vmem:[%s13988_s9 + $0x14] sm:$0xf0]  ;;  %v9735_v29 = vld [vmem:[%s13988_s9 + $0x14] sm:$0xf] }
 0x49d   : > { %v8650_v9 = vor.u32 %v9738_v45, %v8649_v41 }
 0x49f   : > { %4987 = vmatmul.bf16.vlgmr.msra.gmra.mxu2 %v13075_v4  ;;  %5012 = vmatpush.bf16.msra.mxu3 %v8388_v35 }
 0x4a0   : > { %5031 = vmatpush.bf16.msrb.mxu2 %v8572_v61  ;;  %v8651_v61 = vld [vmem:[%s13988_s9 + $0x28] sm:$0xf0] }
 0x4a1   : > { %v8654_v7 = vor.u32 %v9737_v1, %v8651_v61  ;;  %v9758_v61 = vld [vmem:[%s13988_s9 + $0xc4] sm:$0xf0] }
 0x4a2   : > { %5013 = vmatmul.bf16.vlgmr.msra.gmra.mxu3 %v12943_v0  ;;  %v8540_v0 = vor.u32 %v9709_v12, %v8537_v19  ;;  %v8633_v12 = vld [vmem:[%s13988_s9] sm:$0xf]  ;;  %v9734_v19 = vld [vmem:[%s13988_s9 + $0x4] sm:$0xf0] }
 0x4a3   : > { %5262 = vmatpush.bf16.msrb.mxu3 %v8690_v18  ;;  %v8634_v25 = vor.u32 %v9734_v19, %v8633_v12  ;;  %v8829_v12 = vld [vmem:[%s13988_s9 + $0x148] sm:$0xf0] }
 0x4a4   : > { %5032 = vmatpush.bf16.msrb.mxu2 %v8564_v52  ;;  %v8641_v52 = vld [vmem:[%s13988_s9 + $0x10] sm:$0xf] }
 0x4a5   : > { %v8642_v2 = vor.u32 %v9736_v23, %v8641_v52  ;;  %v8827_v23 = vld [vmem:[%s13988_s9 + $0x140] sm:$0xf] }
 0x4a7   : > { %5263 = vmatpush.bf16.msrb.mxu3 %v8682_v62  ;;  %v9761_v62 = vld [vmem:[%s13988_s9 + $0xe4] sm:$0xf] }
 0x4a8   : > { %5033 = vmatpush.bf16.msrb.mxu2 %v8556_v40 }
 0x4ab   : > { %5264 = vmatpush.bf16.msrb.mxu3 %v8674_v43  ;;  %v8750_v43 = vor.u32 %v9761_v62, %v8747_v5  ;;  %v8811_v62 = vld [vmem:[%s13988_s9 + $0x120] sm:$0xf] }
 0x4ac   : > { %5034 = vmatpush.bf16.msrb.mxu2 %v8548_v46  ;;  %v8646_v46 = vor.u32 %v9735_v29, %v8643_v13  ;;  %v9774_v29 = vld [vmem:[%s13988_s9 + $0x144] sm:$0xf0] }
 0x4ad   : > { %v8828_v13 = vor.u32 %v9774_v29, %v8827_v23 }
 0x4af   : > { %5265 = vmatpush.bf16.msrb.mxu3 %v8666_v6  ;;  %v9760_v6 = vld [vmem:[%s13988_s9 + $0xd4] sm:$0xf0] }
 0x4b0   : > { %5035 = vmatpush.bf16.msrb.mxu2 %v8540_v0  ;;  %v8753_v0 = vld [vmem:[%s13988_s9 + $0xf0] sm:$0xf] }
 0x4b1   : > { %v8754_v55 = vor.u32 %v9764_v48, %v8753_v0  ;;  %v8721_v0 = vld [vmem:[%s13988_s9 + $0xb0] sm:$0xf]  ;;  %v9755_v48 = vld [vmem:[%s13988_s9 + $0xb4] sm:$0xf] }
 0x4b3   : > { %5266 = vmatpush.bf16.msrb.mxu3 %v8658_v8  ;;  %v5257_v18 = vsel %vm3945_vm9, %v8754_v55, 0  ;;  %v8836_v8 = vor.u32 %v9776_v51, %v8835_v50  ;;  %v8723_v55 = vld [vmem:[%s13988_s9 + $0xb8] sm:$0xf0] }
 0x4b4   : > { %5036 = vmatpush.bf16.msrb.mxu2 %v8532_v56  ;;  %v9733_v56 = vld [vmem:[%s13988_s9 + $0x4] sm:$0xf]  ;;  %5275 = vmatpush.bf16.msrb.mxu1 %v5257_v18  ;;  %v8713_v18 = vld [vmem:[%s13988_s9 + $0xa0] sm:$0xf] }
 0x4b7   : > { %5267 = vmatpush.bf16.msrb.mxu3 %v8650_v9  ;;  %v8729_v9 = vld [vmem:[%s13988_s9 + $0xc0] sm:$0xf] }
 0x4b8   : > { %5037 = vmatpush.bf16.msrb.mxu2 %v8524_v22  ;;  %v8638_v22 = vor.u32 %v9733_v56, %v8635_v33  ;;  %v8730_v52 = vor.u32 %v9758_v61, %v8729_v9  ;;  %v8699_v61 = vld [vmem:[%s13988_s9 + $0x88] sm:$0xf0] }
 0x4bb   : > { %5268 = vmatpush.bf16.msrb.mxu3 %v8642_v2 }
 0x4bc   : > { %5038 = vmatpush.bf16.msrb.mxu2 %v8516_v17  ;;  %v8851_v17 = vld [vmem:[%s13988_s9 + $0x170] sm:$0xf] }
 0x4bd   : > { %v13256_v27 = vpop.f32.mrf.mxu1 }
 0x4bf   : > { %5039 = vmatmul.bf16.vlgmr.msrb.gmra.mxu2 %v13075_v4  ;;  %v8691_v4 = vld [vmem:[%s13988_s9 + $0x78] sm:$0xf0]  ;;  %5269 = vmatpush.bf16.msrb.mxu3 %v8634_v25  ;;  %v9756_v25 = vld [vmem:[%s13988_s9 + $0xb4] sm:$0xf0] }
 0x4c0   : > { %v8694_v30 = vor.u32 %v9747_v36, %v8691_v4  ;;  %v8853_v36 = vld [vmem:[%s13988_s9 + $0x178] sm:$0xf0]  ;;  %v8852_v4 = vor.u32 %v9780_v16, %v8851_v17  ;;  %v8722_v33 = vor.u32 %v9756_v25, %v8721_v0  ;;  %v9795_v0 = vld [vmem:[%s13988_s9 + $0x1f4] sm:$0xf] }
 0x4c1   : > { %v8856_v42 = vor.u32 %v9779_v34, %v8853_v36  ;;  %v8821_v16 = vld [vmem:[%s13988_s9 + $0x138] sm:$0xf0] }
 0x4c2   : > { %5288 = vmatpush.bf16.msra.mxu2 %v8694_v30  ;;  %v8917_v25 = vld [vmem:[%s13988_s9 + $0x1f8] sm:$0x10] }
 0x4c3   : > { %5535 = vmatpush.bf16.msra.mxu3 %v8852_v4  ;;  %v9754_v4 = vld [vmem:[%s13988_s9 + $0xa4] sm:$0xf0] }
 0x4c5   : > { %v4488_v28 = vpop.f32.mrf.mxu1 }
 0x4c6   : > { %5289 = vmatpush.bf16.msra.mxu2 %v8686_v53  ;;  %v8758_v28 = vor.u32 %v9763_v11, %v8755_v20  ;;  %v9772_v11 = vld [vmem:[%s13988_s9 + $0x134] sm:$0xf0]  ;;  %v8726_v20 = vor.u32 %v9755_v48, %v8723_v55 }
 0x4c7   : > { %5536 = vmatpush.bf16.msra.mxu3 %v8844_v44  ;;  %v8705_v44 = vld [vmem:[%s13988_s9 + $0x90] sm:$0xf] }
 0x4c8   : > { %v5260_v30 = vsel %vm3945_vm9, %v8758_v28, 0  ;;  %v9771_v28 = vld [vmem:[%s13988_s9 + $0x134] sm:$0xf] }
 0x4c9   : > { %5301 = vmatpush.bf16.msrb.mxu0 %v5260_v30  ;;  %v8824_v36 = vor.u32 %v9771_v28, %v8821_v16  ;;  %v8909_v16 = vld [vmem:[%s13988_s9 + $0x1e8] sm:$0xf0] }
 0x4ca   : > { %5290 = vmatpush.bf16.msra.mxu2 %v8678_v15  ;;  %v9777_v15 = vld [vmem:[%s13988_s9 + $0x164] sm:$0xf] }
 0x4cb   : > { %v8848_v24 = vor.u32 %v9777_v15, %v8845_v21  ;;  %5537 = vmatpush.bf16.msra.mxu3 %v8836_v8  ;;  %v9752_v15 = vld [vmem:[%s13988_s9 + $0x94] sm:$0xf0]  ;;  %v9751_v21 = vld [vmem:[%s13988_s9 + $0x94] sm:$0xf] }
 0x4cd   : > { %v13258_v47 = vpop.f32.mrf.mxu1  ;;  %5302 = vmatpush.bf16.msrb.mxu0 %v8750_v43 }
 0x4ce   : > { %5291 = vmatpush.bf16.msra.mxu2 %v8670_v57  ;;  %v8738_v57 = vor.u32 %v9760_v6, %v8737_v26  ;;  %v8706_v6 = vor.u32 %v9752_v15, %v8705_v44  ;;  %v9788_v44 = vld [vmem:[%s13988_s9 + $0x1b4] sm:$0xf0] }
 0x4cf   : > { %5538 = vmatpush.bf16.msra.mxu3 %v8828_v13  ;;  %v9796_v13 = vld [vmem:[%s13988_s9 + $0x1f4] sm:$0x10] }
 0x4d2   : > { %5292 = vmatpush.bf16.msra.mxu2 %v8662_v3  ;;  %v8837_v3 = vld [vmem:[%s13988_s9 + $0x158] sm:$0xf0] }
 0x4d3   : > { %v8840_v45 = vor.u32 %v9775_v14, %v8837_v3  ;;  %v8697_v3 = vld [vmem:[%s13988_s9 + $0x80] sm:$0xf] }
 0x4d5   : > { %v4540_v59 = vpop.f32.mrf.mxu1 }
 0x4d6   : > { %5293 = vmatpush.bf16.msra.mxu2 %v8654_v7  ;;  %v8746_v59 = vor.u32 %v9762_v54, %v8745_v58  ;;  %v9757_v7 = vld [vmem:[%s13988_s9 + $0xc4] sm:$0xf]  ;;  %v8714_v58 = vor.u32 %v9754_v4, %v8713_v18  ;;  %v8715_v54 = vld [vmem:[%s13988_s9 + $0xa8] sm:$0xf0]  ;;  %v8899_v18 = vld [vmem:[%s13988_s9 + $0x1d0] sm:$0xf] }
 0x4d7   : > { %v9792_v4 = vld [vmem:[%s13988_s9 + $0x1d4] sm:$0xf0] }
 0x4d8   : > { %v13293_v37 = vpop.f32.mrf.mxu0  ;;  %5276 = vmatpush.bf16.msrb.mxu1 %v8746_v59 }
 0x4da   : > { %5294 = vmatpush.bf16.msra.mxu2 %v8646_v46  ;;  %v9773_v46 = vld [vmem:[%s13988_s9 + $0x144] sm:$0xf] }
 0x4db   : > { %v8832_v19 = vor.u32 %v9773_v46, %v8829_v12  ;;  %v9765_v46 = vld [vmem:[%s13988_s9 + $0x104] sm:$0xf] }
 0x4dc   : > { %5277 = vmatpush.bf16.msrb.mxu1 %v8738_v57  ;;  %v8803_v57 = vld [vmem:[%s13988_s9 + $0x110] sm:$0xf] }
 0x4dd   : > { %v13310_v39 = vpop.f32.mrf.mxu1 }
 0x4de   : > { %5295 = vmatpush.bf16.msra.mxu2 %v8638_v22  ;;  %v8819_v22 = vld [vmem:[%s13988_s9 + $0x130] sm:$0xf] }
 0x4df   : > { %v8820_v17 = vor.u32 %v9772_v11, %v8819_v22  ;;  %v8907_v22 = vld [vmem:[%s13988_s9 + $0x1e0] sm:$0xf] }
 0x4e0   : > { %v4514_v60 = vpop.f32.mrf.mxu0  ;;  %5278 = vmatpush.bf16.msrb.mxu1 %v8730_v52  ;;  %v9766_v52 = vld [vmem:[%s13988_s9 + $0x104] sm:$0xf0] }
 0x4e1   : > { %v8742_v60 = vor.u32 %v9759_v10, %v8739_v31  ;;  %5539 = vmatpush.bf16.msra.mxu3 %v8820_v17  ;;  %v8707_v10 = vld [vmem:[%s13988_s9 + $0x98] sm:$0xf0]  ;;  %v9768_v31 = vld [vmem:[%s13988_s9 + $0x114] sm:$0xf0]  ;;  %v9793_v17 = vld [vmem:[%s13988_s9 + $0x1e4] sm:$0xf] }
 0x4e2   : > { %5561 = vmatpush.bf16.msrb.mxu2 %v8856_v42  ;;  %v9753_v42 = vld [vmem:[%s13988_s9 + $0xa4] sm:$0xf]  ;;  %v8710_v50 = vor.u32 %v9751_v21, %v8707_v10  ;;  %v8804_v51 = vor.u32 %v9768_v31, %v8803_v57  ;;  %v8875_v10 = vld [vmem:[%s13988_s9 + $0x1a0] sm:$0xf]  ;;  %v9786_v57 = vld [vmem:[%s13988_s9 + $0x1a4] sm:$0xf0] }
 0x4e3   : > { %5303 = vmatpush.bf16.msrb.mxu0 %v8742_v60  ;;  %v8718_v5 = vor.u32 %v9753_v42, %v8715_v54  ;;  %v8805_v60 = vld [vmem:[%s13988_s9 + $0x118] sm:$0xf0]  ;;  %v9791_v42 = vld [vmem:[%s13988_s9 + $0x1d4] sm:$0xf]  ;;  %v9785_v31 = vld [vmem:[%s13988_s9 + $0x1a4] sm:$0xf] }
 0x4e4   : > { %5279 = vmatpush.bf16.msrb.mxu1 %v8722_v33  ;;  %v8920_v33 = vor.u32 %v9795_v0, %v8917_v25  ;;  %v8861_v0 = vld [vmem:[%s13988_s9 + $0x188] sm:$0xf0] }
 0x4e5   : > { %v13336_v63 = vpop.f32.mrf.mxu3  ;;  %v4977_v35 = vpop.f32.mrf.mxu1 }
 0x4e6   : > { %5562 = vmatpush.bf16.msrb.mxu2 %v8848_v24  ;;  %v5533_v11 = vsel %vm3945_vm9, %v8920_v33, 0 }
 0x4e8   : > { %v13347_v40 = vpop.f32.mrf.mxu0  ;;  %5280 = vmatpush.bf16.msrb.mxu1 %v8714_v58  ;;  %v8900_v58 = vor.u32 %v9792_v4, %v8899_v18  ;;  %v9808_v4 = vld [vmem:[%s13988_s9 + $0x254] sm:$0xf0] }
 0x4ea   : > { %5563 = vmatpush.bf16.msrb.mxu2 %v8840_v45  ;;  %v9749_v45 = vld [vmem:[%s13988_s9 + $0x84] sm:$0xf] }
 0x4eb   : > { %v8702_v23 = vor.u32 %v9749_v45, %v8699_v61  ;;  %v9783_v45 = vld [vmem:[%s13988_s9 + $0x194] sm:$0xf] }
 0x4ec   : > { %5281 = vmatpush.bf16.msrb.mxu1 %v8706_v6 }
 0x4ed   : > { %v4475_v38 = vpop.f32.mrf.mxu3 }
 0x4ee   : > { %5564 = vmatpush.bf16.msrb.mxu2 %v8832_v19  ;;  %v4487_v38 = vadd.f32 %v13256_v27, %v13336_v63  ;;  %v9769_v27 = vld [vmem:[%s13988_s9 + $0x124] sm:$0xf]  ;;  %v8813_v63 = vld [vmem:[%s13988_s9 + $0x128] sm:$0xf0] }
 0x4ef   : > { %v8816_v43 = vor.u32 %v9769_v27, %v8813_v63  ;;  %v8797_v19 = vld [vmem:[%s13988_s9 + $0x108] sm:$0xf0] }
 0x4f0   : > { %v4566_v53 = vpop.f32.mrf.mxu0  ;;  %v8800_v48 = vor.u32 %v9765_v46, %v8797_v19  ;;  %v8859_v46 = vld [vmem:[%s13988_s9 + $0x180] sm:$0xf] }
 0x4f1   : > { %v9770_v53 = vld [vmem:[%s13988_s9 + $0x124] sm:$0xf0] }
 0x4f2   : > { %5565 = vmatpush.bf16.msrb.mxu2 %v8824_v36  ;;  %v8812_v32 = vor.u32 %v9770_v53, %v8811_v62  ;;  %v8912_v36 = vor.u32 %v9793_v17, %v8909_v16  ;;  %v8891_v53 = vld [vmem:[%s13988_s9 + $0x1c0] sm:$0xf] }
 0x4f4   : > { %5540 = vmatpush.bf16.msra.mxu3 %v8812_v32 }
 0x4f5   : > { %v4525_v41 = vpop.f32.mrf.mxu3 }
 0x4f6   : > { %v13439_v1 = vadd.f32 %v13258_v47, %v4525_v41  ;;  %v8731_v47 = vld [vmem:[%s13988_s9 + $0xc8] sm:$0xf0]  ;;  %5566 = vmatpush.bf16.msrb.mxu2 %v8816_v43  ;;  %v9750_v41 = vld [vmem:[%s13988_s9 + $0x84] sm:$0xf0]  ;;  %v8883_v43 = vld [vmem:[%s13988_s9 + $0x1b0] sm:$0xf] }
 0x4f7   : > { %v8734_v2 = vor.u32 %v9757_v7, %v8731_v47  ;;  %v8698_v9 = vor.u32 %v9750_v41, %v8697_v3  ;;  %v8795_v7 = vld [vmem:[%s13988_s9 + $0x100] sm:$0xf]  ;;  %v8884_v21 = vor.u32 %v9788_v44, %v8883_v43  ;;  %v8867_v3 = vld [vmem:[%s13988_s9 + $0x190] sm:$0xf]  ;;  %v9784_v41 = vld [vmem:[%s13988_s9 + $0x194] sm:$0xf0] }
 0x4f8   : > { %v13450_v35 = vpop.f32.mrf.mxu0  ;;  %5541 = vmatpush.bf16.msra.mxu3 %v8804_v51  ;;  %v8796_v29 = vor.u32 %v9766_v52, %v8795_v7  ;;  %v8876_v51 = vor.u32 %v9786_v57, %v8875_v10  ;;  %v8868_v61 = vor.u32 %v9784_v41, %v8867_v3  ;;  %v8869_v7 = vld [vmem:[%s13988_s9 + $0x198] sm:$0xf0]  ;;  %v9013_v52 = vld [vmem:[%s13988_s9 + $0x270] sm:$0xf]  ;;  %v9804_v43 = vld [vmem:[%s13988_s9 + $0x234] sm:$0xf0] }
 0x4f9   : > { %5304 = vmatpush.bf16.msrb.mxu0 %v8734_v2  ;;  %v8915_v2 = vld [vmem:[%s13988_s9 + $0x1f0] sm:$0xf]  ;;  %5282 = vmatpush.bf16.msrb.mxu1 %v8698_v9  ;;  %v8973_v10 = vld [vmem:[%s13988_s9 + $0x220] sm:$0xf]  ;;  %v9800_v3 = vld [vmem:[%s13988_s9 + $0x214] sm:$0xf0] }
 0x4fa   : > { %v8916_v12 = vor.u32 %v9796_v13, %v8915_v2  ;;  %v9015_v13 = vld [vmem:[%s13988_s9 + $0x278] sm:$0xf0]  ;;  %v9799_v41 = vld [vmem:[%s13988_s9 + $0x214] sm:$0xf] }
 0x4fc   : > { %5542 = vmatpush.bf16.msra.mxu3 %v8796_v29  ;;  %v5530_v55 = vsel %vm3945_vm9, %v8916_v12, 0  ;;  %v9782_v12 = vld [vmem:[%s13988_s9 + $0x184] sm:$0xf0] }
 0x4fd   : > { %v13476_v56 = vpop.f32.mrf.mxu1  ;;  %v4527_v34 = vpop.f32.mrf.mxu3  ;;  %5305 = vmatpush.bf16.msrb.mxu0 %v8726_v20  ;;  %5548 = vmatpush.bf16.msra.mxu1 %v5530_v55  ;;  %v9794_v20 = vld [vmem:[%s13988_s9 + $0x1e4] sm:$0xf0]  ;;  %v8860_v19 = vor.u32 %v9782_v12, %v8859_v46  ;;  %v9005_v55 = vld [vmem:[%s13988_s9 + $0x260] sm:$0xf]  ;;  %v9797_v12 = vld [vmem:[%s13988_s9 + $0x204] sm:$0xf] }
 0x4fe   : > { %v8908_v28 = vor.u32 %v9794_v20, %v8907_v22  ;;  %v9809_v20 = vld [vmem:[%s13988_s9 + $0x264] sm:$0xf] }
 0x500   : > { %v5003_v30 = vpop.f32.mrf.mxu0 }
 0x501   : > { %v4499_v59 = vpop.f32.mrf.mxu2  ;;  %5306 = vmatpush.bf16.msrb.mxu0 %v8718_v5  ;;  %5549 = vmatpush.bf16.msra.mxu1 %v8908_v28  ;;  %v9789_v5 = vld [vmem:[%s13988_s9 + $0x1c4] sm:$0xf] }
 0x502   : > { %v4500_v49 = vadd.f32 %v4499_v59, %v4487_v38  ;;  %v8901_v38 = vld [vmem:[%s13988_s9 + $0x1d8] sm:$0xf0]  ;;  %v9790_v59 = vld [vmem:[%s13988_s9 + $0x1c4] sm:$0xf0] }
 0x503   : > { %v8904_v62 = vor.u32 %v9791_v42, %v8901_v38  ;;  %v8892_v63 = vor.u32 %v9790_v59, %v8891_v53  ;;  %v9807_v42 = vld [vmem:[%s13988_s9 + $0x254] sm:$0xf]  ;;  %v8999_v38 = vld [vmem:[%s13988_s9 + $0x258] sm:$0xf0]  ;;  %v9805_v53 = vld [vmem:[%s13988_s9 + $0x244] sm:$0xf] }
 0x504   : > { %v13529_v24 = vadd.f32 %v13293_v37, %v4500_v49  ;;  %v9767_v37 = vld [vmem:[%s13988_s9 + $0x114] sm:$0xf]  ;;  %v8991_v59 = vld [vmem:[%s13988_s9 + $0x248] sm:$0xf0] }
 0x505   : > { %v5029_v26 = vpop.f32.mrf.mxu1  ;;  %v8808_v8 = vor.u32 %v9767_v37, %v8805_v60  ;;  %v13546_v14 = vpop.f32.mrf.mxu3  ;;  %5307 = vmatpush.bf16.msrb.mxu0 %v8710_v50  ;;  %5550 = vmatpush.bf16.msra.mxu1 %v8900_v58  ;;  %v8877_v37 = vld [vmem:[%s13988_s9 + $0x1a8] sm:$0xf0]  ;;  %v9002_v58 = vor.u32 %v9807_v42, %v8999_v38  ;;  %v9063_v42 = vld [vmem:[%s13988_s9 + $0x2d8] sm:$0xf0] }
 0x506   : > { %v8885_v26 = vld [vmem:[%s13988_s9 + $0x1b8] sm:$0xf0]  ;;  %v8880_v60 = vor.u32 %v9785_v31, %v8877_v37  ;;  %v9802_v31 = vld [vmem:[%s13988_s9 + $0x224] sm:$0xf0] }
 0x507   : > { %5567 = vmatpush.bf16.msrb.mxu2 %v8808_v8  ;;  %v4976_v8 = vadd.f32 %v13310_v39, %v13546_v14  ;;  %v8872_v14 = vor.u32 %v9783_v45, %v8869_v7  ;;  %v8974_v37 = vor.u32 %v9802_v31, %v8973_v10  ;;  %v8967_v45 = vld [vmem:[%s13988_s9 + $0x218] sm:$0xf0]  ;;  %v9077_v7 = vld [vmem:[%s13988_s9 + $0x2f0] sm:$0xf]  ;;  %v9818_v10 = vld [vmem:[%s13988_s9 + $0x2a4] sm:$0xf0] }
 0x508   : > { %v9039_v31 = vld [vmem:[%s13988_s9 + $0x2a8] sm:$0xf0] }
 0x509   : > { %v4501_v47 = vpop.f32.mrf.mxu2  ;;  %5308 = vmatpush.bf16.msrb.mxu0 %v8702_v23  ;;  %5551 = vmatpush.bf16.msra.mxu1 %v8892_v63  ;;  %v9811_v23 = vld [vmem:[%s13988_s9 + $0x274] sm:$0xf]  ;;  %v8994_v63 = vor.u32 %v9805_v53, %v8991_v59  ;;  %v9055_v53 = vld [vmem:[%s13988_s9 + $0x2c8] sm:$0xf0] }
 0x50a   : > { %v9812_v47 = vld [vmem:[%s13988_s9 + $0x274] sm:$0xf0]  ;;  %v9018_v33 = vor.u32 %v9811_v23, %v9015_v13  ;;  %v9827_v23 = vld [vmem:[%s13988_s9 + $0x2f4] sm:$0xf]  ;;  %v9798_v13 = vld [vmem:[%s13988_s9 + $0x204] sm:$0xf0] }
 0x50b   : > { %5568 = vmatpush.bf16.msrb.mxu2 %v8800_v48  ;;  %v9014_v48 = vor.u32 %v9812_v47, %v9013_v52  ;;  %v8970_v47 = vor.u32 %v9799_v41, %v8967_v45 }
 0x50d   : > { %5574 = vmatpush.bf16.msra.mxu0 %v5533_v11  ;;  %v4964_v34 = vpop.f32.mrf.mxu3  ;;  %5552 = vmatpush.bf16.msra.mxu1 %v8884_v21  ;;  %v9810_v11 = vld [vmem:[%s13988_s9 + $0x264] sm:$0xf0] }
 0x50e   : > { %v9006_v16 = vor.u32 %v9810_v11, %v9005_v55  ;;  %v9069_v55 = vld [vmem:[%s13988_s9 + $0x2e0] sm:$0xf]  ;;  %v9826_v11 = vld [vmem:[%s13988_s9 + $0x2e4] sm:$0xf0] }
 0x511   : > { %v4551_v30 = vpop.f32.mrf.mxu2  ;;  %5575 = vmatpush.bf16.msra.mxu0 %v8912_v36  ;;  %5553 = vmatpush.bf16.msra.mxu1 %v8876_v51  ;;  %v8997_v36 = vld [vmem:[%s13988_s9 + $0x250] sm:$0xf]  ;;  %v8975_v51 = vld [vmem:[%s13988_s9 + $0x228] sm:$0xf0] }
 0x512   : > { %v4552_v54 = vadd.f32 %v4551_v30, %v13439_v1  ;;  %v8893_v1 = vld [vmem:[%s13988_s9 + $0x1c8] sm:$0xf0]  ;;  %v8998_v30 = vor.u32 %v9808_v4, %v8997_v36  ;;  %v9061_v36 = vld [vmem:[%s13988_s9 + $0x2d0] sm:$0xf]  ;;  %v9823_v4 = vld [vmem:[%s13988_s9 + $0x2d4] sm:$0xf] }
 0x513   : > { %v8896_v49 = vor.u32 %v9789_v5, %v8893_v1 }
 0x514   : > { %v13621_v32 = vadd.f32 %v13347_v40, %v4552_v54  ;;  %v9787_v40 = vld [vmem:[%s13988_s9 + $0x1b4] sm:$0xf]  ;;  %v8989_v54 = vld [vmem:[%s13988_s9 + $0x240] sm:$0xf] }
 0x515   : > { %5576 = vmatpush.bf16.msra.mxu0 %v8904_v62  ;;  %v8888_v6 = vor.u32 %v9787_v40, %v8885_v26  ;;  %5554 = vmatpush.bf16.msra.mxu1 %v8868_v61  ;;  %v9806_v62 = vld [vmem:[%s13988_s9 + $0x244] sm:$0xf0]  ;;  %v9803_v40 = vld [vmem:[%s13988_s9 + $0x234] sm:$0xf] }
 0x516   : > { %v8990_v1 = vor.u32 %v9806_v62, %v8989_v54  ;;  %v9822_v54 = vld [vmem:[%s13988_s9 + $0x2c4] sm:$0xf0]  ;;  %v9821_v62 = vld [vmem:[%s13988_s9 + $0x2c4] sm:$0xf] }
 0x518   : > { %v13626_v27 = vpop.f32.mrf.mxu0 }
 0x519   : > { %v4553_v15 = vpop.f32.mrf.mxu2  ;;  %5577 = vmatpush.bf16.msra.mxu0 %v8896_v49  ;;  %5555 = vmatpush.bf16.msra.mxu1 %v8860_v19  ;;  %v8981_v49 = vld [vmem:[%s13988_s9 + $0x230] sm:$0xf]  ;;  %v8959_v19 = vld [vmem:[%s13988_s9 + $0x208] sm:$0xf0] }
 0x51a   : > { %v8983_v15 = vld [vmem:[%s13988_s9 + $0x238] sm:$0xf0]  ;;  %v8982_v26 = vor.u32 %v9804_v43, %v8981_v49  ;;  %v9820_v49 = vld [vmem:[%s13988_s9 + $0x2b4] sm:$0xf0]  ;;  %v9819_v43 = vld [vmem:[%s13988_s9 + $0x2b4] sm:$0xf] }
 0x51d   : > { %5578 = vmatpush.bf16.msra.mxu0 %v8888_v6  ;;  %v8986_v6 = vor.u32 %v9803_v40, %v8983_v15 }
 0x520   : > { %v5055_v50 = vpop.f32.mrf.mxu0 }
 0x521   : > { %5579 = vmatpush.bf16.msra.mxu0 %v8880_v60  ;;  %v9801_v50 = vld [vmem:[%s13988_s9 + $0x224] sm:$0xf] }
 0x522   : > { %v4988_v9 = vpop.f32.mrf.mxu2  ;;  %v8978_v60 = vor.u32 %v9801_v50, %v8975_v51 }
 0x523   : > { %v4989_v39 = vadd.f32 %v4988_v9, %v4976_v8  ;;  %v8965_v8 = vld [vmem:[%s13988_s9 + $0x210] sm:$0xf] }
 0x524   : > { %v8966_v52 = vor.u32 %v9800_v3, %v8965_v8  ;;  %v9815_v8 = vld [vmem:[%s13988_s9 + $0x294] sm:$0xf]  ;;  %v9031_v3 = vld [vmem:[%s13988_s9 + $0x298] sm:$0xf0] }
 0x525   : > { %v5002_v29 = vadd.f32 %v13450_v35, %v4989_v39  ;;  %v13676_v2 = vpop.f32.mrf.mxu3  ;;  %v9781_v35 = vld [vmem:[%s13988_s9 + $0x184] sm:$0xf]  ;;  %5580 = vmatpush.bf16.msra.mxu0 %v8872_v14  ;;  %v9828_v39 = vld [vmem:[%s13988_s9 + $0x2f4] sm:$0x10]  ;;  %v9034_v45 = vor.u32 %v9815_v8, %v9031_v3  ;;  %v5059_v3 = vld [vmem:[%s13989_s10] sm:$0x3] }
 0x526   : > { %v8864_v17 = vor.u32 %v9781_v35, %v8861_v0  ;;  %v5028_v9 = vadd.f32 %v13476_v56, %v13676_v2  ;;  %v9079_v56 = vld [vmem:[%s13988_s9 + $0x2f8] sm:$0x10]  ;;  %v8957_v2 = vld [vmem:[%s13988_s9 + $0x200] sm:$0xf]  ;;  %v9078_v46 = vor.u32 %v9828_v39, %v9077_v7  ;;  %v9813_v7 = vld [vmem:[%s13988_s9 + $0x284] sm:$0xf] }
 0x527   : > { %v5057_v25 = vmax.f32 %v13529_v24, %v5002_v29  ;;  %v9007_v24 = vld [vmem:[%s13988_s9 + $0x268] sm:$0xf0]  ;;  %v9082_v35 = vor.u32 %v9827_v23, %v9079_v56  ;;  %v8958_v0 = vor.u32 %v9798_v13, %v8957_v2  ;;  %v9848_v2 = vld [vmem:[#allocation5 + $0x98] sm:$0xff]  ;;  %v9861_v8 = vld [vmem:[#allocation5 + $0x100] sm:$0xff] }
 0x528   : > { %v9010_v34 = vor.u32 %v9809_v20, %v9007_v24  ;;  %v9825_v24 = vld [vmem:[%s13988_s9 + $0x2e4] sm:$0xf]  ;;  %v9023_v39 = vld [vmem:[%s13988_s9 + $0x288] sm:$0xf0]  ;;  %v9840_v13 = vld [vmem:[#allocation5 + $0x58] sm:$0xff] }
 0x529   : > { %v13697_v22 = vpack.c.bf16 %v5057_v25, %v5057_v25  ;;  %5581 = vmatpush.bf16.msra.mxu0 %v8864_v17  ;;  %v9071_v17 = vld [vmem:[%s13988_s9 + $0x2e8] sm:$0xf0] }
 0x52a   : > { %v4990_v28 = vpop.f32.mrf.mxu2 }
 0x52b   : > { %5270 = vmatmul.bf16.vlgmr.msrb.gmra.mxu3 %v13697_v22  ;;  %5296 = vmatmul.bf16.vlgmr.msra.gmra.mxu2 %v13697_v22  ;;  %v5357_v5 = vshll.u32 %v13697_v22, 16  ;;  %v5355_v21 = vshrl.u32 %v13697_v22, 16  ;;  %v9070_v28 = vor.u32 %v9826_v11, %v9069_v55  ;;  %v9845_v55 = vld [vmem:[#allocation5 + $0x80] sm:$0xff] }
 0x52c   : > { %5794 = vmatpush.bf16.msrb.mxu3 %v9014_v48  ;;  %5820 = vmatpush.bf16.msra.mxu2 %v9018_v33  ;;  %v5789_v48 = vsel %vm3945_vm9, %v9078_v46, 0  ;;  %v8962_v33 = vor.u32 %v9797_v12, %v8959_v19  ;;  %v9835_v46 = vld [vmem:[#allocation5 + $0x30] sm:$0xff]  ;;  %v9837_v11 = vld [vmem:[#allocation5 + $0x40] sm:$0xff] }
 0x52d   : > { %v5016_v18 = vpop.f32.mrf.mxu3  ;;  %v5359_v44 = vrot.slane %v5357_v5, 1  ;;  %v9847_v12 = vld [vmem:[#allocation5 + $0x90] sm:$0xff] }
 0x52e   : > { %v9824_v18 = vld [vmem:[%s13988_s9 + $0x2d4] sm:$0xf0]  ;;  %v9839_v19 = vld [vmem:[#allocation5 + $0x50] sm:$0xff] }
 0x52f   : > { %v5360_v57 = vor.u32 %v5359_v44, %v5355_v21  ;;  %v9047_v44 = vld [vmem:[%s13988_s9 + $0x2b8] sm:$0xf0] }
 0x530   : > { %5795 = vmatpush.bf16.msrb.mxu3 %v9006_v16  ;;  %5821 = vmatpush.bf16.msra.mxu2 %v9010_v34  ;;  %v5624_v16 = vrot.slane %v13697_v22, 1  ;;  %v9074_v34 = vor.u32 %v9825_v24, %v9071_v17  ;;  %v9062_v22 = vor.u32 %v9824_v18, %v9061_v36  ;;  %v9859_v36 = vld [vmem:[#allocation5 + $0xf0] sm:$0xff] }
 0x531   : > { %v9843_v18 = vld [vmem:[#allocation5 + $0x70] sm:$0xff] }
 0x534   : > { %5796 = vmatpush.bf16.msrb.mxu3 %v8998_v30  ;;  %5822 = vmatpush.bf16.msra.mxu2 %v9002_v58  ;;  %v9066_v30 = vor.u32 %v9823_v4, %v9063_v42  ;;  %v9053_v58 = vld [vmem:[%s13988_s9 + $0x2c0] sm:$0xf]  ;;  %v9851_v4 = vld [vmem:[#allocation5 + $0xb0] sm:$0xff] }
 0x535   : > { %v9054_v59 = vor.u32 %v9822_v54, %v9053_v58  ;;  %v9830_v58 = vld [vmem:[#allocation5 + $0x8] sm:$0xff] }
 0x536   : > { %v9858_v54 = vld [vmem:[#allocation5 + $0xe8] sm:$0xff] }
 0x538   : > { %5797 = vmatpush.bf16.msrb.mxu3 %v8990_v1  ;;  %5823 = vmatpush.bf16.msra.mxu2 %v8994_v63  ;;  %v9058_v1 = vor.u32 %v9821_v62, %v9055_v53  ;;  %v9045_v63 = vld [vmem:[%s13988_s9 + $0x2b0] sm:$0xf]  ;;  %v9842_v62 = vld [vmem:[#allocation5 + $0x68] sm:$0xff] }
 0x539   : > { %v9046_v15 = vor.u32 %v9820_v49, %v9045_v63  ;;  %v9850_v53 = vld [vmem:[#allocation5 + $0xa8] sm:$0xff]  ;;  %v9849_v63 = vld [vmem:[#allocation5 + $0xa0] sm:$0xff] }
 0x53b   : > { %5543 = vmatmul.bf16.vlgmr.msra.gmra.mxu3 %v5360_v57  ;;  %5569 = vmatmul.bf16.vlgmr.msrb.gmra.mxu2 %v5360_v57  ;;  %v9817_v57 = vld [vmem:[%s13988_s9 + $0x2a4] sm:$0xf] }
 0x53c   : > { %5798 = vmatpush.bf16.msrb.mxu3 %v8982_v26  ;;  %5824 = vmatpush.bf16.msra.mxu2 %v8986_v6  ;;  %v9050_v26 = vor.u32 %v9819_v43, %v9047_v44  ;;  %v9037_v6 = vld [vmem:[%s13988_s9 + $0x2a0] sm:$0xf]  ;;  %v9042_v51 = vor.u32 %v9817_v57, %v9039_v31  ;;  %v9856_v44 = vld [vmem:[#allocation5 + $0xd8] sm:$0xff] }
 0x53d   : > { %v9038_v50 = vor.u32 %v9818_v10, %v9037_v6  ;;  %v9863_v6 = vld [vmem:[#allocation5 + $0x110] sm:$0xff]  ;;  %v9854_v10 = vld [vmem:[#allocation5 + $0xc8] sm:$0xff] }
 0x540   : > { %5799 = vmatpush.bf16.msrb.mxu3 %v8974_v37  ;;  %5825 = vmatpush.bf16.msra.mxu2 %v8978_v60  ;;  %v9029_v37 = vld [vmem:[%s13988_s9 + $0x290] sm:$0xf]  ;;  %v9816_v60 = vld [vmem:[%s13988_s9 + $0x294] sm:$0xf0] }
 0x541   : > { %v9030_v41 = vor.u32 %v9816_v60, %v9029_v37  ;;  %v9853_v60 = vld [vmem:[#allocation5 + $0xc0] sm:$0xff] }
 0x542   : > { %v5040_v61 = vpop.f32.mrf.mxu2 }
 0x543   : > { %v5041_v14 = vadd.f32 %v5040_v61, %v5028_v9  ;;  %v9021_v9 = vld [vmem:[%s13988_s9 + $0x280] sm:$0xf]  ;;  %v9814_v61 = vld [vmem:[%s13988_s9 + $0x284] sm:$0xf0] }
 0x544   : > { %5800 = vmatpush.bf16.msrb.mxu3 %v8966_v52  ;;  %5826 = vmatpush.bf16.msra.mxu2 %v8970_v47  ;;  %v9026_v52 = vor.u32 %v9813_v7, %v9023_v39  ;;  %v5316_v39 = vperm.slane %v5059_v3, 1 }
 0x545   : > { %v5054_v29 = vadd.f32 %v13626_v27, %v5041_v14  ;;  %v9022_v14 = vor.u32 %v9814_v61, %v9021_v9  ;;  %v5315_v61 = vperm.slane %v5059_v3, 0 }
 0x547   : > { %v5058_v27 = vmax.f32 %v13621_v32, %v5054_v29  ;;  %v5792_v32 = vsel %vm3945_vm9, %v9082_v35, 0  ;;  %v9836_v29 = vld [vmem:[#allocation5 + $0x38] sm:$0xff] }
 0x548   : > { %5801 = vmatpush.bf16.msrb.mxu3 %v8958_v0  ;;  %5827 = vmatpush.bf16.msra.mxu2 %v8962_v33  ;;  %v9834_v0 = vld [vmem:[#allocation5 + $0x28] sm:$0xff]  ;;  %v9833_v33 = vld [vmem:[#allocation5 + $0x20] sm:$0xff] }
 0x549   : > { %v13800_v25 = vpack.c.bf16 %v5058_v27, %v5058_v27 }
 0x54a   : > { %v5042_v20 = vpop.f32.mrf.mxu2 }
 0x54b   : > { %8759 = vmatmul.msk.bf16.vlgmr.msrb.gmra.mxu1 %vm5252_vm13, %v13800_v25  ;;  %8760 = vmatmul.msk.bf16.vlgmr.msrb.gmra.mxu0 %vm5252_vm13, %v13800_v25  ;;  %v5363_v38 = vshll.u32 %v13800_v25, 16  ;;  %v5361_v40 = vshrl.u32 %v13800_v25, 16  ;;  %v5625_v47 = vrot.slane %v13800_v25, 1  ;;  %v9846_v25 = vld [vmem:[#allocation5 + $0x88] sm:$0xff]  ;;  %v9832_v20 = vld [vmem:[#allocation5 + $0x18] sm:$0xff] }
 0x54c   : > { %5807 = vmatpush.bf16.msrb.mxu1 %v5789_v48  ;;  %5833 = vmatpush.bf16.msrb.mxu0 %v5792_v32  ;;  %v9838_v48 = vld [vmem:[#allocation5 + $0x48] sm:$0xff]  ;;  %v9860_v32 = vld [vmem:[#allocation5 + $0xf8] sm:$0xff] }
 0x54d   : > { %5802 = vmatmul.bf16.vlgmr.msrb.gmra.mxu3 %v5624_v16  ;;  %5828 = vmatmul.bf16.vlgmr.msra.gmra.mxu2 %v5624_v16  ;;  %v5365_v5 = vrot.slane %v5363_v38, 1  ;;  %v9852_v16 = vld [vmem:[#allocation5 + $0xb8] sm:$0xff] }
 0x54e   : > { %5953 = vmatpush.bf16.msra.mxu3 %v9836_v29  ;;  %6086 = vmatpush.bf16.msrb.mxu2 %v9848_v2 }
 0x54f   : > { %v5366_v21 = vor.u32 %v5365_v5, %v5361_v40  ;;  %v9857_v5 = vld [vmem:[#allocation5 + $0xe0] sm:$0xff] }
 0x550   : > { %5808 = vmatpush.bf16.msrb.mxu1 %v9070_v28  ;;  %5834 = vmatpush.bf16.msrb.mxu0 %v9074_v34  ;;  %v9844_v28 = vld [vmem:[#allocation5 + $0x78] sm:$0xff]  ;;  %v9831_v34 = vld [vmem:[#allocation5 + $0x10] sm:$0xff] }
 0x552   : > { %5954 = vmatpush.bf16.msra.mxu3 %v9835_v46  ;;  %6087 = vmatpush.bf16.msrb.mxu2 %v9847_v12 }
 0x554   : > { %5809 = vmatpush.bf16.msrb.mxu1 %v9062_v22  ;;  %5835 = vmatpush.bf16.msrb.mxu0 %v9066_v30 }
 0x556   : > { %5955 = vmatpush.bf16.msra.mxu3 %v9834_v0  ;;  %6088 = vmatpush.bf16.msrb.mxu2 %v9846_v25 }
 0x558   : > { %5810 = vmatpush.bf16.msrb.mxu1 %v9054_v59  ;;  %5836 = vmatpush.bf16.msrb.mxu0 %v9058_v1  ;;  %v9829_v59 = vld [vmem:[#allocation5] sm:$0xff] }
 0x559   : > { %v9841_v1 = vld [vmem:[#allocation5 + $0x60] sm:$0xff] }
 0x55a   : > { %5956 = vmatpush.bf16.msra.mxu3 %v9833_v33  ;;  %6089 = vmatpush.bf16.msrb.mxu2 %v9845_v55 }
 0x55b   : > { %8921 = vmatmul.msk.bf16.vlgmr.msra.gmra.mxu1 %vm5252_vm13, %v5366_v21  ;;  %8922 = vmatmul.msk.bf16.vlgmr.msra.gmra.mxu0 %vm5252_vm13, %v5366_v21  ;;  %v9864_v21 = vld [vmem:[#allocation5 + $0x118] sm:$0xff] }
 0x55c   : > { %5811 = vmatpush.bf16.msrb.mxu1 %v9046_v15  ;;  %5837 = vmatpush.bf16.msrb.mxu0 %v9050_v26  ;;  %v9855_v26 = vld [vmem:[#allocation5 + $0xd0] sm:$0xff] }
 0x55e   : > { %5957 = vmatpush.bf16.msra.mxu3 %v9832_v20  ;;  %6090 = vmatpush.bf16.msrb.mxu2 %v9844_v28  ;;  %v9871_v28 = vld [vmem:[%s13992_s13 + $0x30] sm:$0xff] }
 0x560   : > { %5812 = vmatpush.bf16.msrb.mxu1 %v9038_v50  ;;  %5838 = vmatpush.bf16.msrb.mxu0 %v9042_v51  ;;  %v9862_v50 = vld [vmem:[#allocation5 + $0x108] sm:$0xff] }
 0x562   : > { %5958 = vmatpush.bf16.msra.mxu3 %v9831_v34  ;;  %6091 = vmatpush.bf16.msrb.mxu2 %v9843_v18  ;;  %v9869_v34 = vld [vmem:[%s13992_s13 + $0x20] sm:$0xff]  ;;  %v9867_v18 = vld [vmem:[%s13992_s13 + $0x10] sm:$0xff] }
 0x564   : > { %5813 = vmatpush.bf16.msrb.mxu1 %v9030_v41  ;;  %5839 = vmatpush.bf16.msrb.mxu0 %v9034_v45 }
 0x566   : > { %5959 = vmatpush.bf16.msra.mxu3 %v9830_v58  ;;  %6092 = vmatpush.bf16.msrb.mxu2 %v9842_v62 }
 0x568   : > { %5814 = vmatpush.bf16.msrb.mxu1 %v9022_v14  ;;  %5840 = vmatpush.bf16.msrb.mxu0 %v9026_v52  ;;  %v9872_v14 = vld [vmem:[%s13992_s13 + $0x38] sm:$0xff] }
 0x56a   : > { %5960 = vmatpush.bf16.msra.mxu3 %v9829_v59  ;;  %6093 = vmatpush.bf16.msrb.mxu2 %v9841_v1  ;;  %v5850_v59 = vld [vmem:[%s13991_s12] sm:$0x1] }
 0x56b   : > { %9083 = vmatmul.msk.bf16.vlgmr.msrb.gmra.mxu1 %vm5252_vm13, %v5625_v47  ;;  %9084 = vmatmul.msk.bf16.vlgmr.msrb.gmra.mxu0 %vm5252_vm13, %v5625_v47 }
 0x56c   : > { %5970 = vmatpush.bf16.msra.mxu1 %v9840_v13  ;;  %6103 = vmatpush.bf16.msra.mxu0 %v9852_v16  ;;  %v9870_v16 = vld [vmem:[%s13992_s13 + $0x28] sm:$0xff] }
 0x56e   : > { %6312 = vmatpush.bf16.msrb.mxu3 %v9872_v14 }
 0x570   : > { %5971 = vmatpush.bf16.msra.mxu1 %v9839_v19  ;;  %6104 = vmatpush.bf16.msra.mxu0 %v9851_v4  ;;  %v9866_v4 = vld [vmem:[%s13992_s13 + $0x8] sm:$0xff] }
 0x572   : > { %6313 = vmatpush.bf16.msrb.mxu3 %v9871_v28 }
 0x574   : > { %5972 = vmatpush.bf16.msra.mxu1 %v9838_v48  ;;  %6105 = vmatpush.bf16.msra.mxu0 %v9850_v53 }
 0x576   : > { %6314 = vmatpush.bf16.msrb.mxu3 %v9870_v16 }
 0x578   : > { %5973 = vmatpush.bf16.msra.mxu1 %v9837_v11  ;;  %6106 = vmatpush.bf16.msra.mxu0 %v9849_v63 }
 0x57a   : > { %6315 = vmatpush.bf16.msrb.mxu3 %v9869_v34 }
 0x57c   : > { %6218 = vmatpush.bf16.msrb.mxu1 %v9860_v32  ;;  %6235 = vmatpush.bf16.msrb.mxu0 %v9864_v21 }
 0x580   : > { %6219 = vmatpush.bf16.msrb.mxu1 %v9859_v36  ;;  %6236 = vmatpush.bf16.msrb.mxu0 %v9863_v6  ;;  %v9868_v36 = vld [vmem:[%s13992_s13 + $0x18] sm:$0xff] }
 0x581   : > { %6316 = vmatpush.bf16.msrb.mxu3 %v9868_v36 }
 0x584   : > { %6220 = vmatpush.bf16.msrb.mxu1 %v9858_v54  ;;  %6237 = vmatpush.bf16.msrb.mxu0 %v9862_v50 }
 0x585   : > { %6317 = vmatpush.bf16.msrb.mxu3 %v9867_v18 }
 0x588   : > { %6221 = vmatpush.bf16.msrb.mxu1 %v9857_v5  ;;  %6238 = vmatpush.bf16.msrb.mxu0 %v9861_v8 }
 0x589   : > { %6318 = vmatpush.bf16.msrb.mxu3 %v9866_v4 }
 0x58c   : > { %6222 = vmatpush.bf16.msrb.mxu1 %v9856_v44 }
 0x590   : > { %6223 = vmatpush.bf16.msrb.mxu1 %v9855_v26 }
 0x594   : > { %6224 = vmatpush.bf16.msrb.mxu1 %v9854_v10 }
 0x598   : > { %6225 = vmatpush.bf16.msrb.mxu1 %v9853_v60 }
 0x5ae   : > { %v13900_v23 = vpop.f32.mrf.mxu3  ;;  %v13902_v56 = vpop.f32.mrf.mxu2 }
 0x5b6   : > { %v5273_v35 = vpop.f32.mrf.mxu3  ;;  %v5299_v27 = vpop.f32.mrf.mxu2 }
 0x5be   : > { %v13904_v24 = vpop.f32.mrf.mxu3  ;;  %v13906_v17 = vpop.f32.mrf.mxu2 }
 0x5c6   : > { %v5546_v38 = vpop.f32.mrf.mxu3  ;;  %v5572_v30 = vpop.f32.mrf.mxu2 }
 0x5c8   : > { %v5284_v42 = vpop.f32.mrf.mxu1  ;;  %v5310_v22 = vpop.f32.mrf.mxu0 }
 0x5c9   : > { %v5285_v9 = vadd.f32 %v5284_v42, %v13900_v23  ;;  %v5311_v7 = vadd.f32 %v5310_v22, %v13902_v56  ;;  %v9865_v42 = vld [vmem:[%s13992_s13] sm:$0xff] }
 0x5ca   : > { %6319 = vmatpush.bf16.msrb.mxu3 %v9865_v42 }
 0x5cb   : > { %v5319_v29 = vadd.f32 %v5315_v61, %v5285_v9  ;;  %v5320_v2 = vadd.f32 %v5316_v39, %v5311_v7 }
 0x5d0   : > { %v5286_v49 = vpop.f32.mrf.mxu1  ;;  %v5312_v43 = vpop.f32.mrf.mxu0 }
 0x5d1   : > { %v5803_v40 = vpop.f32.mrf.mxu3  ;;  %v5829_v15 = vpop.f32.mrf.mxu2 }
 0x5d8   : > { %v5557_v57 = vpop.f32.mrf.mxu1  ;;  %v5583_v31 = vpop.f32.mrf.mxu0 }
 0x5d9   : > { %v5805_v51 = vpop.f32.mrf.mxu3  ;;  %v5831_v37 = vpop.f32.mrf.mxu2  ;;  %v5558_v52 = vadd.f32 %v5557_v57, %v13904_v24  ;;  %v5584_v47 = vadd.f32 %v5583_v31, %v13906_v17  ;;  %v6325_v31 = vlaneseq }
 0x5da   : > { %v6263_v51 = vld [vmem:[%s13993_s14] sm:$0x1] }
 0x5db   : > { %v5587_v46 = vadd.f32 %v5558_v52, %v5319_v29  ;;  %v5588_v23 = vadd.f32 %v5584_v47, %v5320_v2  ;;  %v6326_v50 = vand.u32 127, %v6325_v31 }
 0x5dd   : > { %vm6327_vm15 = vcmp.lt.s32.totalorder %v6326_v50, 47 }
 0x5e0   : > { %v5559_v41 = vpop.f32.mrf.mxu1  ;;  %v5585_v45 = vpop.f32.mrf.mxu0 }
 0x5e8   : > { %v5816_v13 = vpop.f32.mrf.mxu1  ;;  %v5842_v19 = vpop.f32.mrf.mxu0 }
 0x5e9   : > { %v5817_v12 = vadd.f32 %v5816_v13, %v5803_v40  ;;  %v5843_v35 = vadd.f32 %v5842_v19, %v5829_v15 }
 0x5eb   : > { %v5846_v27 = vadd.f32 %v5817_v12, %v5587_v46  ;;  %v5847_v56 = vadd.f32 %v5843_v35, %v5588_v23 }
 0x5ed   : > { %v5848_v0 = vmax.f32 %v5846_v27, 0.0  ;;  %v5849_v25 = vmax.f32 %v5847_v56, 0.0 }
 0x5ef   : > { %v5851_v48 = vpack.c.bf16 %v5848_v0, %v5848_v0  ;;  %v5852_v33 = vpack.c.bf16 %v5849_v25, %v5849_v25 }
 0x5f0   : > { %v5818_v55 = vpop.f32.mrf.mxu1  ;;  %v5844_v20 = vpop.f32.mrf.mxu0 }
 0x5f1   : > { %v6006_v11 = vshrl.u32 %v5851_v48, 16  ;;  %5961 = vmatmul.bf16.vlgmr.msra.gmra.mxu3 %v5851_v48  ;;  %v6008_v32 = vshrl.u32 %v5852_v33, 16  ;;  %9133 = vmatmul.msk.bf16.vlgmr.msra.gmra.mxu1 %vm5949_vm14, %v5852_v33  ;;  %v6140_v24 = vrot.slane %v5851_v48, 1  ;;  %v6141_v17 = vrot.slane %v5852_v33, 1 }
 0x5f3   : > { %6094 = vmatmul.bf16.vlgmr.msrb.gmra.mxu2 %v6006_v11  ;;  %9182 = vmatmul.msk.bf16.vlgmr.msra.gmra.mxu0 %vm5949_vm14, %v6008_v32 }
 0x601   : > { %6226 = vmatmul.bf16.vlgmr.msrb.gmra.mxu1 %v6140_v24 }
 0x603   : > { %9231 = vmatmul.msk.bf16.vlgmr.msrb.gmra.mxu0 %vm5949_vm14, %v6141_v17 }
 0x66e   : > { %v5975_v22 = vpop.f32.mrf.mxu1 }
 0x670   : > { %v6108_v38 = vpop.f32.mrf.mxu0 }
 0x674   : > { %v5962_v30 = vpop.f32.mrf.mxu3 }
 0x675   : > { %v5976_v53 = vadd.f32 %v5975_v22, %v5962_v30 }
 0x676   : > { %v6095_v58 = vpop.f32.mrf.mxu2  ;;  %v5977_v54 = vpop.f32.mrf.mxu1 }
 0x677   : > { %v5979_v1 = vadd.f32 %v5976_v53, %v5850_v59  ;;  %v6109_v63 = vadd.f32 %v6108_v38, %v6095_v58 }
 0x678   : > { %v6110_v62 = vpop.f32.mrf.mxu0 }
 0x679   : > { %v6112_v40 = vadd.f32 %v6109_v63, %v5979_v1 }
 0x67c   : > { %v5964_v5 = vpop.f32.mrf.mxu3 }
 0x67e   : > { %v6097_v49 = vpop.f32.mrf.mxu2  ;;  %v6227_v43 = vpop.f32.mrf.mxu1 }
 0x680   : > { %v6240_v44 = vpop.f32.mrf.mxu0 }
 0x681   : > { %v6241_v15 = vadd.f32 %v6240_v44, %v6227_v43 }
 0x683   : > { %v6244_v21 = vadd.f32 %v6241_v15, %v6112_v40 }
 0x685   : > { %v6245_v26 = vmax.f32 %v6244_v21, 0.0 }
 0x686   : > { %v6229_v6 = vpop.f32.mrf.mxu1 }
 0x687   : > { %v6246_v10 = vpack.c.bf16 %v6245_v26, %v6245_v26 }
 0x688   : > { %v6242_v57 = vpop.f32.mrf.mxu0 }
 0x689   : > { %6320 = vmatmul.bf16.vlgmr.msrb.gmra.mxu3 %v6246_v10 }
 0x70c   : > { %v6321_v37 = vpop.f32.mrf.mxu3 }
 0x70d   : > { %v6322_v60 = vadd.f32 %v6321_v37, %v6263_v51 }
 0x70f   : > { %v6328_v8 = vsel %vm6327_vm15, %v6322_v60, -1e+30 }
 0x710   : > { %v6330_v3 = vsel %vm6329_vm0, %v6328_v8, -inf }
 0x711   : > { %6331 = vmax.xlane.f32.xlu0 %v6330_v3 }
 0x714   : > { %v6323_v41 = vpop.f32.mrf.mxu3 }
 0x784   : > { %v6332_v45 = vpop.xlane.xlu0 %6331 }
 0x785   : > { %v6333_v9 = vsub.f32 %v6328_v8, %v6332_v45 }
 0x787   : > { %v6334_v61 = vmul.f32 1.442695, %v6333_v9 }
 0x789   : > { %9939 = vpow2.f32 %v6334_v61 }
 0x78f   : > { %v9940_v7 = vpop.eup %9939 }
 0x790   : > { %v6336_v39 = vsel %vm6329_vm0, %v9940_v7, 0.0 }
 0x791   : > { %6337 = vadd.xlane.f32.xlu0 %v6336_v39 }
 0x804   : > { %v6338_v14 = vpop.xlane.xlu0 %6337 }
 0x805   : > { %9941 = vlog2.f32 %v6338_v14 }
 0x80b   : > { %v9942_v52 = vpop.eup %9941 }
 0x80c   : > { %v6340_v47 = vmul.f32 0.6931472, %v9942_v52 }
 0x80e   : > { %v6341_v29 = vadd.f32 %v6340_v47, %v6332_v45 }
 0x810   : > { %v6342_v2 = vsub.f32 %v6322_v60, %v6341_v29 }
 0x812   : > { %v6343_v13 = vsel %vm6327_vm15, %v6342_v2, 0.0 }
 0x813   : > { %6344 = vst [vmem:[%s520_s17] sm:$0x1] %v6343_v13 }
 0x814   : > { %10030 = shalt.err (!%p10027_p8)
}
 0x815   : > { %9883 = dma.vmem_to_hbm [thread:$0]  (%p10199_p5), %s6357_s18, 16, %s6359_s1, %s6346_s20  }
 0x816 PF: > { %s14012_s23 = sld [smem:[#allocation13_spill]] }
 0x817   : > { %s14013_s26 = sld [smem:[#allocation11_spill]] }
 0x81c   : > { %p9900_p9 = scmp.ge.s32.totalorder %s14012_s23, 2 }
 0x81d   : > { %s6370_s17 = sand.u32 1, %s14013_s26  }
 0x81e   : > { %p9893_p10 = pnand %p9900_p9, %p10203_p6  ;;  %s6371_s22 = scalar_lea.sflag [#allocation4], %s6370_s17 }
 0x820   : > { %p9894_p11 = pneg %p9893_p10 }
 0x822   : > { %10056 = dma.done.wait (%p9894_p11), %s6371_s22, 16  }
 0x823   : > { %10058 = vsyncadd (%p9894_p11), %s6371_s22, 4294967280  ;;  %s14015_s21 = sld [smem:[#allocation14_spill]]  ;;  %s14018_s18 = smov %s10065_s19 }
 0x824   : > { %s14016_s24 = sld [smem:[#allocation12_spill]] }
 0x825   : > { %s14017_s20 = sld [smem:[#allocation15_spill]] }
 0x829   : > { %p27_p12 = scmp.ge.s32.totalorder %s14015_s21, 4  }
 0x82a   : > { %s14019_s19 = smov %s14016_s24 }
 0x82b   :  { %29 = sbr.rel (!%p27_p12) target bundleno = 7 (0x7), region = 138 }
 0x830   :  { %6376 = vsyncpa [#allocation3], 1 }
 0x831   :  { %6378 = vsyncpa [#allocation3 + $0x1], 1 }
 0x832   :  { %6379 = vsyncpa [#allocation6], 1 }
 0x833   :  { %6380 = vsyncpa [#allocation4], 1 }
 0x834   :  { %6382 = vsyncpa [#allocation4 + $0x1], 1 }

</bundles_post_ra>
